<compile_context>
chip_gen: v7x
topology: tpu7x:2x2x1
jax: 0.10.0
libtpu: 0.0.40
codegen_flags: <defaults>
</compile_context>

<pallas_src>
import numpy as np
import jax
import jax.numpy as jnp
from jax.experimental import pallas as pl
from jax.experimental.pallas import tpu as pltpu


# --------------------------- device heuristics ----------------------------- #
def _device_kind():
    try:
        return jax.devices()[0].device_kind.lower()
    except Exception:
        return ""


def _default_vmem_limit(kind):
    # v4/v5e/v6e have 128 MiB physical VMEM per core -> allow ~96 MiB.
    # v7x has only 64 MiB -> stay conservative (also the safe unknown default).
    if ("v4" in kind) or ("v5" in kind) or ("v6" in kind):
        return 96 * 1024 * 1024
    return 40 * 1024 * 1024


def _pick_row_tile(Ho, Wp_pad, k, Cin, Cout_pad, act_bytes, out_bytes, vmem_limit):
    """Largest output-row tile R whose live VMEM fits comfortably."""
    KK = k * k
    per_row = Wp_pad * (
        2 * Cin * act_bytes          # input tile rows (double buffered)
        + KK * Cin * act_bytes       # folded (mo, k*k*Cin) LHS
        + Cout_pad * 4               # f32 accumulator
        + 2 * Cout_pad * out_bytes   # output tile (double buffered)
    )
    fixed = 2 * KK * Cin * Cout_pad * act_bytes        # weights (double buffered)
    budget = max(vmem_limit // 2 - fixed, per_row)     # headroom for halo etc.
    r = max(1, int(budget // max(per_row, 1)))
    r = min(Ho, r)
    # balance the tiles (avoid a tiny ragged last tile)
    t = -(-Ho // r)
    return max(1, -(-Ho // t))


# ----------------------------- Pallas kernel ------------------------------- #
def _acblock_pallas(xwin, w_folded, *, tap_offsets, mo, out_dtype, vmem_limit):
    """Fused shift-and-matmul convolution over row tiles.

    xwin:     (N, T, FLAT_TILE, Cin) per-image, per-row-tile flattened padded
              windows (FLAT_TILE = (R + k) * Wp_pad).
    w_folded: (k*k*Cin, Cout_pad) fused, tap-folded weights.
    Returns   (N, T, mo, Cout_pad) in `out_dtype`, mo = R * Wp_pad ("wide"
              rows: Wp_pad columns per output row, first Wo valid).
    """
    N, T, FLAT_TILE, Cin = xwin.shape
    KKCin, Cout_pad = w_folded.shape

    def kernel(x_ref, w_ref, o_ref):
        x = x_ref[0, 0]                                    # (FLAT_TILE, Cin)
        # Fold the k*k taps into the contraction dim: one (mo, k*k*Cin) LHS
        # built from statically shifted views -> a single deep-K MXU dot.
        lhs = jnp.concatenate(
            [x[off:off + mo, :] for off in tap_offsets], axis=1)
        acc = jnp.dot(lhs, w_ref[...], preferred_element_type=jnp.float32)
        o_ref[0, 0] = acc.astype(o_ref.dtype)              # single store

    a = jnp.dtype(xwin.dtype).itemsize
    o = jnp.dtype(out_dtype).itemsize
    # Advisory only; counts what the kernel actually moves/computes
    # (including lane/width padding, which the MXU/DMA really do process).
    cost = pl.CostEstimate(
        flops=2 * N * T * mo * KKCin * Cout_pad,
        transcendentals=0,
        bytes_accessed=(N * T * FLAT_TILE * Cin * a
                        + KKCin * Cout_pad * a
                        + N * T * mo * Cout_pad * o),
    )

    return pl.pallas_call(
        kernel,
        out_shape=jax.ShapeDtypeStruct((N, T, mo, Cout_pad), out_dtype),
        grid_spec=pltpu.PrefetchScalarGridSpec(
            num_scalar_prefetch=0,
            grid=(N, T),
            in_specs=[
                # One row-tile window per grid step (halo rows included).
                pl.BlockSpec((1, 1, FLAT_TILE, Cin), lambda n, t: (n, t, 0, 0)),
                # Grid-invariant fused weights (tiny; default buffering OK).
                # TODO(synk): pipeline_mode=pl.Buffered(1) would avoid the
                # duplicate weight buffer under v7x's tighter VMEM budget.
                pl.BlockSpec((KKCin, Cout_pad), lambda n, t: (0, 0)),
            ],
            out_specs=pl.BlockSpec((1, 1, mo, Cout_pad),
                                   lambda n, t: (n, t, 0, 0)),
        ),
        compiler_params=pltpu.CompilerParams(
            dimension_semantics=("parallel", "parallel"),  # independent tiles
            vmem_limit_bytes=vmem_limit,
        ),
        cost_estimate=cost,
    )(xwin, w_folded)


# ------------------------------- JAX glue ---------------------------------- #
def acblock_forward(x_nchw, w_sq, w_ver, w_hor, *, stride=1, padding=1,
                    compute_dtype=jnp.float32, row_tile=None):
    """ACBlock forward. x_nchw: (N, Cin, H, W); weights in PyTorch OIHW layout:
       w_sq (c1,Cin,k,k), w_ver (c2,Cin,k,1), w_hor (c3,Cin,1,k).
       compute_dtype=jnp.bfloat16 uses the bf16 MXU path (f32 accumulation);
       it is beneficial on all of v5e/v6e/v7x (halves HBM activation+output bytes).
    """
    N, Cin, H, W = map(int, x_nchw.shape)
    c1, c2, c3 = int(w_sq.shape[0]), int(w_ver.shape[0]), int(w_hor.shape[0])
    Cout = c1 + c2 + c3
    k = int(w_sq.shape[2])
    p = int(padding)
    assert stride == 1, "Pallas kernel implements stride=1"   # TODO(synk): stride>1
    assert 2 * p == k - 1, "ACBlock requires padding == (kernel_size - 1) // 2"
    assert w_ver.shape[2] == k and w_ver.shape[3] == 1
    assert w_hor.shape[2] == 1 and w_hor.shape[3] == k

    act_bytes = jnp.dtype(compute_dtype).itemsize
    out_dtype = compute_dtype                       # cast on the in-kernel store
    out_bytes = jnp.dtype(out_dtype).itemsize

    Ho, Wo = H, W                                   # stride 1, 'same' padding

    kind = _device_kind()
    # Lane-dense padded output channels; 256-wide RHS on v6e/v7x when Cout>128.
    lane = 128 if (Cout <= 128 or "v5" in kind) else 256
    Cout_pad = -(-Cout // lane) * lane
    # Sublane-aligned padded row width for the compute dtype (f32: 8, bf16: 16).
    row_align = 8 * max(1, 4 // act_bytes)
    Wp_pad = -(-(W + 2 * p) // row_align) * row_align

    vmem_limit = _default_vmem_limit(kind)
    if row_tile is None:
        R = _pick_row_tile(Ho, Wp_pad, k, Cin, Cout_pad,
                           act_bytes, out_bytes, vmem_limit)
    else:
        R = max(1, min(Ho, int(row_tile)))
    T = -(-Ho // R)
    mo = R * Wp_pad                                 # wide output rows per tile
    win_rows = R + k                                # R + 2p + 1 padded rows/tile
    FLAT_TILE = win_rows * Wp_pad

    # NCHW -> NHWC in compute dtype, spatial zero-pad (extra bottom rows keep
    # the largest tap shift in bounds and complete the last row tile).
    x_nhwc = jnp.transpose(x_nchw, (0, 2, 3, 1)).astype(compute_dtype)
    rows_total = T * R + 2 * p + 1
    xp = jnp.pad(x_nhwc, ((0, 0),
                          (p, rows_total - p - H),
                          (p, Wp_pad - W - p),
                          (0, 0)))
    # Per-tile row windows (halo rows duplicated only when T > 1).
    if T == 1:
        xwin = xp[:, None]
    else:
        xwin = jnp.stack(
            [xp[:, t * R: t * R + win_rows] for t in range(T)], axis=1)
    xwin = xwin.reshape(N, T, FLAT_TILE, Cin)

    # Fuse the three conv weights into per-tap (Cin, Cout_pad) matrices,
    # then fold the taps into the contraction dim: (k*k*Cin, Cout_pad).
    w_all = jnp.zeros((k, k, Cin, Cout_pad), compute_dtype)
    # square kxk conv: all taps, output channels [0, c1)
    w_all = w_all.at[:, :, :, :c1].set(
        jnp.transpose(w_sq, (2, 3, 1, 0)).astype(compute_dtype))
    # vertical (k x 1) conv, padding (p, 0): column offset p of the window
    w_all = w_all.at[:, p, :, c1:c1 + c2].set(
        jnp.transpose(w_ver[:, :, :, 0], (2, 1, 0)).astype(compute_dtype))
    # horizontal (1 x k) conv, padding (0, p): row offset p of the window
    w_all = w_all.at[p, :, :, c1 + c2:Cout].set(
        jnp.transpose(w_hor[:, :, 0, :], (2, 1, 0)).astype(compute_dtype))
    w_folded = w_all.reshape(k * k * Cin, Cout_pad)

    # Per-tap shift in the flattened (row-major, width-padded) tile:
    # pixel (r+kh, wo+kw) lives at flat index (r*Wp_pad + wo) + (kh*Wp_pad + kw).
    tap_offsets = tuple(kh * Wp_pad + kw for kh in range(k) for kw in range(k))

    out_wide = _acblock_pallas(xwin, w_folded, tap_offsets=tap_offsets, mo=mo,
                               out_dtype=out_dtype, vmem_limit=vmem_limit)
    # Slice the channel/width/row padding off BEFORE the transpose so the
    # NHWC->NCHW transpose only touches the real (N, Ho, Wo, Cout) output.
    out = out_wide.reshape(N, T * R, Wp_pad, Cout_pad)[:, :Ho, :Wo, :Cout]
    return jnp.transpose(out, (0, 3, 1, 2)).astype(x_nchw.dtype)   # NCHW


# ------------------------------- reference --------------------------------- #
def _ref_conv(x, w, stride, padding_hw):
    return jax.lax.conv_general_dilated(
        x, w, window_strides=(stride, stride),
        padding=((padding_hw[0], padding_hw[0]), (padding_hw[1], padding_hw[1])),
        dimension_numbers=("NCHW", "OIHW", "NCHW"))


if __name__ == "__main__":
    key = jax.random.PRNGKey(0)
    N, Cin, H, W = 2, 4, 16, 16
    out_channels, k, stride, padding = 8, 3, 1, 1

    c1 = int(out_channels * 0.5)          # 4
    c2 = int(out_channels * 0.33)         # 2
    c3 = out_channels - c1 - c2           # 2

    k1, k2, k3, k4 = jax.random.split(key, 4)
    x = jax.random.normal(k1, (N, Cin, H, W), jnp.float32)
    w_sq = 0.1 * jax.random.normal(k2, (c1, Cin, k, k), jnp.float32)
    w_ver = 0.1 * jax.random.normal(k3, (c2, Cin, k, 1), jnp.float32)
    w_hor = 0.1 * jax.random.normal(k4, (c3, Cin, 1, k), jnp.float32)

    # Reference: same semantics as the PyTorch module (3 convs + concat).
    x1 = _ref_conv(x, w_sq, stride, (padding, padding))
    x2 = _ref_conv(x, w_ver, stride, (padding, 0))
    x3 = _ref_conv(x, w_hor, stride, (0, padding))
    ref = jnp.concatenate([x1, x2, x3], axis=1)

    # f32 compute path (auto row tile -> one tile for this small image).
    out = jax.block_until_ready(
        acblock_forward(x, w_sq, w_ver, w_hor, stride=stride, padding=padding))
    assert out.shape == ref.shape == (N, out_channels, H, W)
    np.testing.assert_allclose(np.asarray(out), np.asarray(ref),
                               rtol=1e-4, atol=2e-4)

    # Forced row tiling (exercises the multi-tile / halo path: T = 2).
    out_rt = jax.block_until_ready(
        acblock_forward(x, w_sq, w_ver, w_hor, stride=stride, padding=padding,
                        row_tile=8))
    np.testing.assert_allclose(np.asarray(out_rt), np.asarray(ref),
                               rtol=1e-4, atol=2e-4)

    # bf16 compute path (bf16 MXU on v5e/v6e/v7x, bf16 output, f32 accum).
    out_bf16 = jax.block_until_ready(
        acblock_forward(x, w_sq, w_ver, w_hor, stride=stride, padding=padding,
                        compute_dtype=jnp.bfloat16))
    np.testing.assert_allclose(np.asarray(out_bf16), np.asarray(ref),
                               rtol=5e-2, atol=5e-2)

    print("KERNEL_OK")
</pallas_src>

<mosaic_0001>
module attributes {stable_mosaic.version = 11 : i64} {
  func.func @kernel(%arg0: i32, %arg1: i32, %arg2: memref<1x1x456x4xf32, #tpu.memory_space<vmem>>, %arg3: memref<36x128xf32, #tpu.memory_space<vmem>>, %arg4: memref<1x1x384x128xf32, #tpu.memory_space<vmem>>) attributes {dimension_semantics = [#tpu.dimension_semantics<parallel>, #tpu.dimension_semantics<parallel>], iteration_bounds = array<i64: 2, 1>, scalar_prefetch = 0 : i64, scratch_operands = 0 : i64, tpu.core_type = #tpu.core_type<tc>, window_params = [{transform_indices = @transform_0, window_bounds = array<i64: 1, 1, 456, 4>}, {pipeline_mode = #tpu.pipeline_mode<synchronous>, transform_indices = @transform_1, window_bounds = array<i64: 36, 128>}, {transform_indices = @transform_2, window_bounds = array<i64: 1, 1, 384, 128>}]} {
    %c0 = arith.constant 0 : index
    %c0_0 = arith.constant 0 : index
    %c0_1 = arith.constant 0 : index
    %c0_2 = arith.constant 0 : index
    %0 = vector.load %arg2[%c0, %c0_0, %c0_1, %c0_2] : memref<1x1x456x4xf32, #tpu.memory_space<vmem>>, vector<1x1x456x4xf32>
    %1 = vector.shape_cast %0 : vector<1x1x456x4xf32> to vector<456x4xf32>
    %2 = vector.extract_strided_slice %1 {offsets = [0, 0], sizes = [384, 4], strides = [1, 1]} : vector<456x4xf32> to vector<384x4xf32>
    %3 = vector.extract_strided_slice %1 {offsets = [1, 0], sizes = [384, 4], strides = [1, 1]} : vector<456x4xf32> to vector<384x4xf32>
    %4 = vector.extract_strided_slice %1 {offsets = [2, 0], sizes = [384, 4], strides = [1, 1]} : vector<456x4xf32> to vector<384x4xf32>
    %5 = vector.extract_strided_slice %1 {offsets = [24, 0], sizes = [384, 4], strides = [1, 1]} : vector<456x4xf32> to vector<384x4xf32>
    %6 = vector.extract_strided_slice %1 {offsets = [25, 0], sizes = [384, 4], strides = [1, 1]} : vector<456x4xf32> to vector<384x4xf32>
    %7 = vector.extract_strided_slice %1 {offsets = [26, 0], sizes = [384, 4], strides = [1, 1]} : vector<456x4xf32> to vector<384x4xf32>
    %8 = vector.extract_strided_slice %1 {offsets = [48, 0], sizes = [384, 4], strides = [1, 1]} : vector<456x4xf32> to vector<384x4xf32>
    %9 = vector.extract_strided_slice %1 {offsets = [49, 0], sizes = [384, 4], strides = [1, 1]} : vector<456x4xf32> to vector<384x4xf32>
    %10 = vector.extract_strided_slice %1 {offsets = [50, 0], sizes = [384, 4], strides = [1, 1]} : vector<456x4xf32> to vector<384x4xf32>
    %11 = tpu.concatenate %2, %3, %4, %5, %6, %7, %8, %9, %10 in 1 : vector<384x4xf32>, vector<384x4xf32>, vector<384x4xf32>, vector<384x4xf32>, vector<384x4xf32>, vector<384x4xf32>, vector<384x4xf32>, vector<384x4xf32>, vector<384x4xf32> -> vector<384x36xf32>
    %c0_3 = arith.constant 0 : index
    %c0_4 = arith.constant 0 : index
    %12 = vector.load %arg3[%c0_3, %c0_4] : memref<36x128xf32, #tpu.memory_space<vmem>>, vector<36x128xf32>
    %cst = arith.constant dense<0.000000e+00> : vector<384x128xf32>
    %13 = tpu.matmul %11, %12, %cst {dimension_numbers = #tpu.dot_dimension_numbers<[1], [0], [0], [1], [0, 0, 1, 1], [], []>} : vector<384x36xf32>, vector<36x128xf32>, vector<384x128xf32> -> vector<384x128xf32>
    %c0_5 = arith.constant 0 : index
    %c0_6 = arith.constant 0 : index
    %c0_7 = arith.constant 0 : index
    %c0_8 = arith.constant 0 : index
    %14 = vector.load %arg4[%c0_5, %c0_6, %c0_7, %c0_8] : memref<1x1x384x128xf32, #tpu.memory_space<vmem>>, vector<1x1x384x128xf32>
    %15 = vector.shape_cast %14 : vector<1x1x384x128xf32> to vector<384x128xf32>
    %16 = vector.shape_cast %13 : vector<384x128xf32> to vector<1x1x384x128xf32>
    tpu.vector_store %arg4[%c0_5, %c0_6, %c0_7, %c0_8], %16 {strides = array<i32>} : memref<1x1x384x128xf32, #tpu.memory_space<vmem>>, vector<1x1x384x128xf32>,
    return
  }
  func.func @transform_0(%arg0: i32, %arg1: i32) -> (i32, i32, i32, i32) {
    %c0_i32 = arith.constant 0 : i32
    %c0_i32_0 = arith.constant 0 : i32
    %c0_i32_1 = arith.constant 0 : i32
    return %arg0, %arg1, %c0_i32, %c0_i32_0 : i32, i32, i32, i32
  }
  func.func @transform_1(%arg0: i32, %arg1: i32) -> (i32, i32) {
    %c0_i32 = arith.constant 0 : i32
    %c0_i32_0 = arith.constant 0 : i32
    %c0_i32_1 = arith.constant 0 : i32
    return %c0_i32, %c0_i32_0 : i32, i32
  }
  func.func @transform_2(%arg0: i32, %arg1: i32) -> (i32, i32, i32, i32) {
    %c0_i32 = arith.constant 0 : i32
    %c0_i32_0 = arith.constant 0 : i32
    %c0_i32_1 = arith.constant 0 : i32
    return %arg0, %arg1, %c0_i32, %c0_i32_0 : i32, i32, i32, i32
  }
}

</mosaic_0001>

<bundles_post_ra>
// kernel: tpu_custom_call.1
= control target key start
LH: loop header
LB: loop body
LE: loop exit
PB: predicated region body
PF: predicated region fallthrough
CT: control target
= control target key end

     0   :  { %7 = vsyncpa [#allocation3], 0  ;;  %s5880_s0 = inlined_call_operand.vmem [shape: f32[2,1,456,4], index: 0, kind: input, shape index: {}]   ;;  %s5881_s1 = inlined_call_operand.vmem [shape: f32[36,128], index: 1, kind: input, shape index: {}]   ;;  %s5882_s2 = inlined_call_operand.hbm [shape: f32[2,1,384,128], index: 2, kind: output, shape index: {}]  }
   0x1   :  { %9 = vsyncpa [#allocation3 + $0x1], 0  ;;  %s3081_s9 = smov 0   ;;  %s3083_s10 = smov 0  }
   0x2   :  { %s3085_s11 = smov 0   ;;  %s3087_s12 = smov 0  }
   0x3   :  { %s3089_s13 = smov 0   ;;  %s3091_s14 = smov 0  }
   0x4 LB: > { %s2649_s15 = sadd.s32 4294967295, %s3054_s14   ;;  %s2650_s16 = sadd.s32 4294967294, %s3054_s14   ;;  %s3054_s14 = sphi %s3091_s14, %s15_s14   ;;  %s3050_s13 = sphi %s3089_s13, %s6704_s13   ;;  %s3046_s12 = sphi %s3087_s12, %s6703_s12   ;;  %s3042_s11 = sphi %s3085_s11, %s6702_s11   ;;  %s3038_s10 = sphi %s3083_s10, %s6701_s10   ;;  %s3034_s9 = sphi %s3081_s9, %s6700_s9  }
   0x5   : > { %s27_s17 = sadd.s32 1, %s3050_s13  ;;  %s85_s18 = sadd.s32 1, %s3042_s11 }
   0x6   : > { %p29_p0 = scmp.ge.s32.totalorder %s27_s17, 2  ;;  %p95_p1 = scmp.ne.s32.totalorder %s3042_s11, %s3038_s10 }
   0x7   : > { %p96_p2 = scmp.eq.s32.totalorder %s2649_s15, 1  ;;  %p101_p3 = scmp.ne.s32.totalorder %s3038_s10, %s3034_s9 }
   0x8   : > { %s6706_s17 = smov (%p29_p0, %s27_s17), 0  ;;  %p102_p5 = scmp.eq.s32.totalorder %s2650_s16, 1 }
   0x9   : > { %p3121_p4 = por %p96_p2, %p95_p1  ;;  %s80_s20 = ssub.s32 %s3050_s13, %s6706_s17 }
   0xa   : > { %p2653_p6 = scmp.ge.s32.totalorder %s3054_s14, 1  ;;  %p83_p7 = scmp.eq.s32.totalorder %s80_s20, 0 }
   0xb   : > { %p3128_p8 = por %p102_p5, %p101_p3  ;;  %p135_p9 = scmp.lt.s32.totalorder %s3054_s14, 3 }
   0xc   : > { %s3134_s22 = scalar_select %p83_p7, %s3042_s11, %s85_s18  }
   0xd   : > { %p136_p10 = pnand %p2653_p6, %p135_p9 }
   0xf   : > { %139 = sbr.rel (%p136_p10) target bundleno = 1142 (0x476), region = 28 }
  0x16   : > { %p161_p11 = scmp.lt.s32.totalorder %s3046_s12, 1  ;;  %vm274_vm0 = vcmask 1046528   ;;  %s3056_s28 = smov 4   ;;  %vm516_vm1 = vcmask 1045504   ;;  %vm2194_vm2 = vcmask 1043456   ;;  %vm1652_vm3 = vcmask 31744  }
  0x17   : > { %s3057_s29 = smov 8   ;;  %s3058_s30 = smov 12   ;;  %vm1701_vm4 = vcmask 64512   ;;  %vm1750_vm5 = vcmask 97280   ;;  %vm1799_vm6 = vcmask 130048   ;;  %vm1848_vm7 = vcmask 162816  }
  0x18   : > { %s162_s23 = scalar_select %p161_p11, %s3046_s12, 1  ;;  %vm1897_vm8 = vcmask 195584   ;;  %vm1946_vm9 = vcmask 228352   ;;  %vm1995_vm10 = vcmask 261120   ;;  %vm2049_vm11 = vcmask 293888  }
  0x19   : > { %s3059_s3 = smov 16   ;;  %s3060_s4 = smov 20  }
  0x1a   : > { %s2857_s24 = smul.u32 456, %s162_s23  ;;  %s3061_s15 = smov 24  }
  0x1b   : > { %s3062_s26 = smov 28   ;;  %s3064_s16 = smov [#allocation2]  }
  0x1c   : > { %s3141_s27 = scalar_lea.vmem %s5880_s0, %s2857_s24  ;;  %s2980_s18 = sshll.u32 %s3064_s16, 4  ;;  %s2981_s18 = int_to_ptr.vmem [resolvable:$false] %s2980_s18 }
  0x1d   : > { %v3144_v0 = vld [vmem:[%s3141_s27 + $0x10] sm:$0xff]  ;;  %v3147_v1 = vld [vmem:[%s3141_s27 + $0x18] sm:$0xff]  ;;  %v3150_v2 = vld [vmem:[%s3141_s27] sm:$0xff]  ;;  %s2982_s20 = scalar_lea.vmem %s2981_s18, 12288 }
  0x1e   : > { %v278_v3 = vrot.slane %v3144_v0, 1  ;;  %v280_v4 = vrot.slane %v3147_v1, 1  ;;  %v3155_v5 = vld [vmem:[%s3141_s27 + $0x8] sm:$0xff]  ;;  %v275_v6 = vrot.slane %v3150_v2, 1  ;;  %v3159_v7 = vld [vmem:[%s3141_s27 + $0x20] sm:$0xff]  ;;  %v3167_v11 = vld [vmem:[%s3141_s27 + $0x30] sm:$0xff] }
  0x1f   : > { %v276_v8 = vrot.slane %v3155_v5, 1  ;;  %v282_v9 = vrot.slane %v3159_v7, 1  ;;  %v3164_v10 = vld [vmem:[%s3141_s27 + $0x28] sm:$0xff]  ;;  %v286_v16 = vrot.slane %v3167_v11, 1  ;;  %v3180_v18 = vld [vmem:[%s3141_s27 + $0x38] sm:$0xff]  ;;  %v3183_v19 = vld [vmem:[%s3141_s27 + $0x40] sm:$0xff] }
  0x20   : > { %v281_v12 = vsel %vm274_vm0, %v278_v3, %v280_v4  ;;  %v284_v15 = vrot.slane %v3164_v10, 1  ;;  %v288_v21 = vrot.slane %v3180_v18, 1  ;;  %v290_v22 = vrot.slane %v3183_v19, 1  ;;  %v3197_v24 = vld [vmem:[%s3141_s27 + $0x48] sm:$0xff]  ;;  %v3200_v25 = vld [vmem:[%s3141_s27 + $0x50] sm:$0xff]  ;;  %v3215_v30 = vld [vmem:[%s3141_s27 + $0x58] sm:$0xff] }
  0x21   : > { %376 = vrot.lane.b32.xlu1 %v281_v12, %s3056_s28  ;;  %v277_v13 = vsel %vm274_vm0, %v275_v6, %v276_v8  ;;  %v3174_v14 = vsel %vm274_vm0, %v280_v4, %v282_v9  ;;  %v279_v17 = vsel %vm274_vm0, %v276_v8, %v278_v3  ;;  %v292_v27 = vrot.slane %v3197_v24, 1  ;;  %v3218_v31 = vld [vmem:[%s3141_s27 + $0x60] sm:$0xff]  ;;  %v3233_v36 = vld [vmem:[%s3141_s27 + $0x68] sm:$0xff]  ;;  %v3236_v37 = vld [vmem:[%s3141_s27 + $0x70] sm:$0xff] }
  0x22   : > { %372 = vrot.lane.b32.xlu0 %v277_v13, %s3056_s28  ;;  %v3189_v20 = vsel %vm274_vm0, %v284_v15, %v286_v16  ;;  %v3194_v23 = vsel %vm274_vm0, %v282_v9, %v284_v15  ;;  %v3207_v26 = vsel %vm274_vm0, %v288_v21, %v290_v22  ;;  %v294_v28 = vrot.slane %v3200_v25, 1  ;;  %v3251_v42 = vld [vmem:[%s3141_s27 + $0x78] sm:$0xff]  ;;  %v3254_v43 = vld [vmem:[%s3141_s27 + $0x80] sm:$0xff]  ;;  %v3269_v48 = vld [vmem:[%s3141_s27 + $0x88] sm:$0xff] }
  0x23   : > { %6078 = vst [vmem:[#allocation5_spill] sm:$0xff] %v3207_v26  ;;  %v3212_v29 = vsel %vm274_vm0, %v286_v16, %v288_v21  ;;  %v296_v33 = vrot.slane %v3215_v30, 1  ;;  %v298_v34 = vrot.slane %v3218_v31, 1  ;;  %v3230_v35 = vsel %vm274_vm0, %v290_v22, %v292_v27  ;;  %v3272_v49 = vld [vmem:[%s3141_s27 + $0x90] sm:$0xff]  ;;  %v3287_v54 = vld [vmem:[%s3141_s27 + $0x98] sm:$0xff]  ;;  %v3290_v55 = vld [vmem:[%s3141_s27 + $0xa0] sm:$0xff] }
  0x24   : > { %v3225_v32 = vsel %vm274_vm0, %v292_v27, %v294_v28  ;;  %6080 = vst [vmem:[#allocation7_spill] sm:$0xff] %v3230_v35  ;;  %v300_v39 = vrot.slane %v3233_v36, 1  ;;  %v302_v40 = vrot.slane %v3236_v37, 1  ;;  %v304_v45 = vrot.slane %v3251_v42, 1  ;;  %v3305_v60 = vld [vmem:[%s3141_s27 + $0xa8] sm:$0xff]  ;;  %v3308_v61 = vld [vmem:[%s3141_s27 + $0xb0] sm:$0xff] }
  0x25   : > { %378 = vrot.lane.b32.xlu1 %v3174_v14, %s3056_s28  ;;  %6079 = vst [vmem:[#allocation6_spill] sm:$0xff] %v3225_v32  ;;  %v3243_v38 = vsel %vm274_vm0, %v296_v33, %v298_v34  ;;  %v3248_v41 = vsel %vm274_vm0, %v294_v28, %v296_v33  ;;  %v306_v46 = vrot.slane %v3254_v43, 1  ;;  %v308_v51 = vrot.slane %v3269_v48, 1  ;;  %v3323_v6 = vld [vmem:[%s3141_s27 + $0xb8] sm:$0xff]  ;;  %v3326_v8 = vld [vmem:[%s3141_s27 + $0xc0] sm:$0xff]  ;;  %v3341_v16 = vld [vmem:[%s3141_s27 + $0xc8] sm:$0xff] }
  0x26   : > { %374 = vrot.lane.b32.xlu0 %v279_v17, %s3056_s28  ;;  %6081 = vst [vmem:[#allocation8_spill] sm:$0xff] %v3243_v38  ;;  %6082 = vst [vmem:[#allocation9_spill] sm:$0xff] %v3248_v41  ;;  %v3261_v44 = vsel %vm274_vm0, %v300_v39, %v302_v40  ;;  %v3266_v47 = vsel %vm274_vm0, %v298_v34, %v300_v39  ;;  %v310_v52 = vrot.slane %v3272_v49, 1  ;;  %v312_v57 = vrot.slane %v3287_v54, 1  ;;  %v3344_v17 = vld [vmem:[%s3141_s27 + $0xd0] sm:$0xff]  ;;  %v3359_v33 = vld [vmem:[%s3141_s27 + $0xd8] sm:$0xff] }
  0x27   : > { %6083 = vst [vmem:[#allocation10_spill] sm:$0xff] %v3261_v44  ;;  %6084 = vst [vmem:[#allocation11_spill] sm:$0xff] %v3266_v47  ;;  %v3279_v50 = vsel %vm274_vm0, %v304_v45, %v306_v46  ;;  %v3284_v53 = vsel %vm274_vm0, %v302_v40, %v304_v45  ;;  %v314_v58 = vrot.slane %v3290_v55, 1  ;;  %v3302_v59 = vsel %vm274_vm0, %v306_v46, %v308_v51  ;;  %v3362_v34 = vld [vmem:[%s3141_s27 + $0xe0] sm:$0xff] }
  0x28   : > { %6085 = vst [vmem:[#allocation12_spill] sm:$0xff] %v3279_v50  ;;  %6086 = vst [vmem:[#allocation13_spill] sm:$0xff] %v3284_v53  ;;  %v3297_v56 = vsel %vm274_vm0, %v308_v51, %v310_v52  ;;  %v316_v63 = vrot.slane %v3305_v60, 1  ;;  %v318_v3 = vrot.slane %v3308_v61, 1  ;;  %v3320_v4 = vsel %vm274_vm0, %v310_v52, %v312_v57  ;;  %v3377_v51 = vld [vmem:[%s3141_s27 + $0xe8] sm:$0xff]  ;;  %v3380_v52 = vld [vmem:[%s3141_s27 + $0xf0] sm:$0xff] }
  0x29   : > { %382 = vrot.lane.b32.xlu1 %v3189_v20, %s3056_s28  ;;  %6087 = vst [vmem:[#allocation14_spill] sm:$0xff] %v3297_v56  ;;  %6088 = vst [vmem:[#allocation15_spill] sm:$0xff] %v3302_v59  ;;  %v3315_v62 = vsel %vm274_vm0, %v312_v57, %v314_v58  ;;  %v320_v12 = vrot.slane %v3323_v6, 1  ;;  %v322_v13 = vrot.slane %v3326_v8, 1  ;;  %v324_v22 = vrot.slane %v3341_v16, 1 }
  0x2a   : > { %380 = vrot.lane.b32.xlu0 %v3194_v23, %s3056_s28  ;;  %6089 = vst [vmem:[#allocation16_spill] sm:$0xff] %v3315_v62  ;;  %6090 = vst [vmem:[#allocation17_spill] sm:$0xff] %v3320_v4  ;;  %v3333_v9 = vsel %vm274_vm0, %v316_v63, %v318_v3  ;;  %v3338_v15 = vsel %vm274_vm0, %v314_v58, %v316_v63  ;;  %v326_v27 = vrot.slane %v3344_v17, 1  ;;  %v328_v40 = vrot.slane %v3359_v33, 1 }
  0x2b   : > { %6091 = vst [vmem:[#allocation18_spill] sm:$0xff] %v3333_v9  ;;  %6092 = vst [vmem:[#allocation19_spill] sm:$0xff] %v3338_v15  ;;  %v3351_v21 = vsel %vm274_vm0, %v320_v12, %v322_v13  ;;  %v3356_v28 = vsel %vm274_vm0, %v318_v3, %v320_v12  ;;  %v330_v45 = vrot.slane %v3362_v34, 1  ;;  %v3374_v46 = vsel %vm274_vm0, %v322_v13, %v324_v22  ;;  %v3395_v12 = vld [vmem:[%s3141_s27 + $0xf8] sm:$0xff]  ;;  %v3398_v13 = vld [vmem:[%s3141_s27 + $0x100] sm:$0xff] }
  0x2c   : > { %6093 = vst [vmem:[#allocation20_spill] sm:$0xff] %v3351_v21  ;;  %6094 = vst [vmem:[#allocation21_spill] sm:$0xff] %v3356_v28  ;;  %v3369_v39 = vsel %vm274_vm0, %v324_v22, %v326_v27  ;;  %v332_v58 = vrot.slane %v3377_v51, 1  ;;  %v334_v63 = vrot.slane %v3380_v52, 1  ;;  %v3392_v3 = vsel %vm274_vm0, %v326_v27, %v328_v40 }
  0x2d   : > { %386 = vrot.lane.b32.xlu1 %v3207_v26, %s3056_s28  ;;  %6095 = vst [vmem:[#allocation22_spill] sm:$0xff] %v3369_v39  ;;  %6096 = vst [vmem:[#allocation23_spill] sm:$0xff] %v3374_v46  ;;  %v3387_v57 = vsel %vm274_vm0, %v328_v40, %v330_v45  ;;  %v338_v27 = vrot.slane %v3398_v13, 1 }
  0x2e   : > { %384 = vrot.lane.b32.xlu0 %v3212_v29, %s3056_s28  ;;  %6097 = vst [vmem:[#allocation24_spill] sm:$0xff] %v3387_v57  ;;  %6098 = vst [vmem:[#allocation25_spill] sm:$0xff] %v3392_v3  ;;  %v3405_v22 = vsel %vm274_vm0, %v332_v58, %v334_v63  ;;  %v3410_v40 = vsel %vm274_vm0, %v330_v45, %v332_v58 }
  0x2f   : > { %6099 = vst [vmem:[#allocation26_spill] sm:$0xff] %v3405_v22  ;;  %6100 = vst [vmem:[#allocation27_spill] sm:$0xff] %v3410_v40 }
  0x31   : > { %390 = vrot.lane.b32.xlu1 %v3225_v32, %s3056_s28 }
  0x32   : > { %388 = vrot.lane.b32.xlu0 %v3230_v35, %s3056_s28 }
  0x35   : > { %394 = vrot.lane.b32.xlu1 %v3243_v38, %s3056_s28  ;;  %v3521_v38 = vld [vmem:[%s3141_s27 + $0x168] sm:$0xff] }
  0x36   : > { %392 = vrot.lane.b32.xlu0 %v3248_v41, %s3056_s28  ;;  %v3542_v41 = vld [vmem:[%s3141_s27 + $0x180] sm:$0xff] }
  0x37   : > { %6115 = vst [vmem:[#allocation42_spill] sm:$0xff] %v3542_v41  ;;  %v5957_v26 = vrot.slane %v3542_v41, 1 }
  0x39   : > { %398 = vrot.lane.b32.xlu1 %v3261_v44, %s3056_s28  ;;  %v3503_v44 = vld [vmem:[%s3141_s27 + $0x158] sm:$0xff] }
  0x3a   : > { %396 = vrot.lane.b32.xlu0 %v3266_v47, %s3056_s28  ;;  %v3524_v47 = vld [vmem:[%s3141_s27 + $0x170] sm:$0xff] }
  0x3b   : > { %v366_v32 = vrot.slane %v3524_v47, 1 }
  0x3d   : > { %402 = vrot.lane.b32.xlu1 %v3279_v50, %s3056_s28  ;;  %v3485_v50 = vld [vmem:[%s3141_s27 + $0x148] sm:$0xff] }
  0x3e   : > { %400 = vrot.lane.b32.xlu0 %v3284_v53, %s3056_s28  ;;  %v3506_v53 = vld [vmem:[%s3141_s27 + $0x160] sm:$0xff] }
  0x41   : > { %406 = vrot.lane.b32.xlu1 %v3297_v56, %s3056_s28  ;;  %v3467_v56 = vld [vmem:[%s3141_s27 + $0x138] sm:$0xff] }
  0x42   : > { %404 = vrot.lane.b32.xlu0 %v3302_v59, %s3056_s28  ;;  %v3488_v59 = vld [vmem:[%s3141_s27 + $0x150] sm:$0xff] }
  0x45   : > { %410 = vrot.lane.b32.xlu1 %v3315_v62, %s3056_s28  ;;  %v3449_v62 = vld [vmem:[%s3141_s27 + $0x128] sm:$0xff] }
  0x46   : > { %408 = vrot.lane.b32.xlu0 %v3320_v4, %s3056_s28  ;;  %v3470_v4 = vld [vmem:[%s3141_s27 + $0x140] sm:$0xff] }
  0x49   : > { %414 = vrot.lane.b32.xlu1 %v3333_v9, %s3056_s28  ;;  %v3431_v9 = vld [vmem:[%s3141_s27 + $0x118] sm:$0xff] }
  0x4a   : > { %412 = vrot.lane.b32.xlu0 %v3338_v15, %s3056_s28  ;;  %v3452_v15 = vld [vmem:[%s3141_s27 + $0x130] sm:$0xff] }
  0x4d   : > { %418 = vrot.lane.b32.xlu1 %v3351_v21, %s3056_s28  ;;  %v3413_v21 = vld [vmem:[%s3141_s27 + $0x108] sm:$0xff] }
  0x4e   : > { %416 = vrot.lane.b32.xlu0 %v3356_v28, %s3056_s28  ;;  %v3434_v28 = vld [vmem:[%s3141_s27 + $0x120] sm:$0xff] }
  0x51   : > { %422 = vrot.lane.b32.xlu1 %v3369_v39, %s3056_s28  ;;  %v336_v39 = vrot.slane %v3395_v12, 1 }
  0x52   : > { %420 = vrot.lane.b32.xlu0 %v3374_v46, %s3056_s28  ;;  %v3416_v46 = vld [vmem:[%s3141_s27 + $0x110] sm:$0xff] }
  0x53   : > { %v342_v45 = vrot.slane %v3416_v46, 1  ;;  %v3428_v58 = vsel %vm274_vm0, %v334_v63, %v336_v39 }
  0x54   : > { %6102 = vst [vmem:[#allocation29_spill] sm:$0xff] %v3428_v58 }
  0x55   : > { %426 = vrot.lane.b32.xlu1 %v3387_v57, %s3056_s28  ;;  %v3423_v57 = vsel %vm274_vm0, %v336_v39, %v338_v27  ;;  %v346_v39 = vrot.slane %v3434_v28, 1 }
  0x56   : > { %424 = vrot.lane.b32.xlu0 %v3392_v3, %s3056_s28  ;;  %6101 = vst [vmem:[#allocation28_spill] sm:$0xff] %v3423_v57  ;;  %v340_v3 = vrot.slane %v3413_v21, 1 }
  0x58   : > { %v3446_v63 = vsel %vm274_vm0, %v338_v27, %v340_v3 }
  0x59   : > { %430 = vrot.lane.b32.xlu1 %v3405_v22, %s3056_s28  ;;  %v3441_v22 = vsel %vm274_vm0, %v340_v3, %v342_v45  ;;  %6104 = vst [vmem:[#allocation31_spill] sm:$0xff] %v3446_v63  ;;  %v350_v3 = vrot.slane %v3452_v15, 1 }
  0x5a   : > { %428 = vrot.lane.b32.xlu0 %v3410_v40, %s3056_s28  ;;  %6103 = vst [vmem:[#allocation30_spill] sm:$0xff] %v3441_v22  ;;  %v344_v40 = vrot.slane %v3431_v9, 1 }
  0x5c   : > { %v3464_v27 = vsel %vm274_vm0, %v342_v45, %v344_v40 }
  0x5d   : > { %434 = vrot.lane.b32.xlu1 %v3423_v57, %s3056_s28  ;;  %v3459_v57 = vsel %vm274_vm0, %v344_v40, %v346_v39  ;;  %6106 = vst [vmem:[#allocation33_spill] sm:$0xff] %v3464_v27  ;;  %v354_v40 = vrot.slane %v3470_v4, 1 }
  0x5e   : > { %432 = vrot.lane.b32.xlu0 %v3428_v58, %s3056_s28  ;;  %6105 = vst [vmem:[#allocation32_spill] sm:$0xff] %v3459_v57  ;;  %v348_v58 = vrot.slane %v3449_v62, 1 }
  0x60   : > { %v3482_v45 = vsel %vm274_vm0, %v346_v39, %v348_v58 }
  0x61   : > { %438 = vrot.lane.b32.xlu1 %v3441_v22, %s3056_s28  ;;  %v3477_v22 = vsel %vm274_vm0, %v348_v58, %v350_v3  ;;  %6108 = vst [vmem:[#allocation35_spill] sm:$0xff] %v3482_v45  ;;  %v358_v58 = vrot.slane %v3488_v59, 1 }
  0x62   : > { %436 = vrot.lane.b32.xlu0 %v3446_v63, %s3056_s28  ;;  %6107 = vst [vmem:[#allocation34_spill] sm:$0xff] %v3477_v22  ;;  %v352_v63 = vrot.slane %v3467_v56, 1 }
  0x64   : > { %v3500_v39 = vsel %vm274_vm0, %v350_v3, %v352_v63 }
  0x65   : > { %442 = vrot.lane.b32.xlu1 %v3459_v57, %s3056_s28  ;;  %v3495_v57 = vsel %vm274_vm0, %v352_v63, %v354_v40  ;;  %6110 = vst [vmem:[#allocation37_spill] sm:$0xff] %v3500_v39  ;;  %v362_v63 = vrot.slane %v3506_v53, 1 }
  0x66   : > { %440 = vrot.lane.b32.xlu0 %v3464_v27, %s3056_s28  ;;  %6109 = vst [vmem:[#allocation36_spill] sm:$0xff] %v3495_v57  ;;  %v356_v27 = vrot.slane %v3485_v50, 1 }
  0x68   : > { %v3518_v3 = vsel %vm274_vm0, %v354_v40, %v356_v27  ;;  %v3539_v40 = vld [vmem:[%s3141_s27 + $0x178] sm:$0xff] }
  0x69   : > { %446 = vrot.lane.b32.xlu1 %v3477_v22, %s3056_s28  ;;  %v3513_v22 = vsel %vm274_vm0, %v356_v27, %v358_v58  ;;  %6112 = vst [vmem:[#allocation39_spill] sm:$0xff] %v3518_v3 }
  0x6a   : > { %444 = vrot.lane.b32.xlu0 %v3482_v45, %s3056_s28  ;;  %6111 = vst [vmem:[#allocation38_spill] sm:$0xff] %v3513_v22  ;;  %v360_v45 = vrot.slane %v3503_v44, 1 }
  0x6c   : > { %v3536_v27 = vsel %vm274_vm0, %v358_v58, %v360_v45 }
  0x6d   : > { %450 = vrot.lane.b32.xlu1 %v3495_v57, %s3056_s28  ;;  %v3531_v57 = vsel %vm274_vm0, %v360_v45, %v362_v63  ;;  %6114 = vst [vmem:[#allocation41_spill] sm:$0xff] %v3536_v27 }
  0x6e   : > { %448 = vrot.lane.b32.xlu0 %v3500_v39, %s3056_s28  ;;  %6113 = vst [vmem:[#allocation40_spill] sm:$0xff] %v3531_v57  ;;  %v364_v39 = vrot.slane %v3521_v38, 1 }
  0x70   : > { %v3554_v45 = vsel %vm274_vm0, %v362_v63, %v364_v39 }
  0x71   : > { %454 = vrot.lane.b32.xlu1 %v3513_v22, %s3056_s28  ;;  %v3549_v22 = vsel %vm274_vm0, %v364_v39, %v366_v32  ;;  %6117 = vst [vmem:[#allocation44_spill] sm:$0xff] %v3554_v45  ;;  %v517_v39 = vrot.slane %v3150_v2, 2 }
  0x72   : > { %452 = vrot.lane.b32.xlu0 %v3518_v3, %s3056_s28  ;;  %6116 = vst [vmem:[#allocation43_spill] sm:$0xff] %v3549_v22  ;;  %v368_v3 = vrot.slane %v3539_v40, 1 }
  0x74   : > { %v3563_v58 = vsel %vm274_vm0, %v368_v3, %v5957_v26  ;;  %v3568_v35 = vsel %vm274_vm0, %v366_v32, %v368_v3  ;;  %v522_v26 = vrot.slane %v3147_v1, 2  ;;  %v526_v32 = vrot.slane %v3164_v10, 2 }
  0x75   : > { %458 = vrot.lane.b32.xlu1 %v3531_v57, %s3056_s28  ;;  %6118 = vst [vmem:[#allocation45_spill] sm:$0xff] %v3563_v58  ;;  %v518_v57 = vrot.slane %v3155_v5, 2  ;;  %6119 = vst [vmem:[#allocation46_spill] sm:$0xff] %v3568_v35  ;;  %v524_v5 = vrot.slane %v3159_v7, 2  ;;  %v528_v3 = vrot.slane %v3167_v11, 2 }
  0x76   : > { %456 = vrot.lane.b32.xlu0 %v3536_v27, %s3056_s28  ;;  %v520_v27 = vrot.slane %v3144_v0, 2 }
  0x77   : > { %v519_v0 = vsel %vm516_vm1, %v517_v39, %v518_v57  ;;  %v3582_v2 = vsel %vm516_vm1, %v522_v26, %v524_v5  ;;  %v530_v39 = vrot.slane %v3180_v18, 2 }
  0x78   : > { %v521_v63 = vsel %vm516_vm1, %v518_v57, %v520_v27  ;;  %6120 = vst [vmem:[#allocation47_spill] sm:$0xff] %v3582_v2  ;;  %v3591_v57 = vsel %vm516_vm1, %v526_v32, %v528_v3 }
  0x79   : > { %462 = vrot.lane.b32.xlu1 %v3549_v22, %s3056_s28  ;;  %6121 = vst [vmem:[#allocation48_spill] sm:$0xff] %v3591_v57 }
  0x7a   : > { %460 = vrot.lane.b32.xlu0 %v3554_v45, %s3056_s28 }
  0x7d   : > { %466 = vrot.lane.b32.xlu1 %v3563_v58, %s3056_s28  ;;  %v523_v58 = vsel %vm516_vm1, %v520_v27, %v522_v26  ;;  %v534_v27 = vrot.slane %v3197_v24, 2 }
  0x7e   : > { %464 = vrot.lane.b32.xlu0 %v3568_v35, %s3056_s28  ;;  %s3063_s28 = smov 32  }
  0x81   : > { %616 = vrot.lane.b32.xlu1 %v521_v63, %s3057_s29  ;;  %v532_v63 = vrot.slane %v3183_v19, 2 }
  0x82   : > { %614 = vrot.lane.b32.xlu0 %v519_v0, %s3057_s29  ;;  %v3596_v0 = vsel %vm516_vm1, %v524_v5, %v526_v32  ;;  %v538_v32 = vrot.slane %v3215_v30, 2 }
  0x83   : > { %6122 = vst [vmem:[#allocation49_spill] sm:$0xff] %v3596_v0  ;;  %v3603_v26 = vsel %vm516_vm1, %v530_v39, %v532_v63 }
  0x84   : > { %6123 = vst [vmem:[#allocation50_spill] sm:$0xff] %v3603_v26 }
  0x85   : > { %620 = vrot.lane.b32.xlu1 %v3582_v2, %s3057_s29  ;;  %v3608_v2 = vsel %vm516_vm1, %v528_v3, %v530_v39  ;;  %v542_v39 = vrot.slane %v3233_v36, 2 }
  0x86   : > { %618 = vrot.lane.b32.xlu0 %v523_v58, %s3057_s29  ;;  %v536_v58 = vrot.slane %v3200_v25, 2  ;;  %6124 = vst [vmem:[#allocation51_spill] sm:$0xff] %v3608_v2 }
  0x88   : > { %v3615_v5 = vsel %vm516_vm1, %v534_v27, %v536_v58  ;;  %v3634_v22 = vsel %vm516_vm1, %v536_v58, %v538_v32 }
  0x89   : > { %624 = vrot.lane.b32.xlu1 %v3591_v57, %s3057_s29  ;;  %6125 = vst [vmem:[#allocation52_spill] sm:$0xff] %v3615_v5  ;;  %v540_v57 = vrot.slane %v3218_v31, 2  ;;  %6129 = vst [vmem:[#allocation56_spill] sm:$0xff] %v3634_v22 }
  0x8a   : > { %622 = vrot.lane.b32.xlu0 %v3596_v0, %s3057_s29  ;;  %v3620_v0 = vsel %vm516_vm1, %v532_v63, %v534_v27 }
  0x8b   : > { %6126 = vst [vmem:[#allocation53_spill] sm:$0xff] %v3620_v0  ;;  %v3627_v3 = vsel %vm516_vm1, %v538_v32, %v540_v57  ;;  %v3650_v58 = vsel %vm516_vm1, %v540_v57, %v542_v39 }
  0x8c   : > { %6127 = vst [vmem:[#allocation54_spill] sm:$0xff] %v3627_v3  ;;  %6133 = vst [vmem:[#allocation60_spill] sm:$0xff] %v3650_v58 }
  0x8d   : > { %628 = vrot.lane.b32.xlu1 %v3603_v26, %s3057_s29  ;;  %v544_v26 = vrot.slane %v3236_v37, 2 }
  0x8e   : > { %626 = vrot.lane.b32.xlu0 %v3608_v2, %s3057_s29 }
  0x8f   : > { %v3643_v27 = vsel %vm516_vm1, %v542_v39, %v544_v26 }
  0x90   : > { %6131 = vst [vmem:[#allocation58_spill] sm:$0xff] %v3643_v27 }
  0x91   : > { %632 = vrot.lane.b32.xlu1 %v3615_v5, %s3057_s29  ;;  %v546_v5 = vrot.slane %v3251_v42, 2 }
  0x92   : > { %630 = vrot.lane.b32.xlu0 %v3620_v0, %s3057_s29  ;;  %v548_v0 = vrot.slane %v3254_v43, 2 }
  0x93   : > { %v3631_v2 = vpop.permute.xlu1 %376  ;;  %v3666_v57 = vsel %vm516_vm1, %v544_v26, %v546_v5 }
  0x94   : > { %6128 = vst [vmem:[#allocation55_spill] sm:$0xff] %v3631_v2  ;;  %v3636_v63 = vpop.permute.xlu0 %372  ;;  %v3659_v2 = vsel %vm516_vm1, %v546_v5, %v548_v0  ;;  %6137 = vst [vmem:[#allocation64_spill] sm:$0xff] %v3666_v57 }
  0x95   : > { %6130 = vst [vmem:[#allocation57_spill] sm:$0xff] %v3636_v63  ;;  %636 = vrot.lane.b32.xlu1 %v3627_v3, %s3057_s29  ;;  %6135 = vst [vmem:[#allocation62_spill] sm:$0xff] %v3659_v2  ;;  %v550_v63 = vrot.slane %v3269_v48, 2  ;;  %v552_v3 = vrot.slane %v3272_v49, 2 }
  0x96   : > { %634 = vrot.lane.b32.xlu0 %v3634_v22, %s3057_s29 }
  0x97   : > { %v3647_v35 = vpop.permute.xlu1 %378  ;;  %v3682_v26 = vsel %vm516_vm1, %v548_v0, %v550_v63 }
  0x98   : > { %6132 = vst [vmem:[#allocation59_spill] sm:$0xff] %v3647_v35  ;;  %v3652_v32 = vpop.permute.xlu0 %374  ;;  %v3675_v35 = vsel %vm516_vm1, %v550_v63, %v552_v3  ;;  %6141 = vst [vmem:[#allocation68_spill] sm:$0xff] %v3682_v26 }
  0x99   : > { %6134 = vst [vmem:[#allocation61_spill] sm:$0xff] %v3652_v32  ;;  %640 = vrot.lane.b32.xlu1 %v3643_v27, %s3057_s29  ;;  %6139 = vst [vmem:[#allocation66_spill] sm:$0xff] %v3675_v35  ;;  %v554_v32 = vrot.slane %v3287_v54, 2  ;;  %v556_v27 = vrot.slane %v3290_v55, 2 }
  0x9a   : > { %638 = vrot.lane.b32.xlu0 %v3650_v58, %s3057_s29 }
  0x9b   : > { %v3663_v22 = vpop.permute.xlu1 %382  ;;  %v3698_v0 = vsel %vm516_vm1, %v552_v3, %v554_v32 }
  0x9c   : > { %6136 = vst [vmem:[#allocation63_spill] sm:$0xff] %v3663_v22  ;;  %v3668_v39 = vpop.permute.xlu0 %380  ;;  %v3691_v22 = vsel %vm516_vm1, %v554_v32, %v556_v27  ;;  %6145 = vst [vmem:[#allocation72_spill] sm:$0xff] %v3698_v0 }
  0x9d   : > { %6138 = vst [vmem:[#allocation65_spill] sm:$0xff] %v3668_v39  ;;  %644 = vrot.lane.b32.xlu1 %v3659_v2, %s3057_s29  ;;  %6143 = vst [vmem:[#allocation70_spill] sm:$0xff] %v3691_v22  ;;  %v558_v39 = vrot.slane %v3305_v60, 2  ;;  %v560_v2 = vrot.slane %v3308_v61, 2 }
  0x9e   : > { %642 = vrot.lane.b32.xlu0 %v3666_v57, %s3057_s29 }
  0x9f   : > { %v3679_v58 = vpop.permute.xlu1 %386  ;;  %v3714_v3 = vsel %vm516_vm1, %v556_v27, %v558_v39 }
  0xa0   : > { %6140 = vst [vmem:[#allocation67_spill] sm:$0xff] %v3679_v58  ;;  %v3684_v5 = vpop.permute.xlu0 %384  ;;  %v3707_v58 = vsel %vm516_vm1, %v558_v39, %v560_v2  ;;  %6149 = vst [vmem:[#allocation76_spill] sm:$0xff] %v3714_v3 }
  0xa1   : > { %6142 = vst [vmem:[#allocation69_spill] sm:$0xff] %v3684_v5  ;;  %648 = vrot.lane.b32.xlu1 %v3675_v35, %s3057_s29  ;;  %6147 = vst [vmem:[#allocation74_spill] sm:$0xff] %v3707_v58  ;;  %v562_v5 = vrot.slane %v3323_v6, 2  ;;  %v564_v35 = vrot.slane %v3326_v8, 2 }
  0xa2   : > { %646 = vrot.lane.b32.xlu0 %v3682_v26, %s3057_s29 }
  0xa3   : > { %v3695_v57 = vpop.permute.xlu1 %390  ;;  %v3730_v27 = vsel %vm516_vm1, %v560_v2, %v562_v5 }
  0xa4   : > { %6144 = vst [vmem:[#allocation71_spill] sm:$0xff] %v3695_v57  ;;  %v3700_v63 = vpop.permute.xlu0 %388  ;;  %v3723_v57 = vsel %vm516_vm1, %v562_v5, %v564_v35  ;;  %6153 = vst [vmem:[#allocation80_spill] sm:$0xff] %v3730_v27 }
  0xa5   : > { %6146 = vst [vmem:[#allocation73_spill] sm:$0xff] %v3700_v63  ;;  %652 = vrot.lane.b32.xlu1 %v3691_v22, %s3057_s29  ;;  %6151 = vst [vmem:[#allocation78_spill] sm:$0xff] %v3723_v57  ;;  %v566_v63 = vrot.slane %v3341_v16, 2  ;;  %v568_v22 = vrot.slane %v3344_v17, 2 }
  0xa6   : > { %650 = vrot.lane.b32.xlu0 %v3698_v0, %s3057_s29 }
  0xa7   : > { %v3711_v26 = vpop.permute.xlu1 %394  ;;  %v3746_v2 = vsel %vm516_vm1, %v564_v35, %v566_v63 }
  0xa8   : > { %6148 = vst [vmem:[#allocation75_spill] sm:$0xff] %v3711_v26  ;;  %v3716_v32 = vpop.permute.xlu0 %392  ;;  %v3739_v26 = vsel %vm516_vm1, %v566_v63, %v568_v22  ;;  %6157 = vst [vmem:[#allocation84_spill] sm:$0xff] %v3746_v2 }
  0xa9   : > { %6150 = vst [vmem:[#allocation77_spill] sm:$0xff] %v3716_v32  ;;  %656 = vrot.lane.b32.xlu1 %v3707_v58, %s3057_s29  ;;  %6155 = vst [vmem:[#allocation82_spill] sm:$0xff] %v3739_v26  ;;  %v570_v32 = vrot.slane %v3359_v33, 2  ;;  %v572_v58 = vrot.slane %v3362_v34, 2 }
  0xaa   : > { %654 = vrot.lane.b32.xlu0 %v3714_v3, %s3057_s29 }
  0xab   : > { %v3727_v0 = vpop.permute.xlu1 %398  ;;  %v3762_v35 = vsel %vm516_vm1, %v568_v22, %v570_v32 }
  0xac   : > { %6152 = vst [vmem:[#allocation79_spill] sm:$0xff] %v3727_v0  ;;  %v3732_v39 = vpop.permute.xlu0 %396  ;;  %v3755_v0 = vsel %vm516_vm1, %v570_v32, %v572_v58  ;;  %6161 = vst [vmem:[#allocation88_spill] sm:$0xff] %v3762_v35 }
  0xad   : > { %6154 = vst [vmem:[#allocation81_spill] sm:$0xff] %v3732_v39  ;;  %660 = vrot.lane.b32.xlu1 %v3723_v57, %s3057_s29  ;;  %6159 = vst [vmem:[#allocation86_spill] sm:$0xff] %v3755_v0  ;;  %v574_v39 = vrot.slane %v3377_v51, 2  ;;  %v576_v57 = vrot.slane %v3380_v52, 2 }
  0xae   : > { %658 = vrot.lane.b32.xlu0 %v3730_v27, %s3057_s29 }
  0xaf   : > { %v3743_v3 = vpop.permute.xlu1 %402  ;;  %v3778_v22 = vsel %vm516_vm1, %v572_v58, %v574_v39 }
  0xb0   : > { %6156 = vst [vmem:[#allocation83_spill] sm:$0xff] %v3743_v3  ;;  %v3748_v5 = vpop.permute.xlu0 %400  ;;  %v3771_v3 = vsel %vm516_vm1, %v574_v39, %v576_v57  ;;  %6165 = vst [vmem:[#allocation92_spill] sm:$0xff] %v3778_v22 }
  0xb1   : > { %6158 = vst [vmem:[#allocation85_spill] sm:$0xff] %v3748_v5  ;;  %664 = vrot.lane.b32.xlu1 %v3739_v26, %s3057_s29  ;;  %6163 = vst [vmem:[#allocation90_spill] sm:$0xff] %v3771_v3  ;;  %v578_v5 = vrot.slane %v3395_v12, 2  ;;  %v580_v26 = vrot.slane %v3398_v13, 2 }
  0xb2   : > { %662 = vrot.lane.b32.xlu0 %v3746_v2, %s3057_s29 }
  0xb3   : > { %v3759_v27 = vpop.permute.xlu1 %406  ;;  %v3794_v58 = vsel %vm516_vm1, %v576_v57, %v578_v5 }
  0xb4   : > { %6160 = vst [vmem:[#allocation87_spill] sm:$0xff] %v3759_v27  ;;  %v3764_v63 = vpop.permute.xlu0 %404  ;;  %v3787_v27 = vsel %vm516_vm1, %v578_v5, %v580_v26  ;;  %6169 = vst [vmem:[#allocation96_spill] sm:$0xff] %v3794_v58 }
  0xb5   : > { %6162 = vst [vmem:[#allocation89_spill] sm:$0xff] %v3764_v63  ;;  %668 = vrot.lane.b32.xlu1 %v3755_v0, %s3057_s29  ;;  %6167 = vst [vmem:[#allocation94_spill] sm:$0xff] %v3787_v27  ;;  %v582_v63 = vrot.slane %v3413_v21, 2  ;;  %v584_v0 = vrot.slane %v3416_v46, 2 }
  0xb6   : > { %666 = vrot.lane.b32.xlu0 %v3762_v35, %s3057_s29 }
  0xb7   : > { %v3775_v2 = vpop.permute.xlu1 %410  ;;  %v3810_v57 = vsel %vm516_vm1, %v580_v26, %v582_v63 }
  0xb8   : > { %6164 = vst [vmem:[#allocation91_spill] sm:$0xff] %v3775_v2  ;;  %v3780_v32 = vpop.permute.xlu0 %408  ;;  %v3803_v2 = vsel %vm516_vm1, %v582_v63, %v584_v0  ;;  %6173 = vst [vmem:[#allocation100_spill] sm:$0xff] %v3810_v57 }
  0xb9   : > { %6166 = vst [vmem:[#allocation93_spill] sm:$0xff] %v3780_v32  ;;  %672 = vrot.lane.b32.xlu1 %v3771_v3, %s3057_s29  ;;  %6171 = vst [vmem:[#allocation98_spill] sm:$0xff] %v3803_v2  ;;  %v586_v32 = vrot.slane %v3431_v9, 2  ;;  %v588_v3 = vrot.slane %v3434_v28, 2 }
  0xba   : > { %670 = vrot.lane.b32.xlu0 %v3778_v22, %s3057_s29 }
  0xbb   : > { %v3791_v35 = vpop.permute.xlu1 %414  ;;  %v3826_v26 = vsel %vm516_vm1, %v584_v0, %v586_v32 }
  0xbc   : > { %6168 = vst [vmem:[#allocation95_spill] sm:$0xff] %v3791_v35  ;;  %v3796_v39 = vpop.permute.xlu0 %412  ;;  %v3819_v35 = vsel %vm516_vm1, %v586_v32, %v588_v3  ;;  %6177 = vst [vmem:[#allocation104_spill] sm:$0xff] %v3826_v26 }
  0xbd   : > { %6170 = vst [vmem:[#allocation97_spill] sm:$0xff] %v3796_v39  ;;  %676 = vrot.lane.b32.xlu1 %v3787_v27, %s3057_s29  ;;  %6175 = vst [vmem:[#allocation102_spill] sm:$0xff] %v3819_v35  ;;  %v590_v39 = vrot.slane %v3449_v62, 2  ;;  %v592_v27 = vrot.slane %v3452_v15, 2 }
  0xbe   : > { %674 = vrot.lane.b32.xlu0 %v3794_v58, %s3057_s29 }
  0xbf   : > { %v3807_v22 = vpop.permute.xlu1 %418  ;;  %v3842_v0 = vsel %vm516_vm1, %v588_v3, %v590_v39 }
  0xc0   : > { %6172 = vst [vmem:[#allocation99_spill] sm:$0xff] %v3807_v22  ;;  %v3812_v5 = vpop.permute.xlu0 %416  ;;  %v3835_v22 = vsel %vm516_vm1, %v590_v39, %v592_v27  ;;  %6181 = vst [vmem:[#allocation108_spill] sm:$0xff] %v3842_v0 }
  0xc1   : > { %6174 = vst [vmem:[#allocation101_spill] sm:$0xff] %v3812_v5  ;;  %680 = vrot.lane.b32.xlu1 %v3803_v2, %s3057_s29  ;;  %6179 = vst [vmem:[#allocation106_spill] sm:$0xff] %v3835_v22  ;;  %v594_v5 = vrot.slane %v3467_v56, 2  ;;  %v596_v2 = vrot.slane %v3470_v4, 2 }
  0xc2   : > { %678 = vrot.lane.b32.xlu0 %v3810_v57, %s3057_s29 }
  0xc3   : > { %v3823_v58 = vpop.permute.xlu1 %422  ;;  %v3858_v3 = vsel %vm516_vm1, %v592_v27, %v594_v5 }
  0xc4   : > { %6176 = vst [vmem:[#allocation103_spill] sm:$0xff] %v3823_v58  ;;  %v3828_v63 = vpop.permute.xlu0 %420  ;;  %v3851_v58 = vsel %vm516_vm1, %v594_v5, %v596_v2  ;;  %6185 = vst [vmem:[#allocation112_spill] sm:$0xff] %v3858_v3 }
  0xc5   : > { %6178 = vst [vmem:[#allocation105_spill] sm:$0xff] %v3828_v63  ;;  %684 = vrot.lane.b32.xlu1 %v3819_v35, %s3057_s29  ;;  %6183 = vst [vmem:[#allocation110_spill] sm:$0xff] %v3851_v58  ;;  %v598_v63 = vrot.slane %v3485_v50, 2  ;;  %v600_v35 = vrot.slane %v3488_v59, 2 }
  0xc6   : > { %682 = vrot.lane.b32.xlu0 %v3826_v26, %s3057_s29 }
  0xc7   : > { %v3839_v57 = vpop.permute.xlu1 %426  ;;  %v3874_v27 = vsel %vm516_vm1, %v596_v2, %v598_v63 }
  0xc8   : > { %6180 = vst [vmem:[#allocation107_spill] sm:$0xff] %v3839_v57  ;;  %v3844_v32 = vpop.permute.xlu0 %424  ;;  %v3867_v57 = vsel %vm516_vm1, %v598_v63, %v600_v35  ;;  %6189 = vst [vmem:[#allocation116_spill] sm:$0xff] %v3874_v27 }
  0xc9   : > { %6182 = vst [vmem:[#allocation109_spill] sm:$0xff] %v3844_v32  ;;  %688 = vrot.lane.b32.xlu1 %v3835_v22, %s3057_s29  ;;  %6187 = vst [vmem:[#allocation114_spill] sm:$0xff] %v3867_v57  ;;  %v602_v32 = vrot.slane %v3503_v44, 2  ;;  %v604_v22 = vrot.slane %v3506_v53, 2 }
  0xca   : > { %686 = vrot.lane.b32.xlu0 %v3842_v0, %s3057_s29 }
  0xcb   : > { %v3855_v26 = vpop.permute.xlu1 %430  ;;  %v3890_v2 = vsel %vm516_vm1, %v600_v35, %v602_v32 }
  0xcc   : > { %6184 = vst [vmem:[#allocation111_spill] sm:$0xff] %v3855_v26  ;;  %v3860_v39 = vpop.permute.xlu0 %428  ;;  %v3883_v26 = vsel %vm516_vm1, %v602_v32, %v604_v22  ;;  %6193 = vst [vmem:[#allocation120_spill] sm:$0xff] %v3890_v2 }
  0xcd   : > { %6186 = vst [vmem:[#allocation113_spill] sm:$0xff] %v3860_v39  ;;  %692 = vrot.lane.b32.xlu1 %v3851_v58, %s3057_s29  ;;  %6191 = vst [vmem:[#allocation118_spill] sm:$0xff] %v3883_v26  ;;  %v606_v39 = vrot.slane %v3521_v38, 2  ;;  %v608_v58 = vrot.slane %v3524_v47, 2 }
  0xce   : > { %690 = vrot.lane.b32.xlu0 %v3858_v3, %s3057_s29 }
  0xcf   : > { %v3871_v0 = vpop.permute.xlu1 %434  ;;  %v3906_v35 = vsel %vm516_vm1, %v604_v22, %v606_v39 }
  0xd0   : > { %6188 = vst [vmem:[#allocation115_spill] sm:$0xff] %v3871_v0  ;;  %v3876_v5 = vpop.permute.xlu0 %432  ;;  %v3899_v0 = vsel %vm516_vm1, %v606_v39, %v608_v58  ;;  %6197 = vst [vmem:[#allocation124_spill] sm:$0xff] %v3906_v35 }
  0xd1   : > { %6190 = vst [vmem:[#allocation117_spill] sm:$0xff] %v3876_v5  ;;  %696 = vrot.lane.b32.xlu1 %v3867_v57, %s3057_s29  ;;  %6195 = vst [vmem:[#allocation122_spill] sm:$0xff] %v3899_v0  ;;  %v610_v5 = vrot.slane %v3539_v40, 2  ;;  %v6039_v57 = vrot.slane %v3542_v41, 2 }
  0xd2   : > { %694 = vrot.lane.b32.xlu0 %v3874_v27, %s3057_s29 }
  0xd3   : > { %v3887_v3 = vpop.permute.xlu1 %438 }
  0xd4   : > { %6192 = vst [vmem:[#allocation119_spill] sm:$0xff] %v3887_v3  ;;  %v3892_v63 = vpop.permute.xlu0 %436  ;;  %v3917_v3 = vsel %vm516_vm1, %v610_v5, %v6039_v57 }
  0xd5   : > { %6194 = vst [vmem:[#allocation121_spill] sm:$0xff] %v3892_v63  ;;  %700 = vrot.lane.b32.xlu1 %v3883_v26, %s3057_s29  ;;  %6199 = vst [vmem:[#allocation126_spill] sm:$0xff] %v3917_v3  ;;  %v6321_v26 = vld [vmem:[#allocation46_spill] sm:$0xff] }
  0xd6   : > { %698 = vrot.lane.b32.xlu0 %v3890_v2, %s3057_s29 }
  0xd7   : > { %v3903_v27 = vpop.permute.xlu1 %442 }
  0xd8   : > { %6196 = vst [vmem:[#allocation123_spill] sm:$0xff] %v3903_v27  ;;  %v3908_v32 = vpop.permute.xlu0 %440  ;;  %v3922_v27 = vsel %vm516_vm1, %v608_v58, %v610_v5 }
  0xd9   : > { %6198 = vst [vmem:[#allocation125_spill] sm:$0xff] %v3908_v32  ;;  %704 = vrot.lane.b32.xlu1 %v3899_v0, %s3057_s29  ;;  %6201 = vst [vmem:[#allocation128_spill] sm:$0xff] %v3922_v27 }
  0xda   : > { %702 = vrot.lane.b32.xlu0 %v3906_v35, %s3057_s29 }
  0xdb   : > { %v3919_v63 = vpop.permute.xlu1 %446 }
  0xdc   : > { %6200 = vst [vmem:[#allocation127_spill] sm:$0xff] %v3919_v63  ;;  %v3924_v22 = vpop.permute.xlu0 %444  ;;  %v6276_v63 = vld [vmem:[#allocation21_spill] sm:$0xff] }
  0xdd   : > { %6202 = vst [vmem:[#allocation129_spill] sm:$0xff] %v3924_v22  ;;  %708 = vrot.lane.b32.xlu1 %v3917_v3, %s3057_s29  ;;  %v6280_v22 = vld [vmem:[#allocation23_spill] sm:$0xff]  ;;  %v6285_v3 = vld [vmem:[#allocation22_spill] sm:$0xff] }
  0xde   : > { %706 = vrot.lane.b32.xlu0 %v3922_v27, %s3057_s29  ;;  %v6305_v27 = vld [vmem:[#allocation32_spill] sm:$0xff] }
  0xdf   : > { %v3930_v39 = vpop.permute.xlu1 %450 }
  0xe0   : > { %6203 = vst [vmem:[#allocation130_spill] sm:$0xff] %v3930_v39  ;;  %v3932_v32 = vpop.permute.xlu0 %448 }
  0xe1   : > { %6204 = vst [vmem:[#allocation131_spill] sm:$0xff] %v3932_v32  ;;  %762 = vrot.lane.b32.xlu1 %v3159_v7, %s3058_s30 }
  0xe2   : > { %760 = vrot.lane.b32.xlu0 %v3147_v1, %s3058_s30 }
  0xe3   : > { %v3938_v58 = vpop.permute.xlu1 %454 }
  0xe4   : > { %6205 = vst [vmem:[#allocation132_spill] sm:$0xff] %v3938_v58  ;;  %v3940_v5 = vpop.permute.xlu0 %452  ;;  %v6265_v58 = vld [vmem:[#allocation12_spill] sm:$0xff] }
  0xe5   : > { %6206 = vst [vmem:[#allocation133_spill] sm:$0xff] %v3940_v5  ;;  %766 = vrot.lane.b32.xlu1 %v3167_v11, %s3058_s30  ;;  %v6269_v5 = vld [vmem:[#allocation14_spill] sm:$0xff] }
  0xe6   : > { %764 = vrot.lane.b32.xlu0 %v3164_v10, %s3058_s30 }
  0xe7   : > { %v3946_v57 = vpop.permute.xlu1 %458 }
  0xe8   : > { %6207 = vst [vmem:[#allocation134_spill] sm:$0xff] %v3946_v57  ;;  %v3948_v39 = vpop.permute.xlu0 %456  ;;  %v6256_v57 = vld [vmem:[#allocation6_spill] sm:$0xff] }
  0xe9   : > { %6208 = vst [vmem:[#allocation135_spill] sm:$0xff] %v3948_v39  ;;  %770 = vrot.lane.b32.xlu1 %v3183_v19, %s3058_s30  ;;  %v6262_v39 = vld [vmem:[#allocation10_spill] sm:$0xff] }
  0xea   : > { %768 = vrot.lane.b32.xlu0 %v3180_v18, %s3058_s30 }
  0xeb   : > { %v3954_v1 = vpop.permute.xlu1 %462 }
  0xec   : > { %6209 = vst [vmem:[#allocation136_spill] sm:$0xff] %v3954_v1  ;;  %v3956_v7 = vpop.permute.xlu0 %460 }
  0xed   : > { %6210 = vst [vmem:[#allocation137_spill] sm:$0xff] %v3956_v7  ;;  %774 = vrot.lane.b32.xlu1 %v3200_v25, %s3058_s30  ;;  %v6255_v7 = vld [vmem:[#allocation9_spill] sm:$0xff] }
  0xee   : > { %772 = vrot.lane.b32.xlu0 %v3197_v24, %s3058_s30 }
  0xef   : > { %v3962_v10 = vpop.permute.xlu1 %466 }
  0xf0   : > { %6211 = vst [vmem:[#allocation138_spill] sm:$0xff] %v3962_v10  ;;  %v3964_v11 = vpop.permute.xlu0 %464 }
  0xf1   : > { %6212 = vst [vmem:[#allocation139_spill] sm:$0xff] %v3964_v11  ;;  %778 = vrot.lane.b32.xlu1 %v3218_v31, %s3058_s30 }
  0xf2   : > { %776 = vrot.lane.b32.xlu0 %v3215_v30, %s3058_s30 }
  0xf3   : > { %v3970_v18 = vpop.permute.xlu1 %616 }
  0xf4   : > { %v3972_v19 = vpop.permute.xlu0 %614 }
  0xf5   : > { %782 = vrot.lane.b32.xlu1 %v3236_v37, %s3058_s30 }
  0xf6   : > { %780 = vrot.lane.b32.xlu0 %v3233_v36, %s3058_s30 }
  0xf7   : > { %v3978_v24 = vpop.permute.xlu1 %620 }
  0xf8   : > { %6213 = vst [vmem:[#allocation140_spill] sm:$0xff] %v3978_v24  ;;  %v3980_v25 = vpop.permute.xlu0 %618  ;;  %v2046_v24 = vld [vmem:[%s5881_s1 + $0x10] sm:$0xff] }
  0xf9   : > { %786 = vrot.lane.b32.xlu1 %v3254_v43, %s3058_s30 }
  0xfa   : > { %784 = vrot.lane.b32.xlu0 %v3251_v42, %s3058_s30 }
  0xfb   : > { %v3986_v30 = vpop.permute.xlu1 %624 }
  0xfc   : > { %6214 = vst [vmem:[#allocation141_spill] sm:$0xff] %v3986_v30  ;;  %v3988_v31 = vpop.permute.xlu0 %622 }
  0xfd   : > { %6215 = vst [vmem:[#allocation142_spill] sm:$0xff] %v3988_v31  ;;  %790 = vrot.lane.b32.xlu1 %v3272_v49, %s3058_s30  ;;  %v6360_v31 = vld [vmem:[#allocation72_spill] sm:$0xff] }
  0xfe   : > { %788 = vrot.lane.b32.xlu0 %v3269_v48, %s3058_s30 }
  0xff   : > { %v3994_v36 = vpop.permute.xlu1 %628 }
 0x100   : > { %6216 = vst [vmem:[#allocation143_spill] sm:$0xff] %v3994_v36  ;;  %v3996_v37 = vpop.permute.xlu0 %626 }
 0x101   : > { %6217 = vst [vmem:[#allocation144_spill] sm:$0xff] %v3996_v37  ;;  %794 = vrot.lane.b32.xlu1 %v3290_v55, %s3058_s30  ;;  %v6317_v37 = vld [vmem:[#allocation40_spill] sm:$0xff] }
 0x102   : > { %792 = vrot.lane.b32.xlu0 %v3287_v54, %s3058_s30 }
 0x103   : > { %v4002_v42 = vpop.permute.xlu1 %632 }
 0x104   : > { %6218 = vst [vmem:[#allocation145_spill] sm:$0xff] %v4002_v42  ;;  %v4004_v43 = vpop.permute.xlu0 %630  ;;  %v6301_v42 = vld [vmem:[#allocation30_spill] sm:$0xff] }
 0x105   : > { %6219 = vst [vmem:[#allocation146_spill] sm:$0xff] %v4004_v43  ;;  %798 = vrot.lane.b32.xlu1 %v3308_v61, %s3058_s30  ;;  %v6307_v43 = vld [vmem:[#allocation34_spill] sm:$0xff] }
 0x106   : > { %796 = vrot.lane.b32.xlu0 %v3305_v60, %s3058_s30 }
 0x107   : > { %v4010_v48 = vpop.permute.xlu1 %636 }
 0x108   : > { %6220 = vst [vmem:[#allocation147_spill] sm:$0xff] %v4010_v48  ;;  %v4012_v49 = vpop.permute.xlu0 %634 }
 0x109   : > { %6221 = vst [vmem:[#allocation148_spill] sm:$0xff] %v4012_v49  ;;  %802 = vrot.lane.b32.xlu1 %v3326_v8, %s3058_s30 }
 0x10a   : > { %800 = vrot.lane.b32.xlu0 %v3323_v6, %s3058_s30 }
 0x10b   : > { %v4018_v54 = vpop.permute.xlu1 %640 }
 0x10c   : > { %6222 = vst [vmem:[#allocation149_spill] sm:$0xff] %v4018_v54  ;;  %v4020_v55 = vpop.permute.xlu0 %638  ;;  %v6277_v54 = vld [vmem:[#allocation18_spill] sm:$0xff] }
 0x10d   : > { %6223 = vst [vmem:[#allocation150_spill] sm:$0xff] %v4020_v55  ;;  %806 = vrot.lane.b32.xlu1 %v3344_v17, %s3058_s30 }
 0x10e   : > { %804 = vrot.lane.b32.xlu0 %v3341_v16, %s3058_s30 }
 0x10f   : > { %v4026_v60 = vpop.permute.xlu1 %644 }
 0x110   : > { %6224 = vst [vmem:[#allocation151_spill] sm:$0xff] %v4026_v60  ;;  %v4028_v61 = vpop.permute.xlu0 %642 }
 0x111   : > { %6225 = vst [vmem:[#allocation152_spill] sm:$0xff] %v4028_v61  ;;  %810 = vrot.lane.b32.xlu1 %v3362_v34, %s3058_s30  ;;  %v6272_v61 = vld [vmem:[#allocation19_spill] sm:$0xff] }
 0x112   : > { %808 = vrot.lane.b32.xlu0 %v3359_v33, %s3058_s30 }
 0x113   : > { %v4034_v6 = vpop.permute.xlu1 %648 }
 0x114   : > { %6226 = vst [vmem:[#allocation153_spill] sm:$0xff] %v4034_v6  ;;  %v4036_v8 = vpop.permute.xlu0 %646 }
 0x115   : > { %6227 = vst [vmem:[#allocation154_spill] sm:$0xff] %v4036_v8  ;;  %814 = vrot.lane.b32.xlu1 %v3380_v52, %s3058_s30 }
 0x116   : > { %812 = vrot.lane.b32.xlu0 %v3377_v51, %s3058_s30 }
 0x117   : > { %v4042_v16 = vpop.permute.xlu1 %652 }
 0x118   : > { %6228 = vst [vmem:[#allocation155_spill] sm:$0xff] %v4042_v16  ;;  %v4044_v17 = vpop.permute.xlu0 %650  ;;  %v6259_v16 = vld [vmem:[#allocation11_spill] sm:$0xff] }
 0x119   : > { %6229 = vst [vmem:[#allocation156_spill] sm:$0xff] %v4044_v17  ;;  %818 = vrot.lane.b32.xlu1 %v3398_v13, %s3058_s30  ;;  %v6260_v17 = vld [vmem:[#allocation8_spill] sm:$0xff] }
 0x11a   : > { %816 = vrot.lane.b32.xlu0 %v3395_v12, %s3058_s30 }
 0x11b   : > { %v4050_v33 = vpop.permute.xlu1 %656 }
 0x11c   : > { %6230 = vst [vmem:[#allocation157_spill] sm:$0xff] %v4050_v33  ;;  %v4052_v34 = vpop.permute.xlu0 %654  ;;  %v6251_v33 = vld [vmem:[#allocation7_spill] sm:$0xff] }
 0x11d   : > { %6231 = vst [vmem:[#allocation158_spill] sm:$0xff] %v4052_v34  ;;  %822 = vrot.lane.b32.xlu1 %v3416_v46, %s3058_s30 }
 0x11e   : > { %820 = vrot.lane.b32.xlu0 %v3413_v21, %s3058_s30 }
 0x11f   : > { %v4058_v51 = vpop.permute.xlu1 %660 }
 0x120   : > { %6232 = vst [vmem:[#allocation159_spill] sm:$0xff] %v4058_v51  ;;  %v4060_v52 = vpop.permute.xlu0 %658  ;;  %v4120_v51 = vld [vmem:[%s3141_s27 + $0x188] sm:$0xff] }
 0x121   : > { %6233 = vst [vmem:[#allocation160_spill] sm:$0xff] %v4060_v52  ;;  %826 = vrot.lane.b32.xlu1 %v3434_v28, %s3058_s30 }
 0x122   : > { %824 = vrot.lane.b32.xlu0 %v3431_v9, %s3058_s30 }
 0x123   : > { %v4066_v12 = vpop.permute.xlu1 %664 }
 0x124   : > { %v4068_v13 = vpop.permute.xlu0 %662 }
 0x125   : > { %830 = vrot.lane.b32.xlu1 %v3452_v15, %s3058_s30 }
 0x126   : > { %828 = vrot.lane.b32.xlu0 %v3449_v62, %s3058_s30 }
 0x127   : > { %v4074_v21 = vpop.permute.xlu1 %668 }
 0x128   : > { %6234 = vst [vmem:[#allocation161_spill] sm:$0xff] %v4074_v21  ;;  %v4076_v46 = vpop.permute.xlu0 %666 }
 0x129   : > { %834 = vrot.lane.b32.xlu1 %v3470_v4, %s3058_s30 }
 0x12a   : > { %832 = vrot.lane.b32.xlu0 %v3467_v56, %s3058_s30 }
 0x12b   : > { %v4082_v9 = vpop.permute.xlu1 %672 }
 0x12c   : > { %6235 = vst [vmem:[#allocation162_spill] sm:$0xff] %v4082_v9  ;;  %v4084_v28 = vpop.permute.xlu0 %670  ;;  %v6357_v9 = vld [vmem:[#allocation62_spill] sm:$0xff] }
 0x12d   : > { %6236 = vst [vmem:[#allocation163_spill] sm:$0xff] %v4084_v28  ;;  %838 = vrot.lane.b32.xlu1 %v3488_v59, %s3058_s30  ;;  %v6361_v28 = vld [vmem:[#allocation66_spill] sm:$0xff] }
 0x12e   : > { %836 = vrot.lane.b32.xlu0 %v3485_v50, %s3058_s30 }
 0x12f   : > { %v4090_v62 = vpop.permute.xlu1 %676 }
 0x130   : > { %6237 = vst [vmem:[#allocation164_spill] sm:$0xff] %v4090_v62  ;;  %v4092_v15 = vpop.permute.xlu0 %674  ;;  %v6313_v62 = vld [vmem:[#allocation41_spill] sm:$0xff] }
 0x131   : > { %6238 = vst [vmem:[#allocation165_spill] sm:$0xff] %v4092_v15  ;;  %842 = vrot.lane.b32.xlu1 %v3506_v53, %s3058_s30  ;;  %v4300_v15 = vld [vmem:[%s3141_s27 + $0x198] sm:$0xff] }
 0x132   : > { %840 = vrot.lane.b32.xlu0 %v3503_v44, %s3058_s30  ;;  %v4115_v44 = vld [vmem:[%s3141_s27 + $0x190] sm:$0xff] }
 0x133   : > { %v4098_v56 = vpop.permute.xlu1 %680 }
 0x134   : > { %6239 = vst [vmem:[#allocation166_spill] sm:$0xff] %v4098_v56  ;;  %v4100_v4 = vpop.permute.xlu0 %678 }
 0x135   : > { %6240 = vst [vmem:[#allocation167_spill] sm:$0xff] %v4100_v4  ;;  %846 = vrot.lane.b32.xlu1 %v3524_v47, %s3058_s30  ;;  %v6310_v4 = vld [vmem:[#allocation36_spill] sm:$0xff] }
 0x136   : > { %844 = vrot.lane.b32.xlu0 %v3521_v38, %s3058_s30 }
 0x137   : > { %v4106_v50 = vpop.permute.xlu1 %684 }
 0x138   : > { %6241 = vst [vmem:[#allocation168_spill] sm:$0xff] %v4106_v50  ;;  %v4108_v59 = vpop.permute.xlu0 %682  ;;  %v6281_v50 = vld [vmem:[#allocation20_spill] sm:$0xff] }
 0x139   : > { %6242 = vst [vmem:[#allocation169_spill] sm:$0xff] %v4108_v59  ;;  %850 = vrot.lane.b32.xlu1 %v3542_v41, %s3058_s30  ;;  %v6284_v59 = vld [vmem:[#allocation25_spill] sm:$0xff] }
 0x13a   : > { %848 = vrot.lane.b32.xlu0 %v3539_v40, %s3058_s30 }
 0x13b   : > { %v4117_v53 = vpop.permute.xlu1 %688 }
 0x13c   : > { %6243 = vst [vmem:[#allocation170_spill] sm:$0xff] %v4117_v53  ;;  %v4122_v47 = vpop.permute.xlu0 %686 }
 0x13d   : > { %6244 = vst [vmem:[#allocation171_spill] sm:$0xff] %v4122_v47  ;;  %854 = vrot.lane.b32.xlu1 %v4115_v44, %s3058_s30 }
 0x13e   : > { %852 = vrot.lane.b32.xlu0 %v4120_v51, %s3058_s30 }
 0x13f   : > { %v4128_v38 = vpop.permute.xlu1 %692 }
 0x140   : > { %6245 = vst [vmem:[#allocation172_spill] sm:$0xff] %v4128_v38  ;;  %v4130_v10 = vpop.permute.xlu0 %690 }
 0x141   : > { %6246 = vst [vmem:[#allocation173_spill] sm:$0xff] %v4130_v10  ;;  %913 = vrot.lane.b32.xlu1 %v3194_v23, %s3059_s3  ;;  %v6252_v23 = vld [vmem:[#allocation5_spill] sm:$0xff]  ;;  %v6273_v10 = vld [vmem:[#allocation16_spill] sm:$0xff] }
 0x142   : > { %911 = vrot.lane.b32.xlu0 %v3174_v14, %s3059_s3 }
 0x143   : > { %v4136_v40 = vpop.permute.xlu1 %696 }
 0x144   : > { %6247 = vst [vmem:[#allocation174_spill] sm:$0xff] %v4136_v40  ;;  %v4138_v52 = vpop.permute.xlu0 %694 }
 0x145   : > { %6248 = vst [vmem:[#allocation175_spill] sm:$0xff] %v4138_v52  ;;  %917 = vrot.lane.b32.xlu1 %v3212_v29, %s3059_s3  ;;  %v6268_v52 = vld [vmem:[#allocation17_spill] sm:$0xff] }
 0x146   : > { %915 = vrot.lane.b32.xlu0 %v3189_v20, %s3059_s3 }
 0x147   : > { %v4144_v11 = vpop.permute.xlu1 %700 }
 0x148   : > { %6249 = vst [vmem:[#allocation176_spill] sm:$0xff] %v4144_v11  ;;  %v4146_v1 = vpop.permute.xlu0 %698 }
 0x149   : > { %6250 = vst [vmem:[#allocation177_spill] sm:$0xff] %v4146_v1  ;;  %921 = vrot.lane.b32.xlu1 %v6251_v33, %s3059_s3 }
 0x14a   : > { %919 = vrot.lane.b32.xlu0 %v6252_v23, %s3059_s3 }
 0x14b   : > { %v4152_v14 = vpop.permute.xlu1 %704 }
 0x14c   : > { %6253 = vst [vmem:[#allocation7_spill] sm:$0xff] %v4152_v14  ;;  %v4154_v34 = vpop.permute.xlu0 %702 }
 0x14d   : > { %6254 = vst [vmem:[#allocation5_spill] sm:$0xff] %v4154_v34  ;;  %925 = vrot.lane.b32.xlu1 %v6255_v7, %s3059_s3  ;;  %v6261_v34 = vld [vmem:[#allocation13_spill] sm:$0xff] }
 0x14e   : > { %923 = vrot.lane.b32.xlu0 %v6256_v57, %s3059_s3 }
 0x14f   : > { %v4160_v20 = vpop.permute.xlu1 %708 }
 0x150   : > { %6257 = vst [vmem:[#allocation9_spill] sm:$0xff] %v4160_v20  ;;  %v4162_v11 = vpop.permute.xlu0 %706 }
 0x151   : > { %6258 = vst [vmem:[#allocation6_spill] sm:$0xff] %v4162_v11  ;;  %929 = vrot.lane.b32.xlu1 %v6259_v16, %s3059_s3  ;;  %v6264_v11 = vld [vmem:[#allocation15_spill] sm:$0xff] }
 0x152   : > { %927 = vrot.lane.b32.xlu0 %v6260_v17, %s3059_s3 }
 0x153   : > { %v4168_v1 = vpop.permute.xlu1 %762 }
 0x154   : > { %v4170_v14 = vpop.permute.xlu0 %760 }
 0x155   : > { %933 = vrot.lane.b32.xlu1 %v6261_v34, %s3059_s3 }
 0x156   : > { %931 = vrot.lane.b32.xlu0 %v6262_v39, %s3059_s3 }
 0x157   : > { %v4176_v40 = vpop.permute.xlu1 %766 }
 0x158   : > { %6263 = vst [vmem:[#allocation11_spill] sm:$0xff] %v4176_v40  ;;  %v4178_v20 = vpop.permute.xlu0 %764 }
 0x159   : > { %937 = vrot.lane.b32.xlu1 %v6264_v11, %s3059_s3 }
 0x15a   : > { %935 = vrot.lane.b32.xlu0 %v6265_v58, %s3059_s3 }
 0x15b   : > { %v4184_v6 = vpop.permute.xlu1 %770 }
 0x15c   : > { %6266 = vst [vmem:[#allocation8_spill] sm:$0xff] %v4184_v6  ;;  %v4186_v8 = vpop.permute.xlu0 %768  ;;  %v6052_v6 = vrot.slane %v4300_v15, 1 }
 0x15d   : > { %6267 = vst [vmem:[#allocation13_spill] sm:$0xff] %v4186_v8  ;;  %941 = vrot.lane.b32.xlu1 %v6268_v52, %s3059_s3  ;;  %v6365_v52 = vld [vmem:[#allocation70_spill] sm:$0xff] }
 0x15e   : > { %939 = vrot.lane.b32.xlu0 %v6269_v5, %s3059_s3 }
 0x15f   : > { %v4192_v38 = vpop.permute.xlu1 %774 }
 0x160   : > { %6270 = vst [vmem:[#allocation10_spill] sm:$0xff] %v4192_v38  ;;  %v4194_v60 = vpop.permute.xlu0 %772  ;;  %v6314_v38 = vld [vmem:[#allocation38_spill] sm:$0xff] }
 0x161   : > { %6271 = vst [vmem:[#allocation15_spill] sm:$0xff] %v4194_v60  ;;  %945 = vrot.lane.b32.xlu1 %v6272_v61, %s3059_s3  ;;  %v905_v60 = vrot.slane %v4120_v51, 1  ;;  %6319 = vst [vmem:[#allocation38_spill] sm:$0xff] %v4300_v15  ;;  %v6339_v15 = vld [vmem:[#allocation48_spill] sm:$0xff] }
 0x162   : > { %943 = vrot.lane.b32.xlu0 %v6273_v10, %s3059_s3 }
 0x163   : > { %v4200_v32 = vpop.permute.xlu1 %778 }
 0x164   : > { %6274 = vst [vmem:[#allocation12_spill] sm:$0xff] %v4200_v32  ;;  %v4202_v53 = vpop.permute.xlu0 %776 }
 0x165   : > { %6275 = vst [vmem:[#allocation14_spill] sm:$0xff] %v4202_v53  ;;  %949 = vrot.lane.b32.xlu1 %v6276_v63, %s3059_s3 }
 0x166   : > { %947 = vrot.lane.b32.xlu0 %v6277_v54, %s3059_s3 }
 0x167   : > { %v4208_v55 = vpop.permute.xlu1 %782 }
 0x168   : > { %6278 = vst [vmem:[#allocation178_spill] sm:$0xff] %v4208_v55  ;;  %v4210_v47 = vpop.permute.xlu0 %780 }
 0x169   : > { %6279 = vst [vmem:[#allocation179_spill] sm:$0xff] %v4210_v47  ;;  %953 = vrot.lane.b32.xlu1 %v6280_v22, %s3059_s3  ;;  %v6288_v47 = vld [vmem:[#allocation27_spill] sm:$0xff]  ;;  %v6289_v22 = vld [vmem:[#allocation24_spill] sm:$0xff] }
 0x16a   : > { %951 = vrot.lane.b32.xlu0 %v6281_v50, %s3059_s3  ;;  %v6309_v50 = vld [vmem:[#allocation39_spill] sm:$0xff] }
 0x16b   : > { %v4216_v48 = vpop.permute.xlu1 %786 }
 0x16c   : > { %6282 = vst [vmem:[#allocation180_spill] sm:$0xff] %v4216_v48  ;;  %v4218_v49 = vpop.permute.xlu0 %784 }
 0x16d   : > { %6283 = vst [vmem:[#allocation181_spill] sm:$0xff] %v4218_v49  ;;  %957 = vrot.lane.b32.xlu1 %v6284_v59, %s3059_s3  ;;  %v6292_v49 = vld [vmem:[#allocation29_spill] sm:$0xff]  ;;  %v6293_v59 = vld [vmem:[#allocation26_spill] sm:$0xff] }
 0x16e   : > { %955 = vrot.lane.b32.xlu0 %v6285_v3, %s3059_s3 }
 0x16f   : > { %v4224_v56 = vpop.permute.xlu1 %790 }
 0x170   : > { %6286 = vst [vmem:[#allocation182_spill] sm:$0xff] %v4224_v56  ;;  %v4226_v55 = vpop.permute.xlu0 %788 }
 0x171   : > { %6287 = vst [vmem:[#allocation183_spill] sm:$0xff] %v4226_v55  ;;  %961 = vrot.lane.b32.xlu1 %v6288_v47, %s3059_s3  ;;  %v6296_v55 = vld [vmem:[#allocation31_spill] sm:$0xff]  ;;  %v6297_v47 = vld [vmem:[#allocation28_spill] sm:$0xff] }
 0x172   : > { %959 = vrot.lane.b32.xlu0 %v6289_v22, %s3059_s3 }
 0x173   : > { %v4232_v32 = vpop.permute.xlu1 %794 }
 0x174   : > { %6290 = vst [vmem:[#allocation184_spill] sm:$0xff] %v4232_v32  ;;  %v4234_v48 = vpop.permute.xlu0 %792 }
 0x175   : > { %6291 = vst [vmem:[#allocation185_spill] sm:$0xff] %v4234_v48  ;;  %965 = vrot.lane.b32.xlu1 %v6292_v49, %s3059_s3  ;;  %v6300_v48 = vld [vmem:[#allocation33_spill] sm:$0xff] }
 0x176   : > { %963 = vrot.lane.b32.xlu0 %v6293_v59, %s3059_s3 }
 0x177   : > { %v4240_v3 = vpop.permute.xlu1 %798 }
 0x178   : > { %6294 = vst [vmem:[#allocation29_spill] sm:$0xff] %v4240_v3  ;;  %v4242_v56 = vpop.permute.xlu0 %796 }
 0x179   : > { %6295 = vst [vmem:[#allocation186_spill] sm:$0xff] %v4242_v56  ;;  %969 = vrot.lane.b32.xlu1 %v6296_v55, %s3059_s3  ;;  %v6304_v56 = vld [vmem:[#allocation35_spill] sm:$0xff] }
 0x17a   : > { %967 = vrot.lane.b32.xlu0 %v6297_v47, %s3059_s3 }
 0x17b   : > { %v4248_v22 = vpop.permute.xlu1 %802 }
 0x17c   : > { %6298 = vst [vmem:[#allocation31_spill] sm:$0xff] %v4248_v22  ;;  %v4250_v32 = vpop.permute.xlu0 %800 }
 0x17d   : > { %6299 = vst [vmem:[#allocation28_spill] sm:$0xff] %v4250_v32  ;;  %973 = vrot.lane.b32.xlu1 %v6300_v48, %s3059_s3  ;;  %v6306_v32 = vld [vmem:[#allocation37_spill] sm:$0xff] }
 0x17e   : > { %971 = vrot.lane.b32.xlu0 %v6301_v42, %s3059_s3 }
 0x17f   : > { %v4256_v59 = vpop.permute.xlu1 %806 }
 0x180   : > { %6302 = vst [vmem:[#allocation33_spill] sm:$0xff] %v4256_v59  ;;  %v4258_v3 = vpop.permute.xlu0 %804 }
 0x181   : > { %6303 = vst [vmem:[#allocation30_spill] sm:$0xff] %v4258_v3  ;;  %977 = vrot.lane.b32.xlu1 %v6304_v56, %s3059_s3 }
 0x182   : > { %975 = vrot.lane.b32.xlu0 %v6305_v27, %s3059_s3 }
 0x183   : > { %v4264_v53 = vpop.permute.xlu1 %810 }
 0x184   : > { %v4266_v22 = vpop.permute.xlu0 %808 }
 0x185   : > { %981 = vrot.lane.b32.xlu1 %v6306_v32, %s3059_s3 }
 0x186   : > { %979 = vrot.lane.b32.xlu0 %v6307_v43, %s3059_s3 }
 0x187   : > { %v4272_v59 = vpop.permute.xlu1 %814 }
 0x188   : > { %6308 = vst [vmem:[#allocation35_spill] sm:$0xff] %v4272_v59  ;;  %v4274_v3 = vpop.permute.xlu0 %812 }
 0x189   : > { %985 = vrot.lane.b32.xlu1 %v6309_v50, %s3059_s3 }
 0x18a   : > { %983 = vrot.lane.b32.xlu0 %v6310_v4, %s3059_s3 }
 0x18b   : > { %v4280_v63 = vpop.permute.xlu1 %818 }
 0x18c   : > { %6311 = vst [vmem:[#allocation32_spill] sm:$0xff] %v4280_v63  ;;  %v4282_v0 = vpop.permute.xlu0 %816 }
 0x18d   : > { %6312 = vst [vmem:[#allocation37_spill] sm:$0xff] %v4282_v0  ;;  %989 = vrot.lane.b32.xlu1 %v6313_v62, %s3059_s3 }
 0x18e   : > { %987 = vrot.lane.b32.xlu0 %v6314_v38, %s3059_s3 }
 0x18f   : > { %v4288_v36 = vpop.permute.xlu1 %822 }
 0x190   : > { %6315 = vst [vmem:[#allocation34_spill] sm:$0xff] %v4288_v36  ;;  %v4290_v35 = vpop.permute.xlu0 %820  ;;  %v907_v36 = vrot.slane %v4115_v44, 1 }
 0x191   : > { %6316 = vst [vmem:[#allocation39_spill] sm:$0xff] %v4290_v35  ;;  %993 = vrot.lane.b32.xlu1 %v3554_v45, %s3059_s3  ;;  %v6322_v35 = vld [vmem:[#allocation43_spill] sm:$0xff]  ;;  %v6323_v45 = vrot.slane %v3542_v41, 1 }
 0x192   : > { %991 = vrot.lane.b32.xlu0 %v6317_v37, %s3059_s3  ;;  %v4326_v44 = vsel %vm274_vm0, %v907_v36, %v6052_v6  ;;  %v6334_v6 = vld [vmem:[#allocation49_spill] sm:$0xff]  ;;  %v6364_v37 = vld [vmem:[#allocation76_spill] sm:$0xff] }
 0x193   : > { %v4297_v54 = vpop.permute.xlu1 %826  ;;  %v4312_v51 = vsel %vm274_vm0, %v6323_v45, %v905_v60  ;;  %6328 = vst [vmem:[#allocation191_spill] sm:$0xff] %v4326_v44  ;;  %v4331_v45 = vsel %vm274_vm0, %v905_v60, %v907_v36 }
 0x194   : > { %6318 = vst [vmem:[#allocation36_spill] sm:$0xff] %v4297_v54  ;;  %v4302_v61 = vpop.permute.xlu0 %824  ;;  %6324 = vst [vmem:[#allocation188_spill] sm:$0xff] %v4312_v51 }
 0x195   : > { %6320 = vst [vmem:[#allocation187_spill] sm:$0xff] %v4302_v61  ;;  %997 = vrot.lane.b32.xlu1 %v6321_v26, %s3059_s3  ;;  %v6327_v61 = vld [vmem:[#allocation45_spill] sm:$0xff]  ;;  %6330 = vst [vmem:[#allocation193_spill] sm:$0xff] %v4331_v45 }
 0x196   : > { %995 = vrot.lane.b32.xlu0 %v6322_v35, %s3059_s3  ;;  %v6353_v35 = vld [vmem:[#allocation58_spill] sm:$0xff] }
 0x197   : > { %v4315_v54 = vpop.permute.xlu1 %830 }
 0x198   : > { %6325 = vst [vmem:[#allocation189_spill] sm:$0xff] %v4315_v54  ;;  %v4317_v63 = vpop.permute.xlu0 %828 }
 0x199   : > { %6326 = vst [vmem:[#allocation190_spill] sm:$0xff] %v4317_v63  ;;  %1001 = vrot.lane.b32.xlu1 %v4312_v51, %s3059_s3  ;;  %v6351_v51 = vld [vmem:[#allocation54_spill] sm:$0xff] }
 0x19a   : > { %999 = vrot.lane.b32.xlu0 %v6327_v61, %s3059_s3 }
 0x19b   : > { %v4328_v41 = vpop.permute.xlu1 %834 }
 0x19c   : > { %6329 = vst [vmem:[#allocation192_spill] sm:$0xff] %v4328_v41  ;;  %v4333_v26 = vpop.permute.xlu0 %832  ;;  %v6335_v41 = vld [vmem:[#allocation47_spill] sm:$0xff] }
 0x19d   : > { %6331 = vst [vmem:[#allocation194_spill] sm:$0xff] %v4333_v26  ;;  %1005 = vrot.lane.b32.xlu1 %v4326_v44, %s3059_s3  ;;  %v6338_v26 = vld [vmem:[#allocation51_spill] sm:$0xff]  ;;  %v6342_v44 = vld [vmem:[#allocation53_spill] sm:$0xff] }
 0x19e   : > { %1003 = vrot.lane.b32.xlu0 %v4331_v45, %s3059_s3  ;;  %v6347_v45 = vld [vmem:[#allocation52_spill] sm:$0xff] }
 0x19f   : > { %v4339_v54 = vpop.permute.xlu1 %838 }
 0x1a0   : > { %6332 = vst [vmem:[#allocation195_spill] sm:$0xff] %v4339_v54  ;;  %v4341_v63 = vpop.permute.xlu0 %836 }
 0x1a1   : > { %6333 = vst [vmem:[#allocation196_spill] sm:$0xff] %v4341_v63  ;;  %1063 = vrot.lane.b32.xlu1 %v6334_v6, %s3060_s4  ;;  %v6343_v6 = vld [vmem:[#allocation50_spill] sm:$0xff] }
 0x1a2   : > { %1061 = vrot.lane.b32.xlu0 %v6335_v41, %s3060_s4 }
 0x1a3   : > { %v4347_v36 = vpop.permute.xlu1 %842 }
 0x1a4   : > { %6336 = vst [vmem:[#allocation49_spill] sm:$0xff] %v4347_v36  ;;  %v4349_v60 = vpop.permute.xlu0 %840 }
 0x1a5   : > { %6337 = vst [vmem:[#allocation47_spill] sm:$0xff] %v4349_v60  ;;  %1067 = vrot.lane.b32.xlu1 %v6338_v26, %s3060_s4  ;;  %v6346_v60 = vld [vmem:[#allocation56_spill] sm:$0xff] }
 0x1a6   : > { %1065 = vrot.lane.b32.xlu0 %v6339_v15, %s3060_s4 }
 0x1a7   : > { %v4355_v54 = vpop.permute.xlu1 %846 }
 0x1a8   : > { %6340 = vst [vmem:[#allocation51_spill] sm:$0xff] %v4355_v54  ;;  %v4357_v63 = vpop.permute.xlu0 %844 }
 0x1a9   : > { %6341 = vst [vmem:[#allocation48_spill] sm:$0xff] %v4357_v63  ;;  %1071 = vrot.lane.b32.xlu1 %v6342_v44, %s3060_s4  ;;  %v6350_v63 = vld [vmem:[#allocation60_spill] sm:$0xff] }
 0x1aa   : > { %1069 = vrot.lane.b32.xlu0 %v6343_v6, %s3060_s4 }
 0x1ab   : > { %v4363_v41 = vpop.permute.xlu1 %850 }
 0x1ac   : > { %6344 = vst [vmem:[#allocation53_spill] sm:$0xff] %v4363_v41  ;;  %v4365_v36 = vpop.permute.xlu0 %848 }
 0x1ad   : > { %6345 = vst [vmem:[#allocation50_spill] sm:$0xff] %v4365_v36  ;;  %1075 = vrot.lane.b32.xlu1 %v6346_v60, %s3060_s4  ;;  %v6352_v36 = vld [vmem:[#allocation64_spill] sm:$0xff] }
 0x1ae   : > { %1073 = vrot.lane.b32.xlu0 %v6347_v45, %s3060_s4 }
 0x1af   : > { %v4371_v15 = vpop.permute.xlu1 %854 }
 0x1b0   : > { %6348 = vst [vmem:[#allocation56_spill] sm:$0xff] %v4371_v15  ;;  %v4373_v54 = vpop.permute.xlu0 %852 }
 0x1b1   : > { %6349 = vst [vmem:[#allocation52_spill] sm:$0xff] %v4373_v54  ;;  %1079 = vrot.lane.b32.xlu1 %v6350_v63, %s3060_s4  ;;  %v6356_v54 = vld [vmem:[#allocation68_spill] sm:$0xff] }
 0x1b2   : > { %1077 = vrot.lane.b32.xlu0 %v6351_v51, %s3060_s4 }
 0x1b3   : > { %v4379_v61 = vpop.permute.xlu1 %913 }
 0x1b4   : > { %v4381_v41 = vpop.permute.xlu0 %911 }
 0x1b5   : > { %1083 = vrot.lane.b32.xlu1 %v6352_v36, %s3060_s4 }
 0x1b6   : > { %1081 = vrot.lane.b32.xlu0 %v6353_v35, %s3060_s4 }
 0x1b7   : > { %v4387_v30 = vpop.permute.xlu1 %917 }
 0x1b8   : > { %6354 = vst [vmem:[#allocation60_spill] sm:$0xff] %v4387_v30  ;;  %v4389_v15 = vpop.permute.xlu0 %915 }
 0x1b9   : > { %6355 = vst [vmem:[#allocation54_spill] sm:$0xff] %v4389_v15  ;;  %1087 = vrot.lane.b32.xlu1 %v6356_v54, %s3060_s4  ;;  %v4503_v15 = vld [vmem:[%s3141_s27 + $0x38] sm:$0xff] }
 0x1ba   : > { %1085 = vrot.lane.b32.xlu0 %v6357_v9, %s3060_s4  ;;  %6398 = vst [vmem:[#allocation209_spill] sm:$0xff] %v4503_v15 }
 0x1bb   : > { %v4395_v8 = vpop.permute.xlu1 %921 }
 0x1bc   : > { %6358 = vst [vmem:[#allocation64_spill] sm:$0xff] %v4395_v8  ;;  %v4397_v0 = vpop.permute.xlu0 %919 }
 0x1bd   : > { %6359 = vst [vmem:[#allocation58_spill] sm:$0xff] %v4397_v0  ;;  %1091 = vrot.lane.b32.xlu1 %v6360_v31, %s3060_s4  ;;  %v6368_v0 = vld [vmem:[#allocation80_spill] sm:$0xff]  ;;  %v6369_v31 = vld [vmem:[#allocation74_spill] sm:$0xff] }
 0x1be   : > { %1089 = vrot.lane.b32.xlu0 %v6361_v28, %s3060_s4 }
 0x1bf   : > { %v4403_v2 = vpop.permute.xlu1 %925 }
 0x1c0   : > { %6362 = vst [vmem:[#allocation68_spill] sm:$0xff] %v4403_v2  ;;  %v4405_v10 = vpop.permute.xlu0 %923 }
 0x1c1   : > { %6363 = vst [vmem:[#allocation62_spill] sm:$0xff] %v4405_v10  ;;  %1095 = vrot.lane.b32.xlu1 %v6364_v37, %s3060_s4  ;;  %v6372_v10 = vld [vmem:[#allocation84_spill] sm:$0xff]  ;;  %v6373_v37 = vld [vmem:[#allocation78_spill] sm:$0xff] }
 0x1c2   : > { %1093 = vrot.lane.b32.xlu0 %v6365_v52, %s3060_s4 }
 0x1c3   : > { %v4411_v62 = vpop.permute.xlu1 %929 }
 0x1c4   : > { %6366 = vst [vmem:[#allocation66_spill] sm:$0xff] %v4411_v62  ;;  %v4413_v8 = vpop.permute.xlu0 %927 }
 0x1c5   : > { %6367 = vst [vmem:[#allocation197_spill] sm:$0xff] %v4413_v8  ;;  %1099 = vrot.lane.b32.xlu1 %v6368_v0, %s3060_s4  ;;  %v6376_v8 = vld [vmem:[#allocation88_spill] sm:$0xff]  ;;  %v6377_v0 = vld [vmem:[#allocation82_spill] sm:$0xff] }
 0x1c6   : > { %1097 = vrot.lane.b32.xlu0 %v6369_v31, %s3060_s4 }
 0x1c7   : > { %v4419_v30 = vpop.permute.xlu1 %933 }
 0x1c8   : > { %6370 = vst [vmem:[#allocation198_spill] sm:$0xff] %v4419_v30  ;;  %v4421_v2 = vpop.permute.xlu0 %931 }
 0x1c9   : > { %6371 = vst [vmem:[#allocation199_spill] sm:$0xff] %v4421_v2  ;;  %1103 = vrot.lane.b32.xlu1 %v6372_v10, %s3060_s4  ;;  %v6380_v2 = vld [vmem:[#allocation92_spill] sm:$0xff]  ;;  %v6381_v10 = vld [vmem:[#allocation86_spill] sm:$0xff] }
 0x1ca   : > { %1101 = vrot.lane.b32.xlu0 %v6373_v37, %s3060_s4 }
 0x1cb   : > { %v4427_v52 = vpop.permute.xlu1 %937 }
 0x1cc   : > { %6374 = vst [vmem:[#allocation200_spill] sm:$0xff] %v4427_v52  ;;  %v4429_v62 = vpop.permute.xlu0 %935 }
 0x1cd   : > { %6375 = vst [vmem:[#allocation201_spill] sm:$0xff] %v4429_v62  ;;  %1107 = vrot.lane.b32.xlu1 %v6376_v8, %s3060_s4  ;;  %v6384_v62 = vld [vmem:[#allocation96_spill] sm:$0xff]  ;;  %v6385_v8 = vld [vmem:[#allocation90_spill] sm:$0xff] }
 0x1ce   : > { %1105 = vrot.lane.b32.xlu0 %v6377_v0, %s3060_s4  ;;  %v6392_v0 = vld [vmem:[#allocation104_spill] sm:$0xff] }
 0x1cf   : > { %v4435_v31 = vpop.permute.xlu1 %941 }
 0x1d0   : > { %6378 = vst [vmem:[#allocation202_spill] sm:$0xff] %v4435_v31  ;;  %v4437_v30 = vpop.permute.xlu0 %939 }
 0x1d1   : > { %6379 = vst [vmem:[#allocation203_spill] sm:$0xff] %v4437_v30  ;;  %1111 = vrot.lane.b32.xlu1 %v6380_v2, %s3060_s4  ;;  %v6388_v2 = vld [vmem:[#allocation100_spill] sm:$0xff] }
 0x1d2   : > { %1109 = vrot.lane.b32.xlu0 %v6381_v10, %s3060_s4  ;;  %v6389_v10 = vld [vmem:[#allocation94_spill] sm:$0xff] }
 0x1d3   : > { %v4443_v37 = vpop.permute.xlu1 %945 }
 0x1d4   : > { %6382 = vst [vmem:[#allocation204_spill] sm:$0xff] %v4443_v37  ;;  %v4445_v52 = vpop.permute.xlu0 %943 }
 0x1d5   : > { %6383 = vst [vmem:[#allocation205_spill] sm:$0xff] %v4445_v52  ;;  %1115 = vrot.lane.b32.xlu1 %v6384_v62, %s3060_s4 }
 0x1d6   : > { %1113 = vrot.lane.b32.xlu0 %v6385_v8, %s3060_s4  ;;  %v6393_v8 = vld [vmem:[#allocation98_spill] sm:$0xff] }
 0x1d7   : > { %v4451_v31 = vpop.permute.xlu1 %949 }
 0x1d8   : > { %6386 = vst [vmem:[#allocation96_spill] sm:$0xff] %v4451_v31  ;;  %v4453_v30 = vpop.permute.xlu0 %947  ;;  %v2044_v31 = vld [vmem:[%s5881_s1] sm:$0xff] }
 0x1d9   : > { %6387 = vst [vmem:[#allocation206_spill] sm:$0xff] %v4453_v30  ;;  %1119 = vrot.lane.b32.xlu1 %v6388_v2, %s3060_s4  ;;  %v2045_v30 = vld [vmem:[%s5881_s1 + $0x8] sm:$0xff] }
 0x1da   : > { %1117 = vrot.lane.b32.xlu0 %v6389_v10, %s3060_s4  ;;  %v2842_v40 = vpack.c.bf16 %v2045_v30, %v2044_v31  ;;  %v2047_v30 = vld [vmem:[%s5881_s1 + $0x18] sm:$0xff]  ;;  %v4489_v31 = vld [vmem:[%s3141_s27 + $0x30] sm:$0xff] }
 0x1db   : > { %v4459_v37 = vpop.permute.xlu1 %953 }
 0x1dc   : > { %6390 = vst [vmem:[#allocation100_spill] sm:$0xff] %v4459_v37  ;;  %v4461_v52 = vpop.permute.xlu0 %951  ;;  %2843 = vmatprep.subr.bf16.mxu0 %v2842_v40  ;;  %2850 = vmatprep.subr.bf16.mxu1 %v2842_v40 }
 0x1dd   : > { %6391 = vst [vmem:[#allocation94_spill] sm:$0xff] %v4461_v52  ;;  %1123 = vrot.lane.b32.xlu1 %v6392_v0, %s3060_s4  ;;  %v4478_v52 = vld [vmem:[%s3141_s27 + $0xf0] sm:$0xff]  ;;  %2845 = vmatpush3.bf16.msra.mxu0 %v2842_v40 }
 0x1de   : > { %1121 = vrot.lane.b32.xlu0 %v6393_v8, %s3060_s4  ;;  %6396 = vst [vmem:[#allocation207_spill] sm:$0xff] %v4478_v52  ;;  %2853 = vmatpush3.bf16.msra.mxu1 %v2842_v40 }
 0x1df   : > { %v4473_v59 = vpop.permute.xlu1 %957 }
 0x1e0   : > { %6394 = vst [vmem:[#allocation104_spill] sm:$0xff] %v4473_v59  ;;  %v4475_v37 = vpop.permute.xlu0 %955  ;;  %v2846_v59 = vpack.c.bf16 %v2047_v30, %v2046_v24  ;;  %v2048_v24 = vld [vmem:[%s5881_s1 + $0x20] sm:$0xf] }
 0x1e1   : > { %6395 = vst [vmem:[#allocation98_spill] sm:$0xff] %v4475_v37  ;;  %1255 = vrot.lane.b32.xlu1 %v4478_v52, %s3061_s15  ;;  %v4498_v52 = vld [vmem:[%s3141_s27 + $0xf8] sm:$0xff] }
 0x1e2   : > { %1207 = vrot.lane.b32.xlu0 %v4489_v31, %s3061_s15  ;;  %2847 = vmatprep.subr.bf16.mxu0 %v2846_v59  ;;  %6397 = vst [vmem:[#allocation208_spill] sm:$0xff] %v4498_v52 }
 0x1e3   : > { %v4493_v37 = vpop.permute.xlu1 %961  ;;  %2851 = vmatprep.subr.bf16.mxu1 %v2846_v59  ;;  %2849 = vmatpush3.bf16.msra.mxu0 %v2846_v59 }
 0x1e4   : > { %v4495_v21 = vpop.permute.xlu0 %959  ;;  %2854 = vmatpush3.bf16.msra.mxu1 %v2846_v59  ;;  %2768 = vmatprep.subr.msk.mxu0 %vm2194_vm2, %v2048_v24 }
 0x1e5   : > { %1257 = vrot.lane.b32.xlu1 %v4498_v52, %s3061_s15  ;;  %2852 = vmatprep.subr.msk.mxu1 %vm2194_vm2, %v2048_v24 }
 0x1e6   : > { %1209 = vrot.lane.b32.xlu0 %v4503_v15, %s3061_s15 }
 0x1e7   : > { %v4510_v40 = vpop.permute.xlu1 %965  ;;  %2769 = vmatpush3.msk.msra.mxu0 %vm2194_vm2, %v2048_v24 }
 0x1e8   : > { %v4512_v30 = vpop.permute.xlu0 %963  ;;  %2855 = vmatpush3.msk.msra.mxu1 %vm2194_vm2, %v2048_v24 }
 0x1e9   : > { %1406 = vrot.lane.b32.xlu1 %v6292_v49, %s3062_s26 }
 0x1ea   : > { %1358 = vrot.lane.b32.xlu0 %v3212_v29, %s3062_s26 }
 0x1eb   : > { %v4518_v59 = vpop.permute.xlu1 %969 }
 0x1ec   : > { %v4520_v52 = vpop.permute.xlu0 %967 }
 0x1ed   : > { %1408 = vrot.lane.b32.xlu1 %v6297_v47, %s3062_s26 }
 0x1ee   : > { %1360 = vrot.lane.b32.xlu0 %v6252_v23, %s3062_s26 }
 0x1ef   : > { %v4526_v15 = vpop.permute.xlu1 %973 }
 0x1f0   : > { %6399 = vst [vmem:[#allocation210_spill] sm:$0xff] %v4526_v15  ;;  %v4528_v49 = vpop.permute.xlu0 %971  ;;  %v4547_v15 = vld [vmem:[%s3141_s27 + $0x100] sm:$0xff] }
 0x1f1   : > { %1556 = vrot.lane.b32.xlu1 %v6384_v62, %s3063_s28 }
 0x1f2   : > { %1508 = vrot.lane.b32.xlu0 %v6338_v26, %s3063_s28  ;;  %v4552_v26 = vld [vmem:[%s3141_s27 + $0x40] sm:$0xff] }
 0x1f3   : > { %v4534_v29 = vpop.permute.xlu1 %977 }
 0x1f4   : > { %6400 = vst [vmem:[#allocation211_spill] sm:$0xff] %v4534_v29  ;;  %v4536_v24 = vpop.permute.xlu0 %975  ;;  %v4561_v29 = vld [vmem:[%s3141_s27 + $0x108] sm:$0xff] }
 0x1f5   : > { %6401 = vst [vmem:[#allocation212_spill] sm:$0xff] %v4536_v24  ;;  %1558 = vrot.lane.b32.xlu1 %v6389_v10, %s3063_s28  ;;  %6406 = vst [vmem:[#allocation217_spill] sm:$0xff] %v4561_v29 }
 0x1f6   : > { %1510 = vrot.lane.b32.xlu0 %v6343_v6, %s3063_s28  ;;  %v4566_v6 = vld [vmem:[%s3141_s27 + $0x48] sm:$0xff] }
 0x1f7   : > { %v4542_v47 = vpop.permute.xlu1 %981  ;;  %6407 = vst [vmem:[#allocation218_spill] sm:$0xff] %v4566_v6 }
 0x1f8   : > { %6402 = vst [vmem:[#allocation213_spill] sm:$0xff] %v4542_v47  ;;  %v4544_v23 = vpop.permute.xlu0 %979 }
 0x1f9   : > { %6403 = vst [vmem:[#allocation214_spill] sm:$0xff] %v4544_v23  ;;  %1259 = vrot.lane.b32.xlu1 %v4547_v15, %s3061_s15 }
 0x1fa   : > { %1211 = vrot.lane.b32.xlu0 %v4552_v26, %s3061_s15 }
 0x1fb   : > { %v4556_v62 = vpop.permute.xlu1 %985 }
 0x1fc   : > { %6404 = vst [vmem:[#allocation215_spill] sm:$0xff] %v4556_v62  ;;  %v4558_v10 = vpop.permute.xlu0 %983 }
 0x1fd   : > { %6405 = vst [vmem:[#allocation216_spill] sm:$0xff] %v4558_v10  ;;  %1261 = vrot.lane.b32.xlu1 %v4561_v29, %s3061_s15 }
 0x1fe   : > { %1213 = vrot.lane.b32.xlu0 %v4566_v6, %s3061_s15  ;;  %v6453_v6 = vld [vmem:[#allocation61_spill] sm:$0xff] }
 0x1ff   : > { %v4570_v47 = vpop.permute.xlu1 %989 }
 0x200   : > { %6408 = vst [vmem:[#allocation219_spill] sm:$0xff] %v4570_v47  ;;  %v4572_v23 = vpop.permute.xlu0 %987 }
 0x201   : > { %6409 = vst [vmem:[#allocation220_spill] sm:$0xff] %v4572_v23  ;;  %1410 = vrot.lane.b32.xlu1 %v6296_v55, %s3062_s26 }
 0x202   : > { %1362 = vrot.lane.b32.xlu0 %v6251_v33, %s3062_s26 }
 0x203   : > { %v4578_v62 = vpop.permute.xlu1 %993 }
 0x204   : > { %6410 = vst [vmem:[#allocation221_spill] sm:$0xff] %v4578_v62  ;;  %v4580_v10 = vpop.permute.xlu0 %991 }
 0x205   : > { %6411 = vst [vmem:[#allocation222_spill] sm:$0xff] %v4580_v10  ;;  %1412 = vrot.lane.b32.xlu1 %v6301_v42, %s3062_s26 }
 0x206   : > { %1364 = vrot.lane.b32.xlu0 %v6256_v57, %s3062_s26 }
 0x207   : > { %v4586_v47 = vpop.permute.xlu1 %997 }
 0x208   : > { %6412 = vst [vmem:[#allocation223_spill] sm:$0xff] %v4586_v47  ;;  %v4588_v23 = vpop.permute.xlu0 %995  ;;  %v4607_v47 = vld [vmem:[%s3141_s27 + $0x110] sm:$0xff] }
 0x209   : > { %6413 = vst [vmem:[#allocation224_spill] sm:$0xff] %v4588_v23  ;;  %1560 = vrot.lane.b32.xlu1 %v6388_v2, %s3063_s28  ;;  %6418 = vst [vmem:[#allocation229_spill] sm:$0xff] %v4607_v47  ;;  %v4612_v2 = vld [vmem:[%s3141_s27 + $0x50] sm:$0xff] }
 0x20a   : > { %1512 = vrot.lane.b32.xlu0 %v6342_v44, %s3063_s28  ;;  %6419 = vst [vmem:[#allocation230_spill] sm:$0xff] %v4612_v2 }
 0x20b   : > { %v4594_v55 = vpop.permute.xlu1 %1001 }
 0x20c   : > { %6414 = vst [vmem:[#allocation225_spill] sm:$0xff] %v4594_v55  ;;  %v4596_v33 = vpop.permute.xlu0 %999  ;;  %v4621_v55 = vld [vmem:[%s3141_s27 + $0x118] sm:$0xff] }
 0x20d   : > { %6415 = vst [vmem:[#allocation226_spill] sm:$0xff] %v4596_v33  ;;  %1562 = vrot.lane.b32.xlu1 %v6393_v8, %s3063_s28  ;;  %6420 = vst [vmem:[#allocation231_spill] sm:$0xff] %v4621_v55 }
 0x20e   : > { %1514 = vrot.lane.b32.xlu0 %v6347_v45, %s3063_s28  ;;  %v4626_v45 = vld [vmem:[%s3141_s27 + $0x58] sm:$0xff] }
 0x20f   : > { %v4602_v57 = vpop.permute.xlu1 %1005  ;;  %6421 = vst [vmem:[#allocation232_spill] sm:$0xff] %v4626_v45 }
 0x210   : > { %6416 = vst [vmem:[#allocation227_spill] sm:$0xff] %v4602_v57  ;;  %v4604_v42 = vpop.permute.xlu0 %1003 }
 0x211   : > { %6417 = vst [vmem:[#allocation228_spill] sm:$0xff] %v4604_v42  ;;  %1263 = vrot.lane.b32.xlu1 %v4607_v47, %s3061_s15  ;;  %v4681_v47 = vld [vmem:[%s3141_s27 + $0x128] sm:$0xff] }
 0x212   : > { %1215 = vrot.lane.b32.xlu0 %v4612_v2, %s3061_s15  ;;  %6431 = vst [vmem:[#allocation240_spill] sm:$0xff] %v4681_v47 }
 0x213   : > { %v4616_v44 = vpop.permute.xlu1 %1063 }
 0x214   : > { %v4618_v8 = vpop.permute.xlu0 %1061 }
 0x215   : > { %1265 = vrot.lane.b32.xlu1 %v4621_v55, %s3061_s15 }
 0x216   : > { %1217 = vrot.lane.b32.xlu0 %v4626_v45, %s3061_s15  ;;  %v4667_v45 = vld [vmem:[%s3141_s27 + $0x120] sm:$0xff] }
 0x217   : > { %v4630_v57 = vpop.permute.xlu1 %1067  ;;  %6427 = vst [vmem:[#allocation236_spill] sm:$0xff] %v4667_v45 }
 0x218   : > { %v4632_v42 = vpop.permute.xlu0 %1065 }
 0x219   : > { %1414 = vrot.lane.b32.xlu1 %v6300_v48, %s3062_s26 }
 0x21a   : > { %1366 = vrot.lane.b32.xlu0 %v6255_v7, %s3062_s26 }
 0x21b   : > { %v4638_v33 = vpop.permute.xlu1 %1071 }
 0x21c   : > { %v4640_v23 = vpop.permute.xlu0 %1069 }
 0x21d   : > { %1416 = vrot.lane.b32.xlu1 %v6305_v27, %s3062_s26  ;;  %v6424_v27 = vld [vmem:[#allocation102_spill] sm:$0xff] }
 0x21e   : > { %1368 = vrot.lane.b32.xlu0 %v6260_v17, %s3062_s26 }
 0x21f   : > { %v4646_v62 = vpop.permute.xlu1 %1075 }
 0x220   : > { %v4648_v10 = vpop.permute.xlu0 %1073 }
 0x221   : > { %1564 = vrot.lane.b32.xlu1 %v6392_v0, %s3063_s28  ;;  %v4672_v0 = vld [vmem:[%s3141_s27 + $0x60] sm:$0xff] }
 0x222   : > { %1516 = vrot.lane.b32.xlu0 %v6346_v60, %s3063_s28  ;;  %6428 = vst [vmem:[#allocation237_spill] sm:$0xff] %v4672_v0 }
 0x223   : > { %v4654_v7 = vpop.permute.xlu1 %1079 }
 0x224   : > { %6422 = vst [vmem:[#allocation233_spill] sm:$0xff] %v4654_v7  ;;  %v4656_v48 = vpop.permute.xlu0 %1077  ;;  %v6452_v7 = vld [vmem:[#allocation110_spill] sm:$0xff] }
 0x225   : > { %6423 = vst [vmem:[#allocation234_spill] sm:$0xff] %v4656_v48  ;;  %1566 = vrot.lane.b32.xlu1 %v6424_v27, %s3063_s28  ;;  %v2945_v48 = vld [vmem:[%s3141_s27 + $0x8] sm:$0xff] }
 0x226   : > { %1518 = vrot.lane.b32.xlu0 %v6351_v51, %s3063_s28  ;;  %v4686_v51 = vld [vmem:[%s3141_s27 + $0x68] sm:$0xff] }
 0x227   : > { %v4662_v17 = vpop.permute.xlu1 %1083  ;;  %6432 = vst [vmem:[#allocation241_spill] sm:$0xff] %v4686_v51 }
 0x228   : > { %6425 = vst [vmem:[#allocation102_spill] sm:$0xff] %v4662_v17  ;;  %v4664_v55 = vpop.permute.xlu0 %1081 }
 0x229   : > { %6426 = vst [vmem:[#allocation235_spill] sm:$0xff] %v4664_v55  ;;  %1267 = vrot.lane.b32.xlu1 %v4667_v45, %s3061_s15 }
 0x22a   : > { %1219 = vrot.lane.b32.xlu0 %v4672_v0, %s3061_s15  ;;  %v6450_v0 = vld [vmem:[#allocation105_spill] sm:$0xff] }
 0x22b   : > { %v4676_v60 = vpop.permute.xlu1 %1087 }
 0x22c   : > { %6429 = vst [vmem:[#allocation238_spill] sm:$0xff] %v4676_v60  ;;  %v4678_v2 = vpop.permute.xlu0 %1085 }
 0x22d   : > { %6430 = vst [vmem:[#allocation239_spill] sm:$0xff] %v4678_v2  ;;  %1269 = vrot.lane.b32.xlu1 %v4681_v47, %s3061_s15  ;;  %v6448_v47 = vld [vmem:[#allocation112_spill] sm:$0xff] }
 0x22e   : > { %1221 = vrot.lane.b32.xlu0 %v4686_v51, %s3061_s15  ;;  %v4778_v51 = vld [vmem:[%s3141_s27 + $0xc0] sm:$0xff] }
 0x22f   : > { %v4690_v45 = vpop.permute.xlu1 %1091  ;;  %6449 = vst [vmem:[#allocation112_spill] sm:$0xff] %v4778_v51  ;;  %v1677_v55 = vsel %vm1652_vm3, %v4778_v51, %v6450_v0 }
 0x230   : > { %6433 = vst [vmem:[#allocation242_spill] sm:$0xff] %v4690_v45  ;;  %v4692_v17 = vpop.permute.xlu0 %1089  ;;  %v1726_v29 = vsel %vm1701_vm4, %v1677_v55, %v4068_v13 }
 0x231   : > { %6434 = vst [vmem:[#allocation243_spill] sm:$0xff] %v4692_v17  ;;  %1418 = vrot.lane.b32.xlu1 %v6304_v56, %s3062_s26  ;;  %v6439_v56 = vld [vmem:[#allocation108_spill] sm:$0xff]  ;;  %v1775_v51 = vsel %vm1750_vm5, %v1726_v29, %v4266_v22 }
 0x232   : > { %1370 = vrot.lane.b32.xlu0 %v6259_v16, %s3062_s26  ;;  %v1824_v55 = vsel %vm1799_vm6, %v1775_v51, %v4495_v21  ;;  %v4823_v51 = vld [vmem:[%s3141_s27 + $0x80] sm:$0xff] }
 0x233   : > { %v4698_v60 = vpop.permute.xlu1 %1095 }
 0x234   : > { %6435 = vst [vmem:[#allocation244_spill] sm:$0xff] %v4698_v60  ;;  %v4700_v2 = vpop.permute.xlu0 %1093 }
 0x235   : > { %6436 = vst [vmem:[#allocation245_spill] sm:$0xff] %v4700_v2  ;;  %1420 = vrot.lane.b32.xlu1 %v6307_v43, %s3062_s26 }
 0x236   : > { %1372 = vrot.lane.b32.xlu0 %v6262_v39, %s3062_s26 }
 0x237   : > { %v4706_v45 = vpop.permute.xlu1 %1099 }
 0x238   : > { %6437 = vst [vmem:[#allocation246_spill] sm:$0xff] %v4706_v45  ;;  %v4708_v17 = vpop.permute.xlu0 %1097  ;;  %v4733_v45 = vld [vmem:[%s3141_s27 + $0x130] sm:$0xff] }
 0x239   : > { %6438 = vst [vmem:[#allocation247_spill] sm:$0xff] %v4708_v17  ;;  %1568 = vrot.lane.b32.xlu1 %v6439_v56, %s3063_s28 }
 0x23a   : > { %1520 = vrot.lane.b32.xlu0 %v6350_v63, %s3063_s28  ;;  %v6444_v63 = vld [vmem:[#allocation106_spill] sm:$0xff] }
 0x23b   : > { %v4714_v16 = vpop.permute.xlu1 %1103  ;;  %6445 = vst [vmem:[#allocation106_spill] sm:$0xff] %v4733_v45 }
 0x23c   : > { %6440 = vst [vmem:[#allocation108_spill] sm:$0xff] %v4714_v16  ;;  %v4716_v60 = vpop.permute.xlu0 %1101 }
 0x23d   : > { %6441 = vst [vmem:[#allocation248_spill] sm:$0xff] %v4716_v60  ;;  %1522 = vrot.lane.b32.xlu1 %v6353_v35, %s3063_s28  ;;  %v4738_v35 = vld [vmem:[%s3141_s27 + $0x70] sm:$0xff] }
 0x23e   : > { %1125 = vrot.lane.b32.xlu0 %v6424_v27, %s3060_s4  ;;  %6446 = vst [vmem:[#allocation251_spill] sm:$0xff] %v4738_v35 }
 0x23f   : > { %v4722_v39 = vpop.permute.xlu1 %1107 }
 0x240   : > { %6442 = vst [vmem:[#allocation249_spill] sm:$0xff] %v4722_v39  ;;  %v4724_v43 = vpop.permute.xlu0 %1105 }
 0x241   : > { %6443 = vst [vmem:[#allocation250_spill] sm:$0xff] %v4724_v43  ;;  %1127 = vrot.lane.b32.xlu1 %v6439_v56, %s3060_s4  ;;  %v2941_v56 = vld [vmem:[%s3141_s27 + $0x138] sm:$0xff] }
 0x242   : > { %1570 = vrot.lane.b32.xlu0 %v6444_v63, %s3063_s28  ;;  %v4749_v43 = vld [vmem:[%s3141_s27 + $0x78] sm:$0xff] }
 0x243   : > { %v4730_v16 = vpop.permute.xlu1 %1111  ;;  %6447 = vst [vmem:[#allocation252_spill] sm:$0xff] %v4749_v43 }
 0x244   : > { %v1110_v60 = vpop.permute.xlu0 %1109 }
 0x245   : > { %1271 = vrot.lane.b32.xlu1 %v4733_v45, %s3061_s15  ;;  %v1873_v24 = vsel %vm1848_vm7, %v1824_v55, %v1110_v60 }
 0x246   : > { %1223 = vrot.lane.b32.xlu0 %v4738_v35, %s3061_s15 }
 0x247   : > { %v4742_v27 = vpop.permute.xlu1 %1115 }
 0x248   : > { %v4744_v39 = vpop.permute.xlu0 %1113 }
 0x249   : > { %1273 = vrot.lane.b32.xlu1 %v2941_v56, %s3061_s15 }
 0x24a   : > { %1225 = vrot.lane.b32.xlu0 %v4749_v43, %s3061_s15 }
 0x24b   : > { %v4753_v17 = vpop.permute.xlu1 %1119 }
 0x24c   : > { %v4755_v2 = vpop.permute.xlu0 %1117 }
 0x24d   : > { %1422 = vrot.lane.b32.xlu1 %v6306_v32, %s3062_s26 }
 0x24e   : > { %1374 = vrot.lane.b32.xlu0 %v6261_v34, %s3062_s26 }
 0x24f   : > { %v4761_v35 = vpop.permute.xlu1 %1123 }
 0x250   : > { %v4763_v45 = vpop.permute.xlu0 %1121 }
 0x251   : > { %1424 = vrot.lane.b32.xlu1 %v6310_v4, %s3062_s26 }
 0x252   : > { %1376 = vrot.lane.b32.xlu0 %v6265_v58, %s3062_s26 }
 0x253   : > { %v1256_v56 = vpop.permute.xlu1 %1255 }
 0x254   : > { %v1208_v43 = vpop.permute.xlu0 %1207 }
 0x255   : > { %1572 = vrot.lane.b32.xlu1 %v6448_v47, %s3063_s28 }
 0x256   : > { %1524 = vrot.lane.b32.xlu0 %v6352_v36, %s3063_s28  ;;  %v2944_v36 = vld [vmem:[%s3141_s27] sm:$0xff] }
 0x257   : > { %v1258_v32 = vpop.permute.xlu1 %1257 }
 0x258   : > { %v1210_v34 = vpop.permute.xlu0 %1209 }
 0x259   : > { %1526 = vrot.lane.b32.xlu1 %v6357_v9, %s3063_s28  ;;  %v6451_v9 = vld [vmem:[#allocation57_spill] sm:$0xff] }
 0x25a   : > { %1129 = vrot.lane.b32.xlu0 %v6444_v63, %s3060_s4  ;;  %v1653_v63 = vsel %vm1652_vm3, %v2944_v36, %v6451_v9  ;;  %v1654_v36 = vsel %vm1652_vm3, %v2945_v48, %v6453_v6  ;;  %v4813_v6 = vld [vmem:[%s3141_s27 + $0x140] sm:$0xff]  ;;  %v1922_v48 = vsel %vm1897_vm8, %v1873_v24, %v1256_v56 }
 0x25b   : > { %v1407_v4 = vpop.permute.xlu1 %1406  ;;  %v1702_v0 = vsel %vm1701_vm4, %v1653_v63, %v3972_v19  ;;  %v4804_v19 = vld [vmem:[%s3141_s27 + $0xc8] sm:$0xff]  ;;  %v6454_v63 = vld [vmem:[#allocation103_spill] sm:$0xff] }
 0x25c   : > { %v1359_v58 = vpop.permute.xlu0 %1358  ;;  %v1751_v13 = vsel %vm1750_vm5, %v1702_v0, %v4170_v14  ;;  %v1678_v22 = vsel %vm1652_vm3, %v4804_v19, %v6454_v63 }
 0x25d   : > { %1131 = vrot.lane.b32.xlu1 %v6448_v47, %s3060_s4  ;;  %v1800_v29 = vsel %vm1799_vm6, %v1751_v13, %v4381_v41  ;;  %v1727_v21 = vsel %vm1701_vm4, %v1678_v22, %v4066_v12  ;;  %v1703_v41 = vsel %vm1701_vm4, %v1654_v36, %v3970_v18  ;;  %v4844_v36 = vld [vmem:[%s3141_s27 + $0x148] sm:$0xff] }
 0x25e   : > { %1574 = vrot.lane.b32.xlu0 %v6452_v7, %s3063_s28  ;;  %v1849_v14 = vsel %vm1848_vm7, %v1800_v29, %v4618_v8  ;;  %v1776_v60 = vsel %vm1750_vm5, %v1727_v21, %v4264_v53  ;;  %v1971_v8 = vsel %vm1946_vm9, %v1922_v48, %v1407_v4  ;;  %v1752_v24 = vsel %vm1750_vm5, %v1703_v41, %v4168_v1  ;;  %v4879_v48 = vld [vmem:[%s3141_s27 + $0xd0] sm:$0xff]  ;;  %v6456_v41 = vld [vmem:[#allocation109_spill] sm:$0xff] }
 0x25f   : > { %v1409_v47 = vpop.permute.xlu1 %1408  ;;  %v1898_v12 = vsel %vm1897_vm8, %v1849_v14, %v1208_v43  ;;  %v1825_v56 = vsel %vm1799_vm6, %v1776_v60, %v4493_v37  ;;  %v1801_v53 = vsel %vm1799_vm6, %v1752_v24, %v4379_v61  ;;  %v6457_v60 = vld [vmem:[#allocation55_spill] sm:$0xff] }
 0x260   : > { %v1361_v9 = vpop.permute.xlu0 %1360  ;;  %v1947_v13 = vsel %vm1946_vm9, %v1898_v12, %v1359_v58  ;;  %v1874_v43 = vsel %vm1848_vm7, %v1825_v56, %v4730_v16  ;;  %v1850_v37 = vsel %vm1848_vm7, %v1801_v53, %v4616_v44  ;;  %v4854_v58 = vld [vmem:[%s3141_s27 + $0x88] sm:$0xff]  ;;  %v6460_v53 = vld [vmem:[#allocation59_spill] sm:$0xff] }
 0x261   : > { %1275 = vrot.lane.b32.xlu1 %v4813_v6, %s3061_s15  ;;  %v1923_v4 = vsel %vm1897_vm8, %v1874_v43, %v1258_v32  ;;  %v1899_v61 = vsel %vm1897_vm8, %v1850_v37, %v1210_v34  ;;  %v6461_v43 = vld [vmem:[#allocation161_spill] sm:$0xff] }
 0x262   : > { %1227 = vrot.lane.b32.xlu0 %v4823_v51, %s3061_s15  ;;  %v1972_v16 = vsel %vm1946_vm9, %v1923_v4, %v1409_v47  ;;  %v1948_v22 = vsel %vm1946_vm9, %v1899_v61, %v1361_v9  ;;  %v6462_v61 = vld [vmem:[#allocation114_spill] sm:$0xff] }
 0x263   : > { %v1557_v0 = vpop.permute.xlu1 %1556 }
 0x264   : > { %v1509_v55 = vpop.permute.xlu0 %1508  ;;  %v2020_v18 = vsel %vm1995_vm10, %v1971_v8, %v1557_v0 }
 0x265   : > { %1277 = vrot.lane.b32.xlu1 %v4844_v36, %s3061_s15  ;;  %v1996_v1 = vsel %vm1995_vm10, %v1947_v13, %v1509_v55  ;;  %2806 = vmatprep.mubr.msk.f32.mxu1 %vm2049_vm11, %v2020_v18  ;;  %v4902_v55 = vld [vmem:[%s3141_s27 + $0xd8] sm:$0xff]  ;;  %v6459_v18 = vld [vmem:[#allocation54_spill] sm:$0xff] }
 0x266   : > { %1229 = vrot.lane.b32.xlu0 %v4854_v58, %s3061_s15  ;;  %2770 = vmatprep.mubr.msk.f32.mxu0 %vm2049_vm11, %v1996_v1 }
 0x267   : > { %v1559_v63 = vpop.permute.xlu1 %1558 }
 0x268   : > { %v2021_v29 = vsel %vm1995_vm10, %v1972_v16, %v1559_v63  ;;  %v1511_v21 = vpop.permute.xlu0 %1510  ;;  %v6464_v63 = vld [vmem:[#allocation35_spill] sm:$0xff] }
 0x269   : > { %v1997_v44 = vsel %vm1995_vm10, %v1948_v22, %v1511_v21  ;;  %1426 = vrot.lane.b32.xlu1 %v6309_v50, %s3062_s26  ;;  %2807 = vmatmul.mubr.msk.f32.vlgmr.msra.gmra.mrb[0].mxu1 %vm2049_vm11, %v2021_v29  ;;  %v6455_v50 = vld [vmem:[#allocation116_spill] sm:$0xff] }
 0x26a   : > { %1378 = vrot.lane.b32.xlu0 %v6264_v11, %s3062_s26  ;;  %2771 = vmatmul.mubr.msk.f32.vlgmr.msra.gmra.mrb[0].mxu0 %vm2049_vm11, %v1997_v44 }
 0x26b   : > { %v1260_v32 = vpop.permute.xlu1 %1259 }
 0x26c   : > { %v1212_v34 = vpop.permute.xlu0 %1211 }
 0x26d   : > { %1428 = vrot.lane.b32.xlu1 %v6314_v38, %s3062_s26  ;;  %v1679_v38 = vsel %vm1652_vm3, %v4879_v48, %v6456_v41 }
 0x26e   : > { %1380 = vrot.lane.b32.xlu0 %v6269_v5, %s3062_s26  ;;  %v2952_v5 = vld [vmem:[%s3141_s27 + $0x10] sm:$0xff] }
 0x26f   : > { %v1262_v47 = vpop.permute.xlu1 %1261  ;;  %v1655_v12 = vsel %vm1652_vm3, %v2952_v5, %v6457_v60  ;;  %v6466_v60 = vld [vmem:[#allocation60_spill] sm:$0xff] }
 0x270   : > { %v1214_v9 = vpop.permute.xlu0 %1213  ;;  %v1704_v8 = vsel %vm1701_vm4, %v1655_v12, %v3980_v25 }
 0x271   : > { %1576 = vrot.lane.b32.xlu1 %v6455_v50, %s3063_s28 }
 0x272   : > { %1528 = vrot.lane.b32.xlu0 %v6356_v54, %s3063_s28  ;;  %v1728_v54 = vsel %vm1701_vm4, %v1679_v38, %v4076_v46  ;;  %v6458_v46 = vld [vmem:[#allocation107_spill] sm:$0xff] }
 0x273   : > { %v1411_v11 = vpop.permute.xlu1 %1410  ;;  %v1777_v0 = vsel %vm1750_vm5, %v1728_v54, %v4274_v3  ;;  %v4941_v54 = vld [vmem:[%s3141_s27 + $0x150] sm:$0xff] }
 0x274   : > { %v1363_v14 = vpop.permute.xlu0 %1362  ;;  %v1826_v56 = vsel %vm1799_vm6, %v1777_v0, %v4512_v30 }
 0x275   : > { %1530 = vrot.lane.b32.xlu1 %v6361_v28, %s3063_s28  ;;  %v1753_v28 = vsel %vm1750_vm5, %v1704_v8, %v4178_v20  ;;  %v1875_v3 = vsel %vm1848_vm7, %v1826_v56, %v4744_v39  ;;  %v2954_v20 = vld [vmem:[%s3141_s27 + $0x18] sm:$0xff]  ;;  %v4950_v8 = vld [vmem:[%s3141_s27 + $0x90] sm:$0xff] }
 0x276   : > { %1133 = vrot.lane.b32.xlu0 %v6452_v7, %s3060_s4  ;;  %v1680_v7 = vsel %vm1652_vm3, %v4902_v55, %v6458_v46  ;;  %v1802_v25 = vsel %vm1799_vm6, %v1753_v28, %v6459_v18  ;;  %v1656_v30 = vsel %vm1652_vm3, %v2954_v20, %v6460_v53  ;;  %v1924_v4 = vsel %vm1897_vm8, %v1875_v3, %v1260_v32  ;;  %v6463_v39 = vld [vmem:[#allocation140_spill] sm:$0xff] }
 0x277   : > { %v1413_v24 = vpop.permute.xlu1 %1412  ;;  %v1729_v1 = vsel %vm1701_vm4, %v1680_v7, %v6461_v43  ;;  %v1851_v37 = vsel %vm1848_vm7, %v1802_v25, %v4632_v42  ;;  %v1705_v16 = vsel %vm1701_vm4, %v1656_v30, %v6463_v39  ;;  %v1973_v21 = vsel %vm1946_vm9, %v1924_v4, %v1411_v11  ;;  %v4967_v18 = vld [vmem:[%s3141_s27 + $0x98] sm:$0xff]  ;;  %v6468_v25 = vld [vmem:[#allocation17_spill] sm:$0xff] }
 0x278   : > { %v1365_v13 = vpop.permute.xlu0 %1364  ;;  %v1778_v22 = vsel %vm1750_vm5, %v1729_v1, %v6464_v63  ;;  %v1900_v29 = vsel %vm1897_vm8, %v1851_v37, %v1212_v34  ;;  %v6469_v53 = vld [vmem:[#allocation40_spill] sm:$0xff]  ;;  %v4981_v37 = vld [vmem:[%s3141_s27 + $0xe0] sm:$0xff] }
 0x279   : > { %1135 = vrot.lane.b32.xlu1 %v6455_v50, %s3060_s4  ;;  %v6465_v50 = vld [vmem:[#allocation11_spill] sm:$0xff]  ;;  %v1827_v32 = vsel %vm1799_vm6, %v1778_v22, %v4510_v40  ;;  %v1949_v41 = vsel %vm1946_vm9, %v1900_v29, %v1363_v14  ;;  %v6470_v30 = vld [vmem:[#allocation16_spill] sm:$0xff]  ;;  %v6471_v4 = vld [vmem:[#allocation113_spill] sm:$0xff] }
 0x27a   : > { %1578 = vrot.lane.b32.xlu0 %v6462_v61, %s3063_s28  ;;  %v1754_v42 = vsel %vm1750_vm5, %v1705_v16, %v6465_v50  ;;  %v1876_v34 = vsel %vm1848_vm7, %v1827_v32, %v4742_v27  ;;  %v1681_v39 = vsel %vm1652_vm3, %v4981_v37, %v6471_v4  ;;  %v6472_v16 = vld [vmem:[#allocation120_spill] sm:$0xff]  ;;  %v2960_v63 = vld [vmem:[%s3141_s27 + $0x20] sm:$0xff] }
 0x27b   : > { %v1561_v44 = vpop.permute.xlu1 %1560  ;;  %v1803_v12 = vsel %vm1799_vm6, %v1754_v42, %v6466_v60  ;;  %v1925_v14 = vsel %vm1897_vm8, %v1876_v34, %v1262_v47  ;;  %v4961_v47 = vld [vmem:[%s3141_s27 + $0x158] sm:$0xff]  ;;  %v6473_v22 = vld [vmem:[#allocation65_spill] sm:$0xff]  ;;  %v6476_v42 = vld [vmem:[#allocation142_spill] sm:$0xff] }
 0x27c   : > { %v2022_v38 = vsel %vm1995_vm10, %v1973_v21, %v1561_v44  ;;  %v1513_v5 = vpop.permute.xlu0 %1512  ;;  %v1852_v40 = vsel %vm1848_vm7, %v1803_v12, %v4630_v57  ;;  %v1974_v0 = vsel %vm1946_vm9, %v1925_v14, %v1413_v24  ;;  %v1657_v29 = vsel %vm1652_vm3, %v2960_v63, %v6473_v22  ;;  %v6474_v21 = vld [vmem:[#allocation163_spill] sm:$0xff]  ;;  %v6475_v50 = vld [vmem:[#allocation72_spill] sm:$0xff]  ;;  %v6478_v60 = vld [vmem:[#allocation13_spill] sm:$0xff] }
 0x27d   : > { %v1998_v11 = vsel %vm1995_vm10, %v1949_v41, %v1513_v5  ;;  %1279 = vrot.lane.b32.xlu1 %v4941_v54, %s3061_s15  ;;  %2809 = vmatprep.mubr.msk.f32.mxu1 %vm2049_vm11, %v2022_v38  ;;  %v1901_v27 = vsel %vm1897_vm8, %v1852_v40, %v1214_v9  ;;  %v1730_v44 = vsel %vm1701_vm4, %v1681_v39, %v6474_v21  ;;  %v6477_v41 = vld [vmem:[#allocation37_spill] sm:$0xff]  ;;  %v5004_v40 = vld [vmem:[%s3141_s27 + $0xe8] sm:$0xff]  ;;  %v6479_v14 = vld [vmem:[#allocation111_spill] sm:$0xff] }
 0x27e   : > { %1231 = vrot.lane.b32.xlu0 %v4950_v8, %s3061_s15  ;;  %2773 = vmatprep.mubr.msk.f32.mxu0 %vm2049_vm11, %v1998_v11  ;;  %v1950_v56 = vsel %vm1946_vm9, %v1901_v27, %v1365_v13  ;;  %v6467_v13 = vld [vmem:[#allocation41_spill] sm:$0xff]  ;;  %v1706_v32 = vsel %vm1701_vm4, %v1657_v29, %v6476_v42  ;;  %v1779_v38 = vsel %vm1750_vm5, %v1730_v44, %v6477_v41  ;;  %v6485_v39 = vld [vmem:[#allocation32_spill] sm:$0xff] }
 0x27f   : > { %v1563_v28 = vpop.permute.xlu1 %1562  ;;  %v1755_v12 = vsel %vm1750_vm5, %v1706_v32, %v6478_v60  ;;  %v1828_v34 = vsel %vm1799_vm6, %v1779_v38, %v4520_v52  ;;  %v1682_v27 = vsel %vm1652_vm3, %v5004_v40, %v6479_v14  ;;  %v6484_v4 = vld [vmem:[#allocation141_spill] sm:$0xff]  ;;  %v6486_v44 = vld [vmem:[#allocation8_spill] sm:$0xff]  ;;  %v6488_v38 = vld [vmem:[#allocation118_spill] sm:$0xff] }
 0x280   : > { %v2023_v46 = vsel %vm1995_vm10, %v1974_v0, %v1563_v28  ;;  %v1515_v7 = vpop.permute.xlu0 %1514  ;;  %v6480_v0 = vld [vmem:[#allocation58_spill] sm:$0xff]  ;;  %v6487_v32 = vld [vmem:[#allocation64_spill] sm:$0xff] }
 0x281   : > { %v1999_v57 = vsel %vm1995_vm10, %v1950_v56, %v1515_v7  ;;  %1281 = vrot.lane.b32.xlu1 %v4961_v47, %s3061_s15  ;;  %2810 = vmatmul.mubr.msk.f32.gmra.mrb[2].mxu1 %vm2049_vm11, %v2023_v46  ;;  %v1804_v28 = vsel %vm1799_vm6, %v1755_v12, %v6480_v0  ;;  %v1877_v56 = vsel %vm1848_vm7, %v1828_v34, %v4755_v2  ;;  %v6481_v46 = vld [vmem:[#allocation70_spill] sm:$0xff] }
 0x282   : > { %1233 = vrot.lane.b32.xlu0 %v4967_v18, %s3061_s15  ;;  %2774 = vmatmul.mubr.msk.f32.gmra.mrb[2].mxu0 %vm2049_vm11, %v1999_v57  ;;  %v2962_v7 = vld [vmem:[%s3141_s27 + $0x28] sm:$0xff]  ;;  %v6482_v57 = vld [vmem:[#allocation63_spill] sm:$0xff] }
 0x283   : > { %v1264_v9 = vpop.permute.xlu1 %1263  ;;  %v1658_v52 = vsel %vm1652_vm3, %v2962_v7, %v6482_v57  ;;  %v5074_v0 = vld [vmem:[%s3141_s27 + $0xa8] sm:$0xff]  ;;  %v6490_v7 = vld [vmem:[#allocation19_spill] sm:$0xff] }
 0x284   : > { %v1216_v24 = vpop.permute.xlu0 %1215  ;;  %v1707_v2 = vsel %vm1701_vm4, %v1658_v52, %v6484_v4  ;;  %v6494_v4 = vld [vmem:[#allocation69_spill] sm:$0xff] }
 0x285   : > { %1430 = vrot.lane.b32.xlu1 %v6467_v13, %s3062_s26  ;;  %v6483_v13 = vld [vmem:[#allocation162_spill] sm:$0xff] }
 0x286   : > { %1382 = vrot.lane.b32.xlu0 %v6468_v25, %s3062_s26  ;;  %v1731_v25 = vsel %vm1701_vm4, %v1682_v27, %v6483_v13  ;;  %v5063_v27 = vld [vmem:[%s3141_s27 + $0xa0] sm:$0xff] }
 0x287   : > { %v1266_v3 = vpop.permute.xlu1 %1265  ;;  %v1780_v63 = vsel %vm1750_vm5, %v1731_v25, %v6485_v39  ;;  %v6491_v13 = vld [vmem:[#allocation117_spill] sm:$0xff]  ;;  %v6492_v25 = vld [vmem:[#allocation207_spill] sm:$0xff] }
 0x288   : > { %v1218_v20 = vpop.permute.xlu0 %1217  ;;  %v6495_v39 = vld [vmem:[#allocation165_spill] sm:$0xff] }
 0x289   : > { %1432 = vrot.lane.b32.xlu1 %v6469_v53, %s3062_s26  ;;  %v1853_v53 = vsel %vm1848_vm7, %v1804_v28, %v4640_v23  ;;  %v1829_v23 = vsel %vm1799_vm6, %v1780_v63, %v4518_v59 }
 0x28a   : > { %1384 = vrot.lane.b32.xlu0 %v6470_v30, %s3062_s26  ;;  %v1926_v30 = vsel %vm1897_vm8, %v1877_v56, %v1264_v9  ;;  %v1902_v22 = vsel %vm1897_vm8, %v1853_v53, %v1216_v24  ;;  %v1878_v24 = vsel %vm1848_vm7, %v1829_v23, %v4753_v17  ;;  %v1683_v53 = vsel %vm1652_vm3, %v6492_v25, %v6491_v13  ;;  %v6507_v13 = vld [vmem:[#allocation68_spill] sm:$0xff] }
 0x28b   : > { %v1415_v43 = vpop.permute.xlu1 %1414  ;;  %v1732_v63 = vsel %vm1701_vm4, %v1683_v53, %v6495_v39 }
 0x28c   : > { %v1367_v1 = vpop.permute.xlu0 %1366  ;;  %v1975_v29 = vsel %vm1946_vm9, %v1926_v30, %v1415_v43  ;;  %v6493_v30 = vld [vmem:[#allocation43_spill] sm:$0xff] }
 0x28d   : > { %1580 = vrot.lane.b32.xlu1 %v6472_v16, %s3063_s28  ;;  %v1951_v9 = vsel %vm1946_vm9, %v1902_v22, %v1367_v1  ;;  %v1927_v1 = vsel %vm1897_vm8, %v1878_v24, %v1266_v3  ;;  %v5057_v3 = vld [vmem:[%s3141_s27 + $0x160] sm:$0xff]  ;;  %v6496_v22 = vld [vmem:[#allocation18_spill] sm:$0xff] }
 0x28e   : > { %1532 = vrot.lane.b32.xlu0 %v6475_v50, %s3063_s28  ;;  %v1756_v50 = vsel %vm1750_vm5, %v1707_v2, %v6486_v44  ;;  %v1659_v2 = vsel %vm1652_vm3, %v4489_v31, %v6494_v4  ;;  %v6498_v44 = vld [vmem:[#allocation39_spill] sm:$0xff] }
 0x28f   : > { %v1417_v5 = vpop.permute.xlu1 %1416  ;;  %v1805_v41 = vsel %vm1799_vm6, %v1756_v50, %v6487_v32  ;;  %v1781_v50 = vsel %vm1750_vm5, %v1732_v63, %v6498_v44  ;;  %v6500_v32 = vld [vmem:[#allocation67_spill] sm:$0xff] }
 0x290   : > { %v1369_v11 = vpop.permute.xlu0 %1368  ;;  %v1854_v59 = vsel %vm1848_vm7, %v1805_v41, %v4638_v33  ;;  %v1976_v60 = vsel %vm1946_vm9, %v1927_v1, %v1417_v5  ;;  %v6501_v41 = vld [vmem:[#allocation209_spill] sm:$0xff] }
 0x291   : > { %1534 = vrot.lane.b32.xlu1 %v6481_v46, %s3063_s28  ;;  %v1903_v17 = vsel %vm1897_vm8, %v1854_v59, %v1218_v20  ;;  %v6489_v46 = vld [vmem:[#allocation44_spill] sm:$0xff]  ;;  %v1660_v24 = vsel %vm1652_vm3, %v6501_v41, %v6500_v32 }
 0x292   : > { %1137 = vrot.lane.b32.xlu0 %v6462_v61, %s3060_s4  ;;  %v1952_v12 = vsel %vm1946_vm9, %v1903_v17, %v1369_v11  ;;  %v5069_v11 = vld [vmem:[%s3141_s27 + $0x168] sm:$0xff]  ;;  %v6503_v17 = vld [vmem:[#allocation124_spill] sm:$0xff] }
 0x293   : > { %v1565_v21 = vpop.permute.xlu1 %1564 }
 0x294   : > { %v2024_v61 = vsel %vm1995_vm10, %v1975_v29, %v1565_v21  ;;  %v1517_v42 = vpop.permute.xlu0 %1516  ;;  %v6497_v29 = vld [vmem:[#allocation144_spill] sm:$0xff] }
 0x295   : > { %v2000_v43 = vsel %vm1995_vm10, %v1951_v9, %v1517_v42  ;;  %1139 = vrot.lane.b32.xlu1 %v6472_v16, %s3060_s4  ;;  %2812 = vmatprep.mubr.msk.f32.mxu1 %vm2049_vm11, %v2024_v61  ;;  %v1708_v21 = vsel %vm1701_vm4, %v1659_v2, %v6497_v29  ;;  %v6499_v9 = vld [vmem:[#allocation15_spill] sm:$0xff]  ;;  %v1830_v42 = vsel %vm1799_vm6, %v1781_v50, %v4528_v49  ;;  %v6508_v2 = vld [vmem:[#allocation74_spill] sm:$0xff] }
 0x296   : > { %1582 = vrot.lane.b32.xlu0 %v6488_v38, %s3063_s28  ;;  %2776 = vmatprep.mubr.msk.f32.mxu0 %vm2049_vm11, %v2000_v43  ;;  %v1757_v61 = vsel %vm1750_vm5, %v1708_v21, %v6499_v9  ;;  %v6502_v43 = vld [vmem:[#allocation62_spill] sm:$0xff]  ;;  %v1879_v1 = vsel %vm1848_vm7, %v1830_v42, %v4763_v45 }
 0x297   : > { %v1567_v16 = vpop.permute.xlu1 %1566  ;;  %v1806_v59 = vsel %vm1799_vm6, %v1757_v61, %v6502_v43  ;;  %v6512_v21 = vld [vmem:[#allocation34_spill] sm:$0xff] }
 0x298   : > { %v2025_v34 = vsel %vm1995_vm10, %v1976_v60, %v1567_v16  ;;  %v1519_v14 = vpop.permute.xlu0 %1518  ;;  %v6504_v60 = vld [vmem:[#allocation143_spill] sm:$0xff]  ;;  %v1855_v49 = vsel %vm1848_vm7, %v1806_v59, %v4648_v10  ;;  %v6514_v42 = vld [vmem:[#allocation122_spill] sm:$0xff] }
 0x299   : > { %v2001_v33 = vsel %vm1995_vm10, %v1952_v12, %v1519_v14  ;;  %1283 = vrot.lane.b32.xlu1 %v5057_v3, %s3061_s15  ;;  %2813 = vmatmul.mubr.msk.f32.gmra.mrb[4].mxu1 %vm2049_vm11, %v2025_v34  ;;  %v1709_v16 = vsel %vm1701_vm4, %v1660_v24, %v6504_v60  ;;  %v6505_v34 = vld [vmem:[#allocation76_spill] sm:$0xff]  ;;  %v6506_v14 = vld [vmem:[#allocation10_spill] sm:$0xff]  ;;  %v5160_v59 = vld [vmem:[%s3141_s27 + $0x170] sm:$0xff] }
 0x29a   : > { %1235 = vrot.lane.b32.xlu0 %v5063_v27, %s3061_s15  ;;  %2777 = vmatmul.mubr.msk.f32.gmra.mrb[4].mxu0 %vm2049_vm11, %v2001_v33  ;;  %v1758_v33 = vsel %vm1750_vm5, %v1709_v16, %v6506_v14 }
 0x29b   : > { %v1268_v20 = vpop.permute.xlu1 %1267  ;;  %v1807_v25 = vsel %vm1799_vm6, %v1758_v33, %v6507_v13  ;;  %v6517_v33 = vld [vmem:[#allocation121_spill] sm:$0xff] }
 0x29c   : > { %v1220_v5 = vpop.permute.xlu0 %1219  ;;  %v1928_v12 = vsel %vm1897_vm8, %v1879_v1, %v1268_v20  ;;  %v1856_v20 = vsel %vm1848_vm7, %v1807_v25, %v4646_v62  ;;  %v5165_v1 = vld [vmem:[%s3141_s27 + $0xb0] sm:$0xff] }
 0x29d   : > { %1285 = vrot.lane.b32.xlu1 %v5069_v11, %s3061_s15  ;;  %v6520_v25 = vld [vmem:[#allocation167_spill] sm:$0xff] }
 0x29e   : > { %1237 = vrot.lane.b32.xlu0 %v5074_v0, %s3061_s15 }
 0x29f   : > { %v1270_v28 = vpop.permute.xlu1 %1269 }
 0x2a0   : > { %v1222_v56 = vpop.permute.xlu0 %1221 }
 0x2a1   : > { %1434 = vrot.lane.b32.xlu1 %v6489_v46, %s3062_s26  ;;  %v1904_v46 = vsel %vm1897_vm8, %v1855_v49, %v1220_v5  ;;  %v6509_v5 = vld [vmem:[#allocation115_spill] sm:$0xff]  ;;  %v1905_v63 = vsel %vm1897_vm8, %v1856_v20, %v1222_v56  ;;  %v6513_v56 = vld [vmem:[#allocation210_spill] sm:$0xff] }
 0x2a2   : > { %1386 = vrot.lane.b32.xlu0 %v6490_v7, %s3062_s26  ;;  %v6515_v49 = vld [vmem:[#allocation46_spill] sm:$0xff] }
 0x2a3   : > { %v1419_v57 = vpop.permute.xlu1 %1418 }
 0x2a4   : > { %v1371_v52 = vpop.permute.xlu0 %1370  ;;  %v1977_v45 = vsel %vm1946_vm9, %v1928_v12, %v1419_v57  ;;  %v6510_v57 = vld [vmem:[#allocation208_spill] sm:$0xff]  ;;  %v6516_v12 = vld [vmem:[#allocation21_spill] sm:$0xff] }
 0x2a5   : > { %1436 = vrot.lane.b32.xlu1 %v6493_v30, %s3062_s26  ;;  %v1953_v53 = vsel %vm1946_vm9, %v1904_v46, %v1371_v52  ;;  %v1684_v39 = vsel %vm1652_vm3, %v6510_v57, %v6509_v5  ;;  %v6511_v52 = vld [vmem:[#allocation164_spill] sm:$0xff]  ;;  %v1685_v46 = vsel %vm1652_vm3, %v4547_v15, %v6517_v33  ;;  %v6524_v5 = vld [vmem:[#allocation14_spill] sm:$0xff] }
 0x2a6   : > { %1388 = vrot.lane.b32.xlu0 %v6496_v22, %s3062_s26  ;;  %v1733_v62 = vsel %vm1701_vm4, %v1684_v39, %v6511_v52  ;;  %v6525_v39 = vld [vmem:[#allocation212_spill] sm:$0xff]  ;;  %v6526_v52 = vld [vmem:[#allocation71_spill] sm:$0xff] }
 0x2a7   : > { %v1421_v23 = vpop.permute.xlu1 %1420  ;;  %v1782_v44 = vsel %vm1750_vm5, %v1733_v62, %v6512_v21  ;;  %v6527_v62 = vld [vmem:[#allocation218_spill] sm:$0xff] }
 0x2a8   : > { %v1373_v31 = vpop.permute.xlu0 %1372  ;;  %v1831_v61 = vsel %vm1799_vm6, %v1782_v44, %v6513_v56  ;;  %v6530_v56 = vld [vmem:[#allocation145_spill] sm:$0xff] }
 0x2a9   : > { %1584 = vrot.lane.b32.xlu1 %v6503_v17, %s3063_s28  ;;  %v1954_v22 = vsel %vm1946_vm9, %v1905_v63, %v1373_v31 }
 0x2aa   : > { %1536 = vrot.lane.b32.xlu0 %v6505_v34, %s3063_s28 }
 0x2ab   : > { %v1569_v7 = vpop.permute.xlu1 %1568 }
 0x2ac   : > { %v2026_v10 = vsel %vm1995_vm10, %v1977_v45, %v1569_v7  ;;  %v1521_v30 = vpop.permute.xlu0 %1520  ;;  %v6518_v45 = vld [vmem:[#allocation45_spill] sm:$0xff] }
 0x2ad   : > { %v2002_v4 = vsel %vm1995_vm10, %v1953_v53, %v1521_v30  ;;  %1538 = vrot.lane.b32.xlu1 %v6508_v2, %s3063_s28  ;;  %2815 = vmatprep.mubr.msk.f32.mxu1 %vm2049_vm11, %v2026_v10  ;;  %v6519_v7 = vld [vmem:[#allocation73_spill] sm:$0xff]  ;;  %v1734_v53 = vsel %vm1701_vm4, %v1685_v46, %v6520_v25  ;;  %v6521_v10 = vld [vmem:[#allocation20_spill] sm:$0xff]  ;;  %v6522_v30 = vld [vmem:[#allocation146_spill] sm:$0xff] }
 0x2ae   : > { %1141 = vrot.lane.b32.xlu0 %v6488_v38, %s3060_s4  ;;  %2779 = vmatprep.mubr.msk.f32.mxu0 %vm2049_vm11, %v2002_v4  ;;  %v1880_v38 = vsel %vm1848_vm7, %v1831_v61, %v4761_v35  ;;  %v1661_v13 = vsel %vm1652_vm3, %v4552_v26, %v6519_v7  ;;  %v6523_v4 = vld [vmem:[#allocation187_spill] sm:$0xff]  ;;  %v6534_v46 = vld [vmem:[#allocation66_spill] sm:$0xff] }
 0x2af   : > { %v1523_v29 = vpop.permute.xlu1 %1522  ;;  %v1929_v31 = vsel %vm1897_vm8, %v1880_v38, %v1270_v28  ;;  %v1710_v20 = vsel %vm1701_vm4, %v1661_v13, %v6522_v30  ;;  %v1783_v2 = vsel %vm1750_vm5, %v1734_v53, %v6523_v4  ;;  %v6531_v38 = vld [vmem:[#allocation234_spill] sm:$0xff] }
 0x2b0   : > { %v2003_v50 = vsel %vm1995_vm10, %v1954_v22, %v1523_v29  ;;  %v1126_v9 = vpop.permute.xlu0 %1125  ;;  %v1978_v41 = vsel %vm1946_vm9, %v1929_v31, %v1421_v23  ;;  %v5176_v23 = vld [vmem:[%s3141_s27 + $0xb8] sm:$0xff]  ;;  %v1759_v57 = vsel %vm1750_vm5, %v1710_v20, %v6524_v5  ;;  %v1832_v63 = vsel %vm1799_vm6, %v1783_v2, %v6525_v39  ;;  %v6528_v29 = vld [vmem:[#allocation197_spill] sm:$0xff]  ;;  %v6536_v30 = vld [vmem:[#allocation78_spill] sm:$0xff] }
 0x2b1   : > { %1143 = vrot.lane.b32.xlu1 %v6503_v17, %s3060_s4  ;;  %2780 = vmatmul.mubr.msk.f32.gmra.mrb[6].mxu0 %vm2049_vm11, %v2003_v50  ;;  %v5171_v17 = vld [vmem:[%s3141_s27 + $0x178] sm:$0xff]  ;;  %v1662_v22 = vsel %vm1652_vm3, %v6527_v62, %v6526_v52  ;;  %v1808_v21 = vsel %vm1799_vm6, %v1759_v57, %v6528_v29  ;;  %v1881_v44 = vsel %vm1848_vm7, %v1832_v63, %v1126_v9 }
 0x2b2   : > { %1586 = vrot.lane.b32.xlu0 %v6514_v42, %s3063_s28  ;;  %v6529_v50 = vld [vmem:[#allocation128_spill] sm:$0xff]  ;;  %v1711_v61 = vsel %vm1701_vm4, %v1662_v22, %v6530_v56  ;;  %v1857_v31 = vsel %vm1848_vm7, %v1808_v21, %v6531_v38  ;;  %v6541_v22 = vld [vmem:[#allocation211_spill] sm:$0xff]  ;;  %v2971_v38 = vld [vmem:[%s3141_s27 + $0x180] sm:$0xff] }
 0x2b3   : > { %v5155_v32 = vpop.permute.xlu1 %1127  ;;  %v6540_v39 = vld [vmem:[#allocation36_spill] sm:$0xff] }
 0x2b4   : > { %v1571_v24 = vpop.permute.xlu0 %1570 }
 0x2b5   : > { %v2027_v43 = vsel %vm1995_vm10, %v1978_v41, %v1571_v24  ;;  %1287 = vrot.lane.b32.xlu1 %v5160_v59, %s3061_s15  ;;  %v6532_v24 = vld [vmem:[#allocation80_spill] sm:$0xff] }
 0x2b6   : > { %1239 = vrot.lane.b32.xlu0 %v5165_v1, %s3061_s15  ;;  %2816 = vmatmul.mubr.msk.f32.gmra.mrb[6].mxu1 %vm2049_vm11, %v2027_v43  ;;  %v6533_v43 = vld [vmem:[#allocation12_spill] sm:$0xff] }
 0x2b7   : > { %v1272_v35 = vpop.permute.xlu1 %1271 }
 0x2b8   : > { %v1224_v28 = vpop.permute.xlu0 %1223  ;;  %v1930_v41 = vsel %vm1897_vm8, %v1881_v44, %v1272_v35  ;;  %v6535_v35 = vld [vmem:[#allocation233_spill] sm:$0xff] }
 0x2b9   : > { %1289 = vrot.lane.b32.xlu1 %v5171_v17, %s3061_s15 }
 0x2ba   : > { %1241 = vrot.lane.b32.xlu0 %v5176_v23, %s3061_s15 }
 0x2bb   : > { %v1274_v60 = vpop.permute.xlu1 %1273 }
 0x2bc   : > { %v1226_v16 = vpop.permute.xlu0 %1225 }
 0x2bd   : > { %1438 = vrot.lane.b32.xlu1 %v6515_v49, %s3062_s26  ;;  %v1760_v49 = vsel %vm1750_vm5, %v1711_v61, %v6533_v43 }
 0x2be   : > { %1390 = vrot.lane.b32.xlu0 %v6516_v12, %s3062_s26  ;;  %v1906_v12 = vsel %vm1897_vm8, %v1857_v31, %v1224_v28  ;;  %v6537_v28 = vld [vmem:[#allocation119_spill] sm:$0xff] }
 0x2bf   : > { %v1423_v34 = vpop.permute.xlu1 %1422 }
 0x2c0   : > { %v1375_v14 = vpop.permute.xlu0 %1374  ;;  %v1979_v9 = vsel %vm1946_vm9, %v1930_v41, %v1423_v34  ;;  %v6538_v34 = vld [vmem:[#allocation217_spill] sm:$0xff]  ;;  %v2972_v41 = vld [vmem:[%s3141_s27 + $0x188] sm:$0xff] }
 0x2c1   : > { %1440 = vrot.lane.b32.xlu1 %v6518_v45, %s3062_s26  ;;  %v1809_v45 = vsel %vm1799_vm6, %v1760_v49, %v6534_v46  ;;  %v1955_v7 = vsel %vm1946_vm9, %v1906_v12, %v1375_v14  ;;  %v1686_v20 = vsel %vm1652_vm3, %v6538_v34, %v6537_v28  ;;  %v6539_v14 = vld [vmem:[#allocation166_spill] sm:$0xff]  ;;  %v1055_v43 = vrot.slane %v2972_v41, 2  ;;  %v6545_v49 = vld [vmem:[#allocation23_spill] sm:$0xff]  ;;  %v6547_v46 = vld [vmem:[#allocation229_spill] sm:$0xff] }
 0x2c2   : > { %1392 = vrot.lane.b32.xlu0 %v6521_v10, %s3062_s26  ;;  %v1858_v53 = vsel %vm1848_vm7, %v1809_v45, %v6535_v35  ;;  %v1735_v2 = vsel %vm1701_vm4, %v1686_v20, %v6539_v14  ;;  %v6551_v35 = vld [vmem:[#allocation169_spill] sm:$0xff]  ;;  %v6555_v20 = vld [vmem:[#allocation148_spill] sm:$0xff]  ;;  %v6556_v14 = vld [vmem:[#allocation190_spill] sm:$0xff] }
 0x2c3   : > { %v1425_v15 = vpop.permute.xlu1 %1424  ;;  %v1907_v4 = vsel %vm1897_vm8, %v1858_v53, %v1226_v16  ;;  %v1784_v63 = vsel %vm1750_vm5, %v1735_v2, %v6540_v39 }
 0x2c4   : > { %v1377_v26 = vpop.permute.xlu0 %1376  ;;  %v1833_v16 = vsel %vm1799_vm6, %v1784_v63, %v6541_v22  ;;  %v6558_v63 = vld [vmem:[#allocation214_spill] sm:$0xff] }
 0x2c5   : > { %1588 = vrot.lane.b32.xlu1 %v6529_v50, %s3063_s28  ;;  %v1956_v5 = vsel %vm1946_vm9, %v1907_v4, %v1377_v26  ;;  %v6542_v26 = vld [vmem:[#allocation126_spill] sm:$0xff] }
 0x2c6   : > { %1540 = vrot.lane.b32.xlu0 %v6532_v24, %s3063_s28  ;;  %v6544_v24 = vld [vmem:[#allocation188_spill] sm:$0xff] }
 0x2c7   : > { %v1573_v33 = vpop.permute.xlu1 %1572 }
 0x2c8   : > { %v2028_v13 = vsel %vm1995_vm10, %v1979_v9, %v1573_v33  ;;  %v1525_v25 = vpop.permute.xlu0 %1524  ;;  %v6546_v33 = vld [vmem:[#allocation125_spill] sm:$0xff] }
 0x2c9   : > { %v2004_v10 = vsel %vm1995_vm10, %v1955_v7, %v1525_v25  ;;  %1542 = vrot.lane.b32.xlu1 %v6536_v30, %s3063_s28  ;;  %2818 = vmatprep.mubr.msk.f32.mxu1 %vm2049_vm11, %v2028_v13  ;;  %v1687_v45 = vsel %vm1652_vm3, %v6547_v46, %v6546_v33  ;;  %v6548_v7 = vld [vmem:[#allocation193_spill] sm:$0xff]  ;;  %v6553_v30 = vld [vmem:[#allocation42_spill] sm:$0xff]  ;;  %v6564_v33 = vld [vmem:[#allocation84_spill] sm:$0xff] }
 0x2ca   : > { %1145 = vrot.lane.b32.xlu0 %v6514_v42, %s3060_s4  ;;  %2782 = vmatprep.mubr.msk.f32.mxu0 %vm2049_vm11, %v2004_v10  ;;  %v1882_v42 = vsel %vm1848_vm7, %v1833_v16, %v5155_v32  ;;  %v6549_v13 = vld [vmem:[#allocation77_spill] sm:$0xff]  ;;  %v1736_v53 = vsel %vm1701_vm4, %v1687_v45, %v6551_v35  ;;  %v6552_v10 = vld [vmem:[#allocation22_spill] sm:$0xff]  ;;  %v6554_v28 = vrot.slane %v6553_v30, 2  ;;  %v6559_v16 = vld [vmem:[#allocation75_spill] sm:$0xff] }
 0x2cb   : > { %v1527_v57 = vpop.permute.xlu1 %1526  ;;  %v1931_v29 = vsel %vm1897_vm8, %v1882_v42, %v1274_v60  ;;  %v1785_v2 = vsel %vm1750_vm5, %v1736_v53, %v6556_v14  ;;  %v6560_v42 = vld [vmem:[#allocation232_spill] sm:$0xff]  ;;  %v2973_v46 = vld [vmem:[%s3141_s27 + $0x190] sm:$0xff]  ;;  %v6566_v35 = vld [vmem:[#allocation198_spill] sm:$0xff] }
 0x2cc   : > { %v2005_v52 = vsel %vm1995_vm10, %v1956_v5, %v1527_v57  ;;  %v1130_v62 = vpop.permute.xlu0 %1129  ;;  %v1980_v44 = vsel %vm1946_vm9, %v1931_v29, %v1425_v15  ;;  %v1056_v34 = vsel %vm516_vm1, %v6554_v28, %v1055_v43  ;;  %v6557_v57 = vld [vmem:[#allocation179_spill] sm:$0xff]  ;;  %v1664_v29 = vsel %vm1652_vm3, %v6560_v42, %v6559_v16  ;;  %v6567_v28 = vld [vmem:[#allocation102_spill] sm:$0xff]  ;;  %v6572_v42 = vld [vmem:[#allocation189_spill] sm:$0xff] }
 0x2cd   : > { %1147 = vrot.lane.b32.xlu1 %v6529_v50, %s3060_s4  ;;  %2783 = vmatmul.mubr.msk.f32.gmra.mrb[8].mxu0 %vm2049_vm11, %v2005_v52  ;;  %v6543_v50 = vld [vmem:[#allocation112_spill] sm:$0xff]  ;;  %v1834_v52 = vsel %vm1799_vm6, %v1785_v2, %v6558_v63  ;;  %v1057_v45 = vrot.slane %v2973_v46, 2  ;;  %v6568_v14 = vld [vmem:[#allocation82_spill] sm:$0xff] }
 0x2ce   : > { %1590 = vrot.lane.b32.xlu0 %v6542_v26, %s3063_s28 }
 0x2cf   : > { %v5256_v21 = vpop.permute.xlu1 %1131  ;;  %v5336_v16 = vsel %vm516_vm1, %v1055_v43, %v1057_v45 }
 0x2d0   : > { %v1575_v56 = vpop.permute.xlu0 %1574 }
 0x2d1   : > { %v2029_v61 = vsel %vm1995_vm10, %v1980_v44, %v1575_v56  ;;  %1291 = vrot.lane.b32.xlu1 %v2971_v38, %s3061_s15  ;;  %v6561_v44 = vld [vmem:[#allocation199_spill] sm:$0xff] }
 0x2d2   : > { %1243 = vrot.lane.b32.xlu0 %v6543_v50, %s3061_s15  ;;  %2819 = vmatmul.mubr.msk.f32.gmra.mrb[8].mxu1 %vm2049_vm11, %v2029_v61  ;;  %v1883_v61 = vsel %vm1848_vm7, %v1834_v52, %v1130_v62  ;;  %v6562_v38 = vld [vmem:[#allocation147_spill] sm:$0xff] }
 0x2d3   : > { %v1276_v32 = vpop.permute.xlu1 %1275  ;;  %v1713_v50 = vsel %vm1701_vm4, %v1664_v29, %v6562_v38 }
 0x2d4   : > { %v1228_v31 = vpop.permute.xlu0 %1227 }
 0x2d5   : > { %1293 = vrot.lane.b32.xlu1 %v2972_v41, %s3061_s15  ;;  %v6563_v41 = vld [vmem:[#allocation235_spill] sm:$0xff] }
 0x2d6   : > { %1245 = vrot.lane.b32.xlu0 %v4804_v19, %s3061_s15  ;;  %v6550_v19 = vld [vmem:[#allocation230_spill] sm:$0xff] }
 0x2d7   : > { %v1278_v60 = vpop.permute.xlu1 %1277  ;;  %v1663_v25 = vsel %vm1652_vm3, %v6550_v19, %v6549_v13 }
 0x2d8   : > { %v1230_v15 = vpop.permute.xlu0 %1229  ;;  %v1712_v4 = vsel %vm1701_vm4, %v1663_v25, %v6555_v20 }
 0x2d9   : > { %1442 = vrot.lane.b32.xlu1 %v6544_v24, %s3062_s26  ;;  %v1761_v39 = vsel %vm1750_vm5, %v1712_v4, %v6557_v57 }
 0x2da   : > { %1394 = vrot.lane.b32.xlu0 %v6545_v49, %s3062_s26  ;;  %v1810_v56 = vsel %vm1799_vm6, %v1761_v39, %v6561_v44  ;;  %v1932_v49 = vsel %vm1897_vm8, %v1883_v61, %v1276_v32 }
 0x2db   : > { %v1427_v12 = vpop.permute.xlu1 %1426  ;;  %v1859_v24 = vsel %vm1848_vm7, %v1810_v56, %v6563_v41  ;;  %v6573_v56 = vld [vmem:[#allocation213_spill] sm:$0xff] }
 0x2dc   : > { %v1379_v9 = vpop.permute.xlu0 %1378  ;;  %v1908_v62 = vsel %vm1897_vm8, %v1859_v24, %v1228_v31  ;;  %v1981_v19 = vsel %vm1946_vm9, %v1932_v49, %v1427_v12  ;;  %v6569_v31 = vld [vmem:[#allocation123_spill] sm:$0xff]  ;;  %v2974_v49 = vld [vmem:[%s3141_s27 + $0x198] sm:$0xff] }
 0x2dd   : > { %1444 = vrot.lane.b32.xlu1 %v6548_v7, %s3062_s26  ;;  %v6565_v7 = vld [vmem:[#allocation178_spill] sm:$0xff]  ;;  %v6570_v12 = vld [vmem:[#allocation231_spill] sm:$0xff] }
 0x2de   : > { %1396 = vrot.lane.b32.xlu0 %v6552_v10, %s3062_s26  ;;  %v1762_v13 = vsel %vm1750_vm5, %v1713_v50, %v6565_v7  ;;  %v1957_v10 = vsel %vm1946_vm9, %v1908_v62, %v1379_v9  ;;  %v1688_v2 = vsel %vm1652_vm3, %v6570_v12, %v6569_v31  ;;  %v6571_v9 = vld [vmem:[#allocation168_spill] sm:$0xff]  ;;  %v6576_v7 = vld [vmem:[#allocation38_spill] sm:$0xff] }
 0x2df   : > { %v1429_v5 = vpop.permute.xlu1 %1428  ;;  %v1811_v53 = vsel %vm1799_vm6, %v1762_v13, %v6566_v35  ;;  %v1737_v39 = vsel %vm1701_vm4, %v1688_v2, %v6571_v9  ;;  %v6577_v13 = vrot.slane %v6576_v7, 1  ;;  %v6584_v12 = vld [vmem:[#allocation150_spill] sm:$0xff]  ;;  %v6593_v7 = vld [vmem:[#allocation88_spill] sm:$0xff] }
 0x2e0   : > { %v1381_v22 = vpop.permute.xlu0 %1380  ;;  %v1860_v20 = vsel %vm1848_vm7, %v1811_v53, %v6567_v28  ;;  %v1786_v29 = vsel %vm1750_vm5, %v1737_v39, %v6572_v42  ;;  %v6579_v53 = vld [vmem:[#allocation236_spill] sm:$0xff] }
 0x2e1   : > { %1592 = vrot.lane.b32.xlu1 %v1056_v34, %s3063_s28  ;;  %v1909_v57 = vsel %vm1897_vm8, %v1860_v20, %v1230_v15  ;;  %v6582_v20 = vld [vmem:[#allocation171_spill] sm:$0xff]  ;;  %v6587_v42 = vld [vmem:[#allocation216_spill] sm:$0xff] }
 0x2e2   : > { %1544 = vrot.lane.b32.xlu0 %v6564_v33, %s3063_s28  ;;  %v1958_v63 = vsel %vm1946_vm9, %v1909_v57, %v1381_v22  ;;  %v6585_v57 = vld [vmem:[#allocation194_spill] sm:$0xff] }
 0x2e3   : > { %v1577_v25 = vpop.permute.xlu1 %1576 }
 0x2e4   : > { %v2030_v32 = vsel %vm1995_vm10, %v1981_v19, %v1577_v25  ;;  %v1529_v30 = vpop.permute.xlu0 %1528  ;;  %v1059_v19 = vrot.slane %v2974_v49, 2 }
 0x2e5   : > { %v2006_v4 = vsel %vm1995_vm10, %v1957_v10, %v1529_v30  ;;  %1546 = vrot.lane.b32.xlu1 %v6568_v14, %s3063_s28  ;;  %2821 = vmatprep.mubr.msk.f32.mxu1 %vm2049_vm11, %v2030_v32  ;;  %v6580_v32 = vld [vmem:[#allocation81_spill] sm:$0xff]  ;;  %v6583_v14 = vld [vmem:[#allocation24_spill] sm:$0xff] }
 0x2e6   : > { %1149 = vrot.lane.b32.xlu0 %v6542_v26, %s3060_s4  ;;  %2785 = vmatprep.mubr.msk.f32.mxu0 %vm2049_vm11, %v2006_v4  ;;  %v1835_v26 = vsel %vm1799_vm6, %v1786_v29, %v6573_v56  ;;  %v6581_v30 = vld [vmem:[#allocation237_spill] sm:$0xff]  ;;  %v1060_v31 = vsel %vm516_vm1, %v1057_v45, %v1059_v19  ;;  %v6588_v56 = vld [vmem:[#allocation79_spill] sm:$0xff] }
 0x2e7   : > { %v1531_v52 = vpop.permute.xlu1 %1530  ;;  %v1884_v22 = vsel %vm1848_vm7, %v1835_v26, %v5256_v21  ;;  %v1665_v28 = vsel %vm1652_vm3, %v6581_v30, %v6580_v32  ;;  %v6589_v26 = vld [vmem:[#allocation241_spill] sm:$0xff]  ;;  %v6595_v32 = vld [vmem:[#allocation200_spill] sm:$0xff] }
 0x2e8   : > { %v2007_v44 = vsel %vm1995_vm10, %v1958_v63, %v1531_v52  ;;  %v1134_v15 = vpop.permute.xlu0 %1133  ;;  %v1933_v43 = vsel %vm1897_vm8, %v1884_v22, %v1278_v60  ;;  %v1714_v2 = vsel %vm1701_vm4, %v1665_v28, %v6584_v12  ;;  %v6586_v63 = vld [vmem:[#allocation181_spill] sm:$0xff]  ;;  %v1666_v22 = vsel %vm1652_vm3, %v6589_v26, %v6588_v56  ;;  %v6601_v56 = vld [vmem:[#allocation192_spill] sm:$0xff] }
 0x2e9   : > { %1151 = vrot.lane.b32.xlu1 %v1056_v34, %s3060_s4  ;;  %2786 = vmatmul.mubr.msk.f32.gmra.mrb[10].mxu0 %vm2049_vm11, %v2007_v44  ;;  %v1982_v38 = vsel %vm1946_vm9, %v1933_v43, %v1429_v5  ;;  %v5359_v34 = vld [vmem:[%s3141_s27 + $0x1a0] sm:$0xff]  ;;  %v1763_v52 = vsel %vm1750_vm5, %v1714_v2, %v6586_v63  ;;  %v6599_v2 = vld [vmem:[#allocation240_spill] sm:$0xff] }
 0x2ea   : > { %1594 = vrot.lane.b32.xlu0 %v5336_v16, %s3063_s28  ;;  %v1352_v60 = vrot.slane %v5359_v34, 1  ;;  %v6590_v43 = vld [vmem:[#allocation201_spill] sm:$0xff] }
 0x2eb   : > { %v5350_v61 = vpop.permute.xlu1 %1135  ;;  %v1812_v45 = vsel %vm1799_vm6, %v1763_v52, %v6590_v43  ;;  %v6602_v43 = vld [vmem:[#allocation215_spill] sm:$0xff] }
 0x2ec   : > { %v1579_v50 = vpop.permute.xlu0 %1578  ;;  %v1353_v62 = vsel %vm274_vm0, %v6577_v13, %v1352_v60  ;;  %v6594_v13 = vld [vmem:[#allocation180_spill] sm:$0xff] }
 0x2ed   : > { %v2031_v41 = vsel %vm1995_vm10, %v1982_v38, %v1579_v50  ;;  %1295 = vrot.lane.b32.xlu1 %v2973_v46, %s3061_s15  ;;  %v6574_v46 = vld [vmem:[#allocation191_spill] sm:$0xff]  ;;  %v6591_v50 = vld [vmem:[#allocation149_spill] sm:$0xff] }
 0x2ee   : > { %1247 = vrot.lane.b32.xlu0 %v4879_v48, %s3061_s15  ;;  %2822 = vmatmul.mubr.msk.f32.gmra.mrb[10].mxu1 %vm2049_vm11, %v2031_v41  ;;  %v6575_v48 = vld [vmem:[#allocation25_spill] sm:$0xff]  ;;  %v1715_v41 = vsel %vm1701_vm4, %v1666_v22, %v6591_v50 }
 0x2ef   : > { %v1280_v21 = vpop.permute.xlu1 %1279 }
 0x2f0   : > { %v1232_v24 = vpop.permute.xlu0 %1231 }
 0x2f1   : > { %1297 = vrot.lane.b32.xlu1 %v2974_v49, %s3061_s15  ;;  %v6592_v49 = vld [vmem:[#allocation239_spill] sm:$0xff] }
 0x2f2   : > { %1249 = vrot.lane.b32.xlu0 %v4902_v55, %s3061_s15  ;;  %v6578_v55 = vld [vmem:[#allocation129_spill] sm:$0xff] }
 0x2f3   : > { %v1282_v5 = vpop.permute.xlu1 %1281  ;;  %v1689_v10 = vsel %vm1652_vm3, %v6579_v53, %v6578_v55 }
 0x2f4   : > { %v1234_v33 = vpop.permute.xlu0 %1233  ;;  %v1738_v4 = vsel %vm1701_vm4, %v1689_v10, %v6582_v20  ;;  %v1502_v10 = vrot.slane %v5359_v34, 2 }
 0x2f5   : > { %1446 = vrot.lane.b32.xlu1 %v6574_v46, %s3062_s26  ;;  %v1787_v9 = vsel %vm1750_vm5, %v1738_v4, %v6585_v57  ;;  %v1861_v46 = vsel %vm1848_vm7, %v1812_v45, %v6592_v49  ;;  %v6596_v4 = vld [vmem:[#allocation238_spill] sm:$0xff] }
 0x2f6   : > { %1398 = vrot.lane.b32.xlu0 %v6575_v48, %s3062_s26  ;;  %v1836_v29 = vsel %vm1799_vm6, %v1787_v9, %v6587_v42  ;;  %v1910_v55 = vsel %vm1897_vm8, %v1861_v46, %v1232_v24  ;;  %v6597_v24 = vld [vmem:[#allocation86_spill] sm:$0xff]  ;;  %v224_v46 = vld [vmem:[%s3141_s27 + $0x1b0] sm:$0xff] }
 0x2f7   : > { %v1431_v25 = vpop.permute.xlu1 %1430  ;;  %v1885_v38 = vsel %vm1848_vm7, %v1836_v29, %v1134_v15  ;;  %v1503_v29 = vsel %vm516_vm1, %v1059_v19, %v1502_v10 }
 0x2f8   : > { %v1383_v35 = vpop.permute.xlu0 %1382  ;;  %v1934_v48 = vsel %vm1897_vm8, %v1885_v38, %v1280_v21  ;;  %v223_v38 = vld [vmem:[%s3141_s27 + $0x1a8] sm:$0xff] }
 0x2f9   : > { %1448 = vrot.lane.b32.xlu1 %v1353_v62, %s3062_s26  ;;  %v1764_v62 = vsel %vm1750_vm5, %v1715_v41, %v6594_v13  ;;  %v1983_v15 = vsel %vm1946_vm9, %v1934_v48, %v1431_v25  ;;  %v1959_v28 = vsel %vm1946_vm9, %v1910_v55, %v1383_v35  ;;  %v6598_v25 = vld [vmem:[#allocation127_spill] sm:$0xff]  ;;  %v6600_v35 = vld [vmem:[#allocation170_spill] sm:$0xff]  ;;  %v1356_v48 = vrot.slane %v224_v46, 1 }
 0x2fa   : > { %1400 = vrot.lane.b32.xlu0 %v6583_v14, %s3062_s26  ;;  %v1813_v30 = vsel %vm1799_vm6, %v1764_v62, %v6595_v32  ;;  %v1690_v57 = vsel %vm1652_vm3, %v6599_v2, %v6598_v25  ;;  %v6603_v62 = vld [vmem:[#allocation27_spill] sm:$0xff]  ;;  %v6611_v2 = vld [vmem:[#allocation196_spill] sm:$0xff] }
 0x2fb   : > { %v1433_v39 = vpop.permute.xlu1 %1432  ;;  %v1862_v14 = vsel %vm1848_vm7, %v1813_v30, %v6596_v4  ;;  %v1739_v63 = vsel %vm1701_vm4, %v1690_v57, %v6600_v35  ;;  %v6604_v32 = vld [vmem:[#allocation131_spill] sm:$0xff]  ;;  %v6605_v30 = vld [vmem:[#allocation106_spill] sm:$0xff] }
 0x2fc   : > { %v1385_v44 = vpop.permute.xlu0 %1384  ;;  %v1911_v9 = vsel %vm1897_vm8, %v1862_v14, %v1234_v33  ;;  %v1788_v26 = vsel %vm1750_vm5, %v1739_v63, %v6601_v56  ;;  %v6609_v4 = vld [vmem:[#allocation26_spill] sm:$0xff]  ;;  %v6612_v35 = vld [vmem:[#allocation183_spill] sm:$0xff] }
 0x2fd   : > { %1596 = vrot.lane.b32.xlu1 %v1060_v31, %s3063_s28  ;;  %v1960_v52 = vsel %vm1946_vm9, %v1911_v9, %v1385_v44  ;;  %v6614_v56 = vld [vmem:[#allocation83_spill] sm:$0xff] }
 0x2fe   : > { %1548 = vrot.lane.b32.xlu0 %v6593_v7, %s3063_s28 }
 0x2ff   : > { %v1581_v53 = vpop.permute.xlu1 %1580 }
 0x300   : > { %v2032_v21 = vsel %vm1995_vm10, %v1983_v15, %v1581_v53  ;;  %v1533_v20 = vpop.permute.xlu0 %1532 }
 0x301   : > { %v2008_v12 = vsel %vm1995_vm10, %v1959_v28, %v1533_v20  ;;  %1550 = vrot.lane.b32.xlu1 %v6597_v24, %s3063_s28  ;;  %2824 = vmatprep.mubr.msk.f32.mxu1 %vm2049_vm11, %v2032_v21  ;;  %v6608_v21 = vld [vmem:[#allocation173_spill] sm:$0xff]  ;;  %v6610_v24 = vld [vmem:[#allocation152_spill] sm:$0xff] }
 0x302   : > { %1153 = vrot.lane.b32.xlu0 %v5336_v16, %s3060_s4  ;;  %2788 = vmatprep.mubr.msk.f32.mxu0 %vm2049_vm11, %v2008_v12  ;;  %v1837_v16 = vsel %vm1799_vm6, %v1788_v26, %v6602_v43  ;;  %v1506_v12 = vrot.slane %v224_v46, 2  ;;  %v6615_v26 = vld [vmem:[#allocation252_spill] sm:$0xff]  ;;  %v6620_v46 = vld [vmem:[#allocation182_spill] sm:$0xff] }
 0x303   : > { %v1535_v42 = vpop.permute.xlu1 %1534  ;;  %v1886_v44 = vsel %vm1848_vm7, %v1837_v16, %v5350_v61  ;;  %v1354_v61 = vrot.slane %v223_v38, 1 }
 0x304   : > { %v2009_v22 = vsel %vm1995_vm10, %v1960_v52, %v1535_v42  ;;  %v1138_v33 = vpop.permute.xlu0 %1137  ;;  %v1935_v19 = vsel %vm1897_vm8, %v1886_v44, %v1282_v5  ;;  %v6613_v52 = vld [vmem:[#allocation220_spill] sm:$0xff]  ;;  %v6617_v44 = vld [vmem:[#allocation151_spill] sm:$0xff] }
 0x305   : > { %1155 = vrot.lane.b32.xlu1 %v1060_v31, %s3060_s4  ;;  %2789 = vmatmul.mubr.msk.f32.gmra.mrb[12].mxu0 %vm2049_vm11, %v2009_v22  ;;  %v1984_v50 = vsel %vm1946_vm9, %v1935_v19, %v1433_v39  ;;  %v1355_v39 = vsel %vm274_vm0, %v1352_v60, %v1354_v61  ;;  %v1357_v55 = vsel %vm274_vm0, %v1354_v61, %v1356_v48  ;;  %v6607_v60 = vld [vmem:[#allocation251_spill] sm:$0xff]  ;;  %s2858_s4 = smul.u32 6144, %s3046_s12 }
 0x306   : > { %1598 = vrot.lane.b32.xlu0 %v1503_v29, %s3063_s28  ;;  %v1668_v22 = vsel %vm1652_vm3, %v6615_v26, %v6614_v56 }
 0x307   : > { %v5446_v45 = vpop.permute.xlu1 %1139  ;;  %v1717_v19 = vsel %vm1701_vm4, %v1668_v22, %v6617_v44  ;;  %s5823_s8 = scalar_lea.hbm %s5882_s2, %s2858_s4 }
 0x308   : > { %v1583_v41 = vpop.permute.xlu0 %1582 }
 0x309   : > { %v2033_v49 = vsel %vm1995_vm10, %v1984_v50, %v1583_v41  ;;  %1299 = vrot.lane.b32.xlu1 %v5359_v34, %s3061_s15  ;;  %v6606_v34 = vld [vmem:[#allocation85_spill] sm:$0xff] }
 0x30a   : > { %1251 = vrot.lane.b32.xlu0 %v4981_v37, %s3061_s15  ;;  %2825 = vmatmul.mubr.msk.f32.gmra.mrb[12].mxu1 %vm2049_vm11, %v2033_v49  ;;  %v1504_v37 = vrot.slane %v223_v38, 2  ;;  %v1667_v28 = vsel %vm1652_vm3, %v6607_v60, %v6606_v34  ;;  %v6619_v49 = vld [vmem:[#allocation92_spill] sm:$0xff]  ;;  %v6622_v34 = vld [vmem:[#allocation242_spill] sm:$0xff] }
 0x30b   : > { %v1284_v31 = vpop.permute.xlu1 %1283  ;;  %v1716_v25 = vsel %vm1701_vm4, %v1667_v28, %v6610_v24  ;;  %v6626_v24 = vld [vmem:[#allocation195_spill] sm:$0xff] }
 0x30c   : > { %v1236_v5 = vpop.permute.xlu0 %1235  ;;  %v1505_v14 = vsel %vm516_vm1, %v1502_v10, %v1504_v37  ;;  %v1765_v63 = vsel %vm1750_vm5, %v1716_v25, %v6612_v35  ;;  %v6616_v10 = vld [vmem:[#allocation203_spill] sm:$0xff]  ;;  %v1507_v61 = vsel %vm516_vm1, %v1504_v37, %v1506_v12 }
 0x30d   : > { %1301 = vrot.lane.b32.xlu1 %v223_v38, %s3061_s15  ;;  %v1814_v43 = vsel %vm1799_vm6, %v1765_v63, %v6616_v10  ;;  %v6618_v38 = vld [vmem:[#allocation243_spill] sm:$0xff] }
 0x30e   : > { %1253 = vrot.lane.b32.xlu0 %v5004_v40, %s3061_s15  ;;  %v1691_v40 = vsel %vm1652_vm3, %v6605_v30, %v6604_v32  ;;  %v1863_v50 = vsel %vm1848_vm7, %v1814_v43, %v6618_v38  ;;  %v6627_v35 = vld [vmem:[#allocation219_spill] sm:$0xff]  ;;  %v6628_v38 = vld [vmem:[#allocation133_spill] sm:$0xff] }
 0x30f   : > { %v1286_v7 = vpop.permute.xlu1 %1285  ;;  %v1740_v20 = vsel %vm1701_vm4, %v1691_v40, %v6608_v21 }
 0x310   : > { %v1238_v13 = vpop.permute.xlu0 %1237  ;;  %v1789_v57 = vsel %vm1750_vm5, %v1740_v20, %v6611_v2  ;;  %v6625_v20 = vld [vmem:[#allocation172_spill] sm:$0xff] }
 0x311   : > { %1450 = vrot.lane.b32.xlu1 %v1355_v39, %s3062_s26  ;;  %v1838_v42 = vsel %vm1799_vm6, %v1789_v57, %v6613_v52  ;;  %v1766_v39 = vsel %vm1750_vm5, %v1717_v19, %v6620_v46  ;;  %v6632_v46 = vld [vmem:[#allocation47_spill] sm:$0xff] }
 0x312   : > { %1402 = vrot.lane.b32.xlu0 %v6603_v62, %s3062_s26  ;;  %v1887_v16 = vsel %vm1848_vm7, %v1838_v42, %v1138_v33  ;;  %v1912_v33 = vsel %vm1897_vm8, %v1863_v50, %v1236_v5  ;;  %v2975_v5 = vld [vmem:[%s3141_s27 + $0x138] sm:$0xff]  ;;  %v6630_v50 = vld [vmem:[#allocation175_spill] sm:$0xff]  ;;  %s158_s27 = sand.u32 1, %s3038_s10  }
 0x313   : > { %v1435_v15 = vpop.permute.xlu1 %1434  ;;  %v1936_v41 = vsel %vm1897_vm8, %v1887_v16, %v1284_v31  ;;  %s2856_s30 = smul.u32 384, %s158_s27  ;;  %s5833_s12 = scalar_lea.sflag [#allocation3], %s158_s27 }
 0x314   : > { %v1387_v53 = vpop.permute.xlu0 %1386  ;;  %v1985_v48 = vsel %vm1946_vm9, %v1936_v41, %v1435_v15  ;;  %v6623_v15 = vld [vmem:[#allocation130_spill] sm:$0xff] }
 0x315   : > { %1452 = vrot.lane.b32.xlu1 %v1357_v55, %s3062_s26  ;;  %v6621_v55 = vld [vmem:[#allocation202_spill] sm:$0xff]  ;;  %v1961_v30 = vsel %vm1946_vm9, %v1912_v33, %v1387_v53  ;;  %v1692_v28 = vsel %vm1652_vm3, %v2975_v5, %v6623_v15  ;;  %v6638_v5 = vld [vmem:[#allocation245_spill] sm:$0xff]  ;;  %s5592_s3 = scalar_lea.vmem [#allocation2], %s2856_s30 }
 0x316   : > { %1404 = vrot.lane.b32.xlu0 %v6609_v4, %s3062_s26  ;;  %v1815_v32 = vsel %vm1799_vm6, %v1766_v39, %v6621_v55  ;;  %v6624_v53 = vld [vmem:[#allocation90_spill] sm:$0xff]  ;;  %v1741_v4 = vsel %vm1701_vm4, %v1692_v28, %v6625_v20  ;;  %s2567_s5 = sshll.u32 %s5592_s3, 4  ;;  %s5826_s5 = int_to_ptr.vmem [resolvable:$true] %s2567_s5 }
 0x317   : > { %v1437_v9 = vpop.permute.xlu1 %1436  ;;  %v1864_v60 = vsel %vm1848_vm7, %v1815_v32, %v6622_v34  ;;  %v1790_v25 = vsel %vm1750_vm5, %v1741_v4, %v6626_v24  ;;  %s2976_s15 = scalar_lea.vmem %s5826_s5, 6144  ;;  %p2983_p1 = scmp.lt.s32.totalorder %s5826_s5, %s2981_s18 }
 0x318   : > { %v1389_v29 = vpop.permute.xlu0 %1388  ;;  %v1913_v21 = vsel %vm1897_vm8, %v1864_v60, %v1238_v13  ;;  %v1839_v13 = vsel %vm1799_vm6, %v1790_v25, %v6627_v35  ;;  %v6637_v60 = vld [vmem:[#allocation153_spill] sm:$0xff]  ;;  %p2977_p12 = scmp.ne.s32.totalorder %s5826_s5, %s2976_s15  ;;  %p2984_p2 = scmp.lt.s32.totalorder %s2982_s20, %s2976_s15 }
 0x319   : > { %1600 = vrot.lane.b32.xlu1 %v1505_v14, %s3063_s28  ;;  %v1962_v14 = vsel %vm1946_vm9, %v1913_v21, %v1389_v29  ;;  %v1888_v63 = vsel %vm1848_vm7, %v1839_v13, %v5446_v45  ;;  %v1693_v45 = vsel %vm1652_vm3, %v4813_v6, %v6628_v38  ;;  %v6634_v6 = vld [vmem:[#allocation222_spill] sm:$0xff]  ;;  %v6639_v21 = vld [vmem:[#allocation184_spill] sm:$0xff] }
 0x31a   : > { %1552 = vrot.lane.b32.xlu0 %v6619_v49, %s3063_s28  ;;  %v1937_v52 = vsel %vm1897_vm8, %v1888_v63, %v1286_v7  ;;  %v6629_v7 = vld [vmem:[#allocation89_spill] sm:$0xff]  ;;  %v1742_v41 = vsel %vm1701_vm4, %v1693_v45, %v6630_v50  ;;  %v6631_v49 = vld [vmem:[#allocation154_spill] sm:$0xff]  ;;  %v6642_v63 = vld [vmem:[#allocation132_spill] sm:$0xff]  ;;  %p2978_p13 = pnand %p2977_p12, %p3121_p4  ;;  %p2985_p3 = por %p2984_p2, %p2983_p1 }
 0x31b   : > { %v1585_v62 = vpop.permute.xlu1 %1584  ;;  %v1986_v29 = vsel %vm1946_vm9, %v1937_v52, %v1437_v9  ;;  %v1669_v9 = vsel %vm1652_vm3, %v4823_v51, %v6629_v7  ;;  %v1791_v39 = vsel %vm1750_vm5, %v1742_v41, %v6632_v46  ;;  %v1694_v52 = vsel %vm1652_vm3, %v4844_v36, %v6642_v63 }
 0x31c   : > { %v2034_v31 = vsel %vm1995_vm10, %v1985_v48, %v1585_v62  ;;  %v1537_v40 = vpop.permute.xlu0 %1536  ;;  %v6633_v48 = vld [vmem:[#allocation185_spill] sm:$0xff]  ;;  %v1840_v55 = vsel %vm1799_vm6, %v1791_v39, %v6634_v6  ;;  %p2979_p0 = pneg %p2978_p13 }
 0x31d   : > { %v2010_v37 = vsel %vm1995_vm10, %v1961_v30, %v1537_v40  ;;  %1602 = vrot.lane.b32.xlu1 %v1507_v61, %s3063_s28  ;;  %2827 = vmatprep.mubr.msk.f32.mxu1 %vm2049_vm11, %v2034_v31  ;;  %v1718_v61 = vsel %vm1701_vm4, %v1669_v9, %v6631_v49  ;;  %v6635_v30 = vld [vmem:[#allocation87_spill] sm:$0xff]  ;;  %v6636_v31 = vld [vmem:[#allocation205_spill] sm:$0xff] }
 0x31e   : > { %1554 = vrot.lane.b32.xlu0 %v6624_v53, %s3063_s28  ;;  %2791 = vmatprep.mubr.msk.f32.mxu0 %vm2049_vm11, %v2010_v37  ;;  %v1767_v62 = vsel %vm1750_vm5, %v1718_v61, %v6633_v48  ;;  %v1670_v51 = vsel %vm1652_vm3, %v4854_v58, %v6635_v30  ;;  %v6645_v9 = vld [vmem:[#allocation221_spill] sm:$0xff]  ;;  %p2986_p5 = pnand %p2985_p3, %p2979_p0 }
 0x31f   : > { %v1539_v12 = vpop.permute.xlu1 %1538  ;;  %v1816_v40 = vsel %vm1799_vm6, %v1767_v62, %v6636_v31  ;;  %v1719_v37 = vsel %vm1701_vm4, %v1670_v51, %v6637_v60  ;;  %v6646_v31 = vld [vmem:[#allocation135_spill] sm:$0xff] }
 0x320   : > { %v2011_v2 = vsel %vm1995_vm10, %v1962_v14, %v1539_v12  ;;  %v1142_v57 = vpop.permute.xlu0 %1141  ;;  %v1865_v15 = vsel %vm1848_vm7, %v1816_v40, %v6638_v5  ;;  %v1768_v53 = vsel %vm1750_vm5, %v1719_v37, %v6639_v21  ;;  %v6640_v14 = vld [vmem:[#allocation204_spill] sm:$0xff]  ;;  %v1695_v40 = vsel %vm1652_vm3, %v4941_v54, %v6646_v31 }
 0x321   : > { %2792 = vmatmul.mubr.msk.f32.gmra.mrb[14].mxu0 %vm2049_vm11, %v2011_v2  ;;  %v1889_v34 = vsel %vm1848_vm7, %v1840_v55, %v1142_v57  ;;  %v1817_v12 = vsel %vm1799_vm6, %v1768_v53, %v6640_v14  ;;  %v6641_v57 = vld [vmem:[#allocation244_spill] sm:$0xff]  ;;  %v6651_v53 = vld [vmem:[#allocation186_spill] sm:$0xff]  ;;  %v6653_v14 = vld [vmem:[#allocation91_spill] sm:$0xff] }
 0x322   : > { %v1866_v35 = vsel %vm1848_vm7, %v1817_v12, %v6641_v57  ;;  %v6649_v37 = vld [vmem:[#allocation156_spill] sm:$0xff]  ;;  %v6654_v12 = vld [vmem:[#allocation206_spill] sm:$0xff] }
 0x323   : > { %v1144_v42 = vpop.permute.xlu1 %1143 }
 0x324   : > { %v1587_v56 = vpop.permute.xlu0 %1586 }
 0x325   : > { %v2035_v26 = vsel %vm1995_vm10, %v1986_v29, %v1587_v56  ;;  %v6643_v56 = vld [vmem:[#allocation174_spill] sm:$0xff] }
 0x326   : > { %2828 = vmatmul.mubr.msk.f32.gmra.mrb[14].mxu1 %vm2049_vm11, %v2035_v26  ;;  %v1743_v26 = vsel %vm1701_vm4, %v1694_v52, %v6643_v56  ;;  %v6657_v52 = vld [vmem:[#allocation29_spill] sm:$0xff] }
 0x327   : > { %v1288_v22 = vpop.permute.xlu1 %1287 }
 0x328   : > { %v1240_v10 = vpop.permute.xlu0 %1239  ;;  %v1938_v28 = vsel %vm1897_vm8, %v1889_v34, %v1288_v22 }
 0x329   : > { %v1914_v58 = vsel %vm1897_vm8, %v1865_v15, %v1240_v10  ;;  %v6650_v15 = vld [vmem:[#allocation48_spill] sm:$0xff] }
 0x32b   : > { %v1290_v43 = vpop.permute.xlu1 %1289 }
 0x32c   : > { %v1242_v16 = vpop.permute.xlu0 %1241 }
 0x32d   : > { %v1915_v29 = vsel %vm1897_vm8, %v1866_v35, %v1242_v16  ;;  %v6656_v35 = vld [vmem:[#allocation247_spill] sm:$0xff] }
 0x32f   : > { %v1439_v44 = vpop.permute.xlu1 %1438 }
 0x330   : > { %v1391_v19 = vpop.permute.xlu0 %1390  ;;  %v1987_v20 = vsel %vm1946_vm9, %v1938_v28, %v1439_v44  ;;  %v6644_v44 = vld [vmem:[#allocation49_spill] sm:$0xff] }
 0x331   : > { %v1963_v24 = vsel %vm1946_vm9, %v1914_v58, %v1391_v19  ;;  %v1792_v19 = vsel %vm1750_vm5, %v1743_v26, %v6644_v44 }
 0x332   : > { %v1841_v36 = vsel %vm1799_vm6, %v1792_v19, %v6645_v9 }
 0x333   : > { %v1441_v33 = vpop.permute.xlu1 %1440  ;;  %v1890_v41 = vsel %vm1848_vm7, %v1841_v36, %v1144_v42 }
 0x334   : > { %v1393_v32 = vpop.permute.xlu0 %1392  ;;  %v1939_v61 = vsel %vm1897_vm8, %v1890_v41, %v1290_v43  ;;  %v6647_v43 = vld [vmem:[#allocation93_spill] sm:$0xff]  ;;  %v6660_v41 = vld [vmem:[#allocation134_spill] sm:$0xff] }
 0x335   : > { %v1964_v22 = vsel %vm1946_vm9, %v1915_v29, %v1393_v32  ;;  %v1988_v39 = vsel %vm1946_vm9, %v1939_v61, %v1441_v33  ;;  %v1671_v34 = vsel %vm1652_vm3, %v4950_v8, %v6647_v43  ;;  %v6648_v33 = vld [vmem:[#allocation177_spill] sm:$0xff]  ;;  %v1672_v8 = vsel %vm1652_vm3, %v4967_v18, %v6653_v14 }
 0x336   : > { %v1744_v60 = vsel %vm1701_vm4, %v1695_v40, %v6648_v33  ;;  %v1720_v5 = vsel %vm1701_vm4, %v1671_v34, %v6649_v37  ;;  %v6663_v40 = vld [vmem:[#allocation223_spill] sm:$0xff]  ;;  %v6666_v14 = vld [vmem:[#allocation5_spill] sm:$0xff] }
 0x337   : > { %v1589_v4 = vpop.permute.xlu1 %1588  ;;  %v1793_v28 = vsel %vm1750_vm5, %v1744_v60, %v6650_v15  ;;  %v1769_v58 = vsel %vm1750_vm5, %v1720_v5, %v6651_v53 }
 0x338   : > { %v2036_v25 = vsel %vm1995_vm10, %v1987_v20, %v1589_v4  ;;  %v1541_v2 = vpop.permute.xlu0 %1540  ;;  %v6652_v20 = vld [vmem:[#allocation224_spill] sm:$0xff] }
 0x339   : > { %v2012_v13 = vsel %vm1995_vm10, %v1963_v24, %v1541_v2  ;;  %2830 = vmatprep.mubr.msk.f32.mxu1 %vm2049_vm11, %v2036_v25  ;;  %v1842_v54 = vsel %vm1799_vm6, %v1793_v28, %v6652_v20  ;;  %v1818_v24 = vsel %vm1799_vm6, %v1769_v58, %v6654_v12  ;;  %v6655_v2 = vld [vmem:[#allocation155_spill] sm:$0xff]  ;;  %v6667_v12 = vld [vmem:[#allocation158_spill] sm:$0xff] }
 0x33a   : > { %2794 = vmatprep.mubr.msk.f32.mxu0 %vm2049_vm11, %v2012_v13  ;;  %v1721_v57 = vsel %vm1701_vm4, %v1672_v8, %v6655_v2  ;;  %v1867_v13 = vsel %vm1848_vm7, %v1818_v24, %v6656_v35  ;;  %v6669_v35 = vld [vmem:[#allocation28_spill] sm:$0xff] }
 0x33b   : > { %v1543_v10 = vpop.permute.xlu1 %1542  ;;  %v1770_v29 = vsel %vm1750_vm5, %v1721_v57, %v6657_v52 }
 0x33c   : > { %v2013_v38 = vsel %vm1995_vm10, %v1964_v22, %v1543_v10  ;;  %v1146_v45 = vpop.permute.xlu0 %1145  ;;  %v2808_v7 = vpop.f32.mrb[0].mxu1  ;;  %v6658_v22 = vld [vmem:[#allocation96_spill] sm:$0xff] }
 0x33d   : > { %v2772_v50 = vpop.f32.mrb[0].mxu0  ;;  %2528 = vst [vmem:[%s5592_s3 + $0xc8] sm:$0xff] %v2808_v7  ;;  %2795 = vmatmul.mubr.msk.f32.gmra.mrb[16].mxu0 %vm2049_vm11, %v2013_v38  ;;  %v2384_v16 = vpop.f32.mrb[1].mxu1  ;;  %v1891_v25 = vsel %vm1848_vm7, %v1842_v54, %v1146_v45  ;;  %v1819_v10 = vsel %vm1799_vm6, %v1770_v29, %v6658_v22  ;;  %v6659_v7 = vld [vmem:[#allocation246_spill] sm:$0xff]  ;;  %v6671_v29 = vld [vmem:[#allocation95_spill] sm:$0xff] }
 0x33e   : > { %2504 = vst [vmem:[%s5592_s3 + $0x8] sm:$0xff] %v2772_v50  ;;  %v2264_v49 = vpop.f32.mrb[1].mxu0  ;;  %2527 = vst [vmem:[%s5592_s3 + $0xc0] sm:$0xff] %v2384_v16  ;;  %v1868_v9 = vsel %vm1848_vm7, %v1819_v10, %v6659_v7 }
 0x33f   : > { %2503 = vst [vmem:[%s5592_s3] sm:$0xff] %v2264_v49  ;;  %v1148_v46 = vpop.permute.xlu1 %1147  ;;  %v1696_v49 = vsel %vm1652_vm3, %v4961_v47, %v6660_v41 }
 0x340   : > { %v1591_v48 = vpop.permute.xlu0 %1590 }
 0x341   : > { %v2037_v62 = vsel %vm1995_vm10, %v1988_v39, %v1591_v48  ;;  %v6661_v48 = vld [vmem:[#allocation176_spill] sm:$0xff] }
 0x342   : > { %2831 = vmatmul.mubr.msk.f32.gmra.mrb[16].mxu1 %vm2049_vm11, %v2037_v62  ;;  %v1745_v62 = vsel %vm1701_vm4, %v1696_v49, %v6661_v48 }
 0x343   : > { %v1292_v6 = vpop.permute.xlu1 %1291 }
 0x344   : > { %v1244_v55 = vpop.permute.xlu0 %1243  ;;  %v1940_v63 = vsel %vm1897_vm8, %v1891_v25, %v1292_v6  ;;  %v6668_v25 = vld [vmem:[#allocation50_spill] sm:$0xff] }
 0x345   : > { %v1916_v56 = vsel %vm1897_vm8, %v1867_v13, %v1244_v55 }
 0x347   : > { %v1294_v32 = vpop.permute.xlu1 %1293 }
 0x348   : > { %v1246_v30 = vpop.permute.xlu0 %1245 }
 0x349   : > { %v1917_v61 = vsel %vm1897_vm8, %v1868_v9, %v1246_v30 }
 0x34b   : > { %v1443_v51 = vpop.permute.xlu1 %1442 }
 0x34c   : > { %v1395_v42 = vpop.permute.xlu0 %1394  ;;  %v1989_v18 = vsel %vm1946_vm9, %v1940_v63, %v1443_v51  ;;  %v6662_v51 = vld [vmem:[#allocation51_spill] sm:$0xff] }
 0x34d   : > { %v1965_v44 = vsel %vm1946_vm9, %v1916_v56, %v1395_v42  ;;  %v1794_v42 = vsel %vm1750_vm5, %v1745_v62, %v6662_v51  ;;  %v1674_v56 = vsel %vm1652_vm3, %v5074_v0, %v6671_v29  ;;  %v6675_v0 = vld [vmem:[#allocation31_spill] sm:$0xff] }
 0x34e   : > { %v1843_v30 = vsel %vm1799_vm6, %v1794_v42, %v6663_v40 }
 0x34f   : > { %v1445_v21 = vpop.permute.xlu1 %1444  ;;  %v1892_v43 = vsel %vm1848_vm7, %v1843_v30, %v1148_v46  ;;  %v6679_v30 = vld [vmem:[#allocation7_spill] sm:$0xff] }
 0x350   : > { %v1397_v4 = vpop.permute.xlu0 %1396  ;;  %v1941_v34 = vsel %vm1897_vm8, %v1892_v43, %v1294_v32  ;;  %v6665_v32 = vld [vmem:[#allocation97_spill] sm:$0xff] }
 0x351   : > { %v1966_v6 = vsel %vm1946_vm9, %v1917_v61, %v1397_v4  ;;  %v1990_v60 = vsel %vm1946_vm9, %v1941_v34, %v1445_v21  ;;  %v6664_v4 = vld [vmem:[#allocation137_spill] sm:$0xff]  ;;  %v1673_v21 = vsel %vm1652_vm3, %v5063_v27, %v6665_v32  ;;  %v6676_v61 = vld [vmem:[#allocation100_spill] sm:$0xff] }
 0x352   : > { %v1697_v46 = vsel %vm1652_vm3, %v5057_v3, %v6664_v4  ;;  %v1722_v24 = vsel %vm1701_vm4, %v1673_v21, %v6667_v12  ;;  %v6670_v3 = vld [vmem:[#allocation226_spill] sm:$0xff] }
 0x353   : > { %v1593_v26 = vpop.permute.xlu1 %1592  ;;  %v1746_v8 = vsel %vm1701_vm4, %v1697_v46, %v6666_v14  ;;  %v1771_v13 = vsel %vm1750_vm5, %v1722_v24, %v6669_v35 }
 0x354   : > { %v2038_v19 = vsel %vm1995_vm10, %v1989_v18, %v1593_v26  ;;  %v1545_v38 = vpop.permute.xlu0 %1544  ;;  %v2811_v45 = vpop.f32.mrb[2].mxu1  ;;  %v1795_v2 = vsel %vm1750_vm5, %v1746_v8, %v6668_v25  ;;  %v6672_v18 = vld [vmem:[#allocation94_spill] sm:$0xff] }
 0x355   : > { %v2014_v36 = vsel %vm1995_vm10, %v1965_v44, %v1545_v38  ;;  %v2775_v50 = vpop.f32.mrb[2].mxu0  ;;  %2530 = vst [vmem:[%s5592_s3 + $0xd8] sm:$0xff] %v2811_v45  ;;  %v2394_v16 = vpop.f32.mrb[3].mxu1  ;;  %2833 = vmatprep.mubr.msk.f32.mxu1 %vm2049_vm11, %v2038_v19  ;;  %v1844_v63 = vsel %vm1799_vm6, %v1795_v2, %v6670_v3  ;;  %v1820_v26 = vsel %vm1799_vm6, %v1771_v13, %v6672_v18  ;;  %v6673_v19 = vld [vmem:[#allocation157_spill] sm:$0xff]  ;;  %v6674_v45 = vld [vmem:[#allocation248_spill] sm:$0xff]  ;;  %v6682_v13 = vld [vmem:[#allocation139_spill] sm:$0xff] }
 0x356   : > { %2506 = vst [vmem:[%s5592_s3 + $0x18] sm:$0xff] %v2775_v50  ;;  %v2274_v39 = vpop.f32.mrb[3].mxu0  ;;  %2797 = vmatprep.mubr.msk.f32.mxu0 %vm2049_vm11, %v2014_v36  ;;  %2529 = vst [vmem:[%s5592_s3 + $0xd0] sm:$0xff] %v2394_v16  ;;  %v1723_v38 = vsel %vm1701_vm4, %v1674_v56, %v6673_v19  ;;  %v1869_v7 = vsel %vm1848_vm7, %v1820_v26, %v6674_v45  ;;  %v6686_v56 = vld [vmem:[#allocation52_spill] sm:$0xff]  ;;  %v6689_v19 = vld [vmem:[#allocation138_spill] sm:$0xff] }
 0x357   : > { %2505 = vst [vmem:[%s5592_s3 + $0x10] sm:$0xff] %v2274_v39  ;;  %v1547_v55 = vpop.permute.xlu1 %1546  ;;  %v1772_v50 = vsel %vm1750_vm5, %v1723_v38, %v6675_v0  ;;  %v1700_v38 = vsel %vm1652_vm3, %v5171_v17, %v6689_v19  ;;  %v6690_v45 = vld [vmem:[#allocation98_spill] sm:$0xff]  ;;  %v6691_v0 = vld [vmem:[#allocation99_spill] sm:$0xff] }
 0x358   : > { %v2015_v31 = vsel %vm1995_vm10, %v1966_v6, %v1547_v55  ;;  %v1150_v47 = vpop.permute.xlu0 %1149  ;;  %v1821_v39 = vsel %vm1799_vm6, %v1772_v50, %v6676_v61  ;;  %v6677_v55 = vld [vmem:[#allocation108_spill] sm:$0xff]  ;;  %v1676_v50 = vsel %vm1652_vm3, %v5176_v23, %v6691_v0 }
 0x359   : > { %2798 = vmatmul.mubr.msk.f32.gmra.mrb[18].mxu0 %vm2049_vm11, %v2015_v31  ;;  %v1893_v22 = vsel %vm1848_vm7, %v1844_v63, %v1150_v47  ;;  %v1870_v51 = vsel %vm1848_vm7, %v1821_v39, %v6677_v55  ;;  %v6678_v31 = vld [vmem:[#allocation136_spill] sm:$0xff]  ;;  %v6684_v63 = vld [vmem:[#allocation6_spill] sm:$0xff] }
 0x35a   : > { %v1698_v47 = vsel %vm1652_vm3, %v5069_v11, %v6678_v31  ;;  %v6696_v31 = vld [vmem:[#allocation33_spill] sm:$0xff] }
 0x35b   : > { %v1152_v33 = vpop.permute.xlu1 %1151  ;;  %v1747_v43 = vsel %vm1701_vm4, %v1698_v47, %v6679_v30 }
 0x35c   : > { %v1595_v37 = vpop.permute.xlu0 %1594 }
 0x35d   : > { %v2039_v5 = vsel %vm1995_vm10, %v1990_v60, %v1595_v37  ;;  %v6680_v37 = vld [vmem:[#allocation53_spill] sm:$0xff] }
 0x35e   : > { %2834 = vmatmul.mubr.msk.f32.gmra.mrb[18].mxu1 %vm2049_vm11, %v2039_v5  ;;  %v1796_v5 = vsel %vm1750_vm5, %v1747_v43, %v6680_v37  ;;  %v6698_v37 = vld [vmem:[#allocation104_spill] sm:$0xff] }
 0x35f   : > { %v1296_v15 = vpop.permute.xlu1 %1295 }
 0x360   : > { %v1248_v28 = vpop.permute.xlu0 %1247  ;;  %v1942_v9 = vsel %vm1897_vm8, %v1893_v22, %v1296_v15  ;;  %v6687_v22 = vld [vmem:[#allocation30_spill] sm:$0xff] }
 0x361   : > { %v1918_v16 = vsel %vm1897_vm8, %v1869_v7, %v1248_v28 }
 0x363   : > { %v1298_v53 = vpop.permute.xlu1 %1297 }
 0x364   : > { %v1250_v58 = vpop.permute.xlu0 %1249 }
 0x365   : > { %v1919_v40 = vsel %vm1897_vm8, %v1870_v51, %v1250_v58 }
 0x367   : > { %v1447_v20 = vpop.permute.xlu1 %1446 }
 0x368   : > { %v1399_v54 = vpop.permute.xlu0 %1398  ;;  %v1991_v41 = vsel %vm1946_vm9, %v1942_v9, %v1447_v20  ;;  %v6681_v20 = vld [vmem:[#allocation225_spill] sm:$0xff] }
 0x369   : > { %v1967_v48 = vsel %vm1946_vm9, %v1918_v16, %v1399_v54  ;;  %v1845_v54 = vsel %vm1799_vm6, %v1796_v5, %v6681_v20  ;;  %v6692_v16 = vld [vmem:[#allocation9_spill] sm:$0xff] }
 0x36a   : > { %v1894_v11 = vsel %vm1848_vm7, %v1845_v54, %v1152_v33  ;;  %v1699_v33 = vsel %vm1652_vm3, %v5160_v59, %v6682_v13  ;;  %v6699_v20 = vld [vmem:[#allocation249_spill] sm:$0xff] }
 0x36b   : > { %v1449_v57 = vpop.permute.xlu1 %1448  ;;  %v1943_v58 = vsel %vm1897_vm8, %v1894_v11, %v1298_v53 }
 0x36c   : > { %v1401_v52 = vpop.permute.xlu0 %1400  ;;  %v2814_v27 = vpop.f32.mrb[4].mxu1  ;;  %v1992_v46 = vsel %vm1946_vm9, %v1943_v58, %v1449_v57  ;;  %v6683_v57 = vld [vmem:[#allocation101_spill] sm:$0xff] }
 0x36d   : > { %v2778_v10 = vpop.f32.mrb[4].mxu0  ;;  %2532 = vst [vmem:[%s5592_s3 + $0xe8] sm:$0xff] %v2814_v27  ;;  %v2404_v44 = vpop.f32.mrb[5].mxu1  ;;  %v1968_v34 = vsel %vm1946_vm9, %v1919_v40, %v1401_v52  ;;  %v1675_v3 = vsel %vm1652_vm3, %v5165_v1, %v6683_v57  ;;  %v1748_v52 = vsel %vm1701_vm4, %v1699_v33, %v6684_v63  ;;  %v6685_v27 = vld [vmem:[#allocation160_spill] sm:$0xff]  ;;  %v6697_v40 = vld [vmem:[#allocation227_spill] sm:$0xff] }
 0x36e   : > { %2508 = vst [vmem:[%s5592_s3 + $0x28] sm:$0xff] %v2778_v10  ;;  %v2284_v36 = vpop.f32.mrb[5].mxu0  ;;  %2531 = vst [vmem:[%s5592_s3 + $0xe0] sm:$0xff] %v2404_v44  ;;  %v1724_v29 = vsel %vm1701_vm4, %v1675_v3, %v6685_v27  ;;  %v1797_v18 = vsel %vm1750_vm5, %v1748_v52, %v6686_v56  ;;  %v6688_v10 = vld [vmem:[#allocation228_spill] sm:$0xff] }
 0x36f   : > { %2507 = vst [vmem:[%s5592_s3 + $0x20] sm:$0xff] %v2284_v36  ;;  %v1597_v49 = vpop.permute.xlu1 %1596  ;;  %v1773_v59 = vsel %vm1750_vm5, %v1724_v29, %v6687_v22  ;;  %v1846_v44 = vsel %vm1799_vm6, %v1797_v18, %v6688_v10 }
 0x370   : > { %v2040_v62 = vsel %vm1995_vm10, %v1991_v41, %v1597_v49  ;;  %v1549_v6 = vpop.permute.xlu0 %1548  ;;  %v1822_v7 = vsel %vm1799_vm6, %v1773_v59, %v6690_v45  ;;  %v1749_v41 = vsel %vm1701_vm4, %v1700_v38, %v6692_v16  ;;  %v6693_v49 = vld [vmem:[#allocation250_spill] sm:$0xff] }
 0x371   : > { %v2016_v42 = vsel %vm1995_vm10, %v1967_v48, %v1549_v6  ;;  %2836 = vmatprep.mubr.msk.f32.mxu1 %vm2049_vm11, %v2040_v62  ;;  %v1871_v61 = vsel %vm1848_vm7, %v1822_v7, %v6693_v49  ;;  %v6694_v48 = vld [vmem:[#allocation159_spill] sm:$0xff]  ;;  %v6695_v6 = vld [vmem:[#allocation56_spill] sm:$0xff] }
 0x372   : > { %2800 = vmatprep.mubr.msk.f32.mxu0 %vm2049_vm11, %v2016_v42  ;;  %v1725_v62 = vsel %vm1701_vm4, %v1676_v50, %v6694_v48  ;;  %v1798_v55 = vsel %vm1750_vm5, %v1749_v41, %v6695_v6 }
 0x373   : > { %v1551_v60 = vpop.permute.xlu1 %1550  ;;  %v1774_v47 = vsel %vm1750_vm5, %v1725_v62, %v6696_v31  ;;  %v1847_v30 = vsel %vm1799_vm6, %v1798_v55, %v6697_v40 }
 0x374   : > { %v2017_v15 = vsel %vm1995_vm10, %v1968_v34, %v1551_v60  ;;  %v1154_v28 = vpop.permute.xlu0 %1153  ;;  %v1823_v5 = vsel %vm1799_vm6, %v1774_v47, %v6698_v37 }
 0x375   : > { %2801 = vmatmul.mubr.msk.f32.gmra.mrb[20].mxu0 %vm2049_vm11, %v2017_v15  ;;  %v1895_v9 = vsel %vm1848_vm7, %v1846_v44, %v1154_v28  ;;  %v1872_v54 = vsel %vm1848_vm7, %v1823_v5, %v6699_v20 }
 0x377   : > { %v1156_v4 = vpop.permute.xlu1 %1155 }
 0x378   : > { %v1599_v32 = vpop.permute.xlu0 %1598  ;;  %v1896_v15 = vsel %vm1848_vm7, %v1847_v30, %v1156_v4 }
 0x379   : > { %v2041_v21 = vsel %vm1995_vm10, %v1992_v46, %v1599_v32 }
 0x37a   : > { %2837 = vmatmul.mubr.msk.f32.gmra.mrb[20].mxu1 %vm2049_vm11, %v2041_v21 }
 0x37b   : > { %v1300_v14 = vpop.permute.xlu1 %1299 }
 0x37c   : > { %v1252_v8 = vpop.permute.xlu0 %1251  ;;  %v1944_v39 = vsel %vm1897_vm8, %v1895_v9, %v1300_v14 }
 0x37d   : > { %v1920_v51 = vsel %vm1897_vm8, %v1871_v61, %v1252_v8 }
 0x37f   : > { %v1302_v12 = vpop.permute.xlu1 %1301 }
 0x380   : > { %v1254_v24 = vpop.permute.xlu0 %1253  ;;  %v1945_v11 = vsel %vm1897_vm8, %v1896_v15, %v1302_v12 }
 0x381   : > { %v1921_v58 = vsel %vm1897_vm8, %v1872_v54, %v1254_v24 }
 0x383   : > { %v1451_v25 = vpop.permute.xlu1 %1450 }
 0x384   : > { %v1403_v2 = vpop.permute.xlu0 %1402  ;;  %v2781_v35 = vpop.f32.mrb[6].mxu0  ;;  %v1993_v23 = vsel %vm1946_vm9, %v1944_v39, %v1451_v25 }
 0x385   : > { %2510 = vst [vmem:[%s5592_s3 + $0x38] sm:$0xff] %v2781_v35  ;;  %v2294_v53 = vpop.f32.mrb[7].mxu0  ;;  %v1969_v43 = vsel %vm1946_vm9, %v1920_v51, %v1403_v2 }
 0x386   : > { %2509 = vst [vmem:[%s5592_s3 + $0x30] sm:$0xff] %v2294_v53 }
 0x387   : > { %v1453_v26 = vpop.permute.xlu1 %1452 }
 0x388   : > { %v1405_v1 = vpop.permute.xlu0 %1404  ;;  %v1994_v46 = vsel %vm1946_vm9, %v1945_v11, %v1453_v26 }
 0x389   : > { %v2817_v36 = vpop.f32.mrb[6].mxu1  ;;  %v1970_v32 = vsel %vm1946_vm9, %v1921_v58, %v1405_v1 }
 0x38a   : > { %2534 = vst [vmem:[%s5592_s3 + $0xf8] sm:$0xff] %v2817_v36  ;;  %v2414_v17 = vpop.f32.mrb[7].mxu1 }
 0x38b   : > { %2533 = vst [vmem:[%s5592_s3 + $0xf0] sm:$0xff] %v2414_v17  ;;  %v1601_v42 = vpop.permute.xlu1 %1600 }
 0x38c   : > { %v2042_v34 = vsel %vm1995_vm10, %v1993_v23, %v1601_v42  ;;  %v1553_v60 = vpop.permute.xlu0 %1552 }
 0x38d   : > { %v2018_v28 = vsel %vm1995_vm10, %v1969_v43, %v1553_v60  ;;  %2839 = vmatprep.mubr.msk.f32.mxu1 %vm2049_vm11, %v2042_v34 }
 0x38e   : > { %2803 = vmatprep.mubr.msk.f32.mxu0 %vm2049_vm11, %v2018_v28 }
 0x38f   : > { %v1603_v4 = vpop.permute.xlu1 %1602 }
 0x390   : > { %v2043_v21 = vsel %vm1995_vm10, %v1994_v46, %v1603_v4  ;;  %v1555_v14 = vpop.permute.xlu0 %1554 }
 0x391   : > { %v2019_v8 = vsel %vm1995_vm10, %v1970_v32, %v1555_v14  ;;  %2840 = vmatmul.mubr.msk.f32.gmra.mrb[22].mxu1 %vm2049_vm11, %v2043_v21 }
 0x392   : > { %2804 = vmatmul.mubr.msk.f32.gmra.mrb[22].mxu0 %vm2049_vm11, %v2019_v8 }
 0x3a0   : > { %v2784_v12 = vpop.f32.mrb[8].mxu0 }
 0x3a1   : > { %2512 = vst [vmem:[%s5592_s3 + $0x48] sm:$0xff] %v2784_v12  ;;  %v2304_v24 = vpop.f32.mrb[9].mxu0 }
 0x3a2   : > { %2511 = vst [vmem:[%s5592_s3 + $0x40] sm:$0xff] %v2304_v24 }
 0x3a5   : > { %v2820_v25 = vpop.f32.mrb[8].mxu1 }
 0x3a6   : > { %2536 = vst [vmem:[%s5592_s3 + $0x108] sm:$0xff] %v2820_v25  ;;  %v2424_v2 = vpop.f32.mrb[9].mxu1 }
 0x3a7   : > { %2535 = vst [vmem:[%s5592_s3 + $0x100] sm:$0xff] %v2424_v2 }
 0x3bc   : > { %v2787_v35 = vpop.f32.mrb[10].mxu0 }
 0x3bd   : > { %2514 = vst [vmem:[%s5592_s3 + $0x58] sm:$0xff] %v2787_v35  ;;  %v2314_v13 = vpop.f32.mrb[11].mxu0 }
 0x3be   : > { %2513 = vst [vmem:[%s5592_s3 + $0x50] sm:$0xff] %v2314_v13 }
 0x3c1   : > { %v2823_v33 = vpop.f32.mrb[10].mxu1 }
 0x3c2   : > { %2538 = vst [vmem:[%s5592_s3 + $0x118] sm:$0xff] %v2823_v33  ;;  %v2434_v53 = vpop.f32.mrb[11].mxu1 }
 0x3c3   : > { %2537 = vst [vmem:[%s5592_s3 + $0x110] sm:$0xff] %v2434_v53 }
 0x3d8   : > { %v2790_v57 = vpop.f32.mrb[12].mxu0 }
 0x3d9   : > { %2516 = vst [vmem:[%s5592_s3 + $0x68] sm:$0xff] %v2790_v57  ;;  %v2324_v3 = vpop.f32.mrb[13].mxu0 }
 0x3da   : > { %2515 = vst [vmem:[%s5592_s3 + $0x60] sm:$0xff] %v2324_v3 }
 0x3dd   : > { %v2826_v63 = vpop.f32.mrb[12].mxu1 }
 0x3de   : > { %2540 = vst [vmem:[%s5592_s3 + $0x128] sm:$0xff] %v2826_v63  ;;  %v2444_v52 = vpop.f32.mrb[13].mxu1 }
 0x3df   : > { %2539 = vst [vmem:[%s5592_s3 + $0x120] sm:$0xff] %v2444_v52 }
 0x3f4   : > { %v2793_v27 = vpop.f32.mrb[14].mxu0 }
 0x3f5   : > { %2518 = vst [vmem:[%s5592_s3 + $0x78] sm:$0xff] %v2793_v27  ;;  %v2334_v29 = vpop.f32.mrb[15].mxu0 }
 0x3f6   : > { %2517 = vst [vmem:[%s5592_s3 + $0x70] sm:$0xff] %v2334_v29 }
 0x3f9   : > { %v2829_v56 = vpop.f32.mrb[14].mxu1 }
 0x3fa   : > { %2542 = vst [vmem:[%s5592_s3 + $0x138] sm:$0xff] %v2829_v56  ;;  %v2454_v18 = vpop.f32.mrb[15].mxu1 }
 0x3fb   : > { %2541 = vst [vmem:[%s5592_s3 + $0x130] sm:$0xff] %v2454_v18 }
 0x410   : > { %v2796_v26 = vpop.f32.mrb[16].mxu0 }
 0x411   : > { %2520 = vst [vmem:[%s5592_s3 + $0x88] sm:$0xff] %v2796_v26  ;;  %v2344_v22 = vpop.f32.mrb[17].mxu0 }
 0x412   : > { %2519 = vst [vmem:[%s5592_s3 + $0x80] sm:$0xff] %v2344_v22 }
 0x415   : > { %v2832_v59 = vpop.f32.mrb[16].mxu1 }
 0x416   : > { %2544 = vst [vmem:[%s5592_s3 + $0x148] sm:$0xff] %v2832_v59  ;;  %v2464_v10 = vpop.f32.mrb[17].mxu1 }
 0x417   : > { %2543 = vst [vmem:[%s5592_s3 + $0x140] sm:$0xff] %v2464_v10 }
 0x42c   : > { %v2799_v44 = vpop.f32.mrb[18].mxu0 }
 0x42d   : > { %2522 = vst [vmem:[%s5592_s3 + $0x98] sm:$0xff] %v2799_v44  ;;  %v2354_v1 = vpop.f32.mrb[19].mxu0 }
 0x42e   : > { %2521 = vst [vmem:[%s5592_s3 + $0x90] sm:$0xff] %v2354_v1 }
 0x431   : > { %v2835_v19 = vpop.f32.mrb[18].mxu1 }
 0x432   : > { %2546 = vst [vmem:[%s5592_s3 + $0x158] sm:$0xff] %v2835_v19  ;;  %v2474_v38 = vpop.f32.mrb[19].mxu1 }
 0x433   : > { %2545 = vst [vmem:[%s5592_s3 + $0x150] sm:$0xff] %v2474_v38 }
 0x448   : > { %v2802_v45 = vpop.f32.mrb[20].mxu0 }
 0x449   : > { %2524 = vst [vmem:[%s5592_s3 + $0xa8] sm:$0xff] %v2802_v45  ;;  %v2364_v7 = vpop.f32.mrb[21].mxu0 }
 0x44a   : > { %2523 = vst [vmem:[%s5592_s3 + $0xa0] sm:$0xff] %v2364_v7 }
 0x44d   : > { %v2838_v9 = vpop.f32.mrb[20].mxu1 }
 0x44e   : > { %2548 = vst [vmem:[%s5592_s3 + $0x168] sm:$0xff] %v2838_v9  ;;  %v2484_v36 = vpop.f32.mrb[21].mxu1 }
 0x44f   : > { %2547 = vst [vmem:[%s5592_s3 + $0x160] sm:$0xff] %v2484_v36 }
 0x464   : > { %v2841_v0 = vpop.f32.mrb[22].mxu1 }
 0x465   : > { %v2805_v50 = vpop.f32.mrb[22].mxu0  ;;  %2550 = vst [vmem:[%s5592_s3 + $0x178] sm:$0xff] %v2841_v0  ;;  %v2494_v16 = vpop.f32.mrb[23].mxu1 }
 0x466   : > { %2526 = vst [vmem:[%s5592_s3 + $0xb8] sm:$0xff] %v2805_v50  ;;  %v2374_v41 = vpop.f32.mrb[23].mxu0  ;;  %2549 = vst [vmem:[%s5592_s3 + $0x170] sm:$0xff] %v2494_v16 }
 0x467   : > { %2525 = vst [vmem:[%s5592_s3 + $0xb0] sm:$0xff] %v2374_v41 }
 0x468   : > { %2989 = shalt.err (!%p2986_p5)
}
 0x469   : > { %s2990_s23 = scalar_lea.hbm %s5823_s8, 6144  ;;  %s2994_s26 = scalar_lea.hbm %s5882_s2, 12288 }
 0x46a   : > { %p2991_p6 = scmp.ne.s32.totalorder %s5823_s8, %s2990_s23  ;;  %p2995_p10 = scmp.lt.u32.totalorder %s5823_s8, %s5882_s2 }
 0x46b   : > { %p2996_p11 = scmp.lt.u32.totalorder %s2994_s26, %s2990_s23  ;;  %p2998_p13 = scmp.lt.u32.totalorder %s2990_s23, %s5823_s8 }
 0x46c   : > { %p2992_p7 = pnand %p2991_p6, %p3121_p4 }
 0x46d   : > { %p2997_p12 = por %p2996_p11, %p2995_p10 }
 0x46e   : > { %p2993_p9 = pneg %p2992_p7 }
 0x46f   : > { %p2999_p0 = por %p2998_p13, %p2997_p12 }
 0x471   : > { %p3000_p1 = pnand %p2999_p0, %p2993_p9 }
 0x473   : > { %3003 = shalt.err (!%p3000_p1)
}
 0x474   : > { %s3065_s30 = smov 128  }
 0x475   : > { %2859 = dma.vmem_to_hbm [thread:$0]  (%p3121_p4), %s5826_s5, 6144, %s5823_s8, %s5833_s12, %s3065_s30, %s3065_s30, %s3057_s29  }
 0x476 PF: > { %p2865_p2 = scmp.ge.s32.totalorder %s3054_s14, 2  ;;  %s2582_s3 = sand.u32 1, %s3034_s9  }
 0x477   : > { %s2583_s4 = scalar_lea.sflag [#allocation3], %s2582_s3 }
 0x478   : > { %p2862_p3 = pnand %p2865_p2, %p3128_p8 }
 0x47a   : > { %3029 = dma.done.wait (!%p2862_p3), %s2583_s4, 6144  }
 0x47b   : > { %3031 = vsyncadd (!%p2862_p3), %s2583_s4, 4294961152  ;;  %s15_s14 = sadd.s32 1, %s3054_s14   ;;  %s6700_s9 = smov %s3038_s10 }
 0x47c   : > { %p12_p5 = scmp.ge.s32.totalorder %s15_s14, 4   ;;  %s6701_s10 = smov %s3042_s11 }
 0x47d   : > { %s6702_s11 = smov %s3134_s22  ;;  %s6703_s12 = smov %s3050_s13 }
 0x47e   : > { %s6704_s13 = smov %s6706_s17  ;;  %14 = sbr.rel (!%p12_p5) target bundleno = 4 (0x4), region = 63 }
 0x485   :  { %2588 = vsyncpa [#allocation3], 1 }
 0x486   :  { %2590 = vsyncpa [#allocation3 + $0x1], 1 }

</bundles_post_ra>
